<compile_context>
chip_gen: v7x
topology: tpu7x:2x2x1
jax: 0.10.0
libtpu: 0.0.40
codegen_flags: <defaults>
</compile_context>

<pallas_src>
import jax
import jax.numpy as jnp
from jax.experimental import pallas as pl
from jax.experimental.pallas import tpu as pltpu


def _round_up(x, m):
    return (x + m - 1) // m * m


def _pick_t_blk(S, max_blk=4):
    # Largest divisor of S that is <= max_blk.  (Kept small here so the demo
    # exercises the cross-block state carry; raise for long sequences.)
    for cand in range(min(S, max_blk), 0, -1):
        if S % cand == 0:
            return cand
    return 1


# ---------------------------------------------------------------------------
# Bulk matmul + bias kernel.  Used for the hoisted layer-0 input precompute and
# for the output projection: M = S * B_pad rows -> full MXU utilization,
# unlike tiny per-timestep B-row matmuls inside the recurrence.
# ---------------------------------------------------------------------------
def _matmul_bias_kernel(x_ref, w_ref, b_ref, o_ref):
    o_ref[...] = (jnp.dot(x_ref[...], w_ref[...],
                          preferred_element_type=jnp.float32)
                  + b_ref[...]).astype(o_ref.dtype)


def matmul_bias(x, w, b, *, tm=256):
    """(M, K) @ (K, N) + (1, N) -> (M, N) float32, tiled over M."""
    M, K = x.shape
    _, N = w.shape
    Mp = _round_up(M, 8)
    tm = min(tm, Mp)
    Mp = _round_up(Mp, tm)
    if Mp != M:
        x = jnp.zeros((Mp, K), x.dtype).at[:M].set(x)
    out = pl.pallas_call(
        _matmul_bias_kernel,
        grid_spec=pltpu.PrefetchScalarGridSpec(
            num_scalar_prefetch=0,
            grid=(Mp // tm,),
            in_specs=[pl.BlockSpec((tm, K), lambda i: (i, 0)),
                      pl.BlockSpec((K, N), lambda i: (0, 0)),
                      pl.BlockSpec((1, N), lambda i: (0, 0))],
            out_specs=pl.BlockSpec((tm, N), lambda i: (i, 0)),
        ),
        out_shape=jax.ShapeDtypeStruct((Mp, N), jnp.float32),
        compiler_params=pltpu.CompilerParams(
            dimension_semantics=("parallel",)),
    )(x, w, b)
    return out[:M]


# ---------------------------------------------------------------------------
# Recurrent (2-layer LSTM) kernel, time-blocked.
# ---------------------------------------------------------------------------
def make_recurrent_kernel(H_pad, T_BLK):
    Hp = H_pad

    def gates(g):
        # PyTorch gate order: i, f, g, o.  Each slice is 128-lane aligned.
        i = jax.nn.sigmoid(g[:, 0 * Hp:1 * Hp])
        f = jax.nn.sigmoid(g[:, 1 * Hp:2 * Hp])
        gg = jnp.tanh(g[:, 2 * Hp:3 * Hp])
        o = jax.nn.sigmoid(g[:, 3 * Hp:4 * Hp])
        return i, f, gg, o

    def kernel(g0_ref,                 # (T_BLK, B_pad, 4*H_pad)  precomputed x@W_ih_l0 + b0
               h0_ref, c0_ref,         # (L, B_pad, H_pad)        initial states
               whh0_ref,               # (H_pad, 4*H_pad)  bf16   layer-0 hidden weight
               w1_ref,                 # (2*H_pad, 4*H_pad) bf16  fused [W_ih_l1; W_hh_l1]
               b1_ref,                 # (1, 4*H_pad)             layer-1 combined bias
               h1_ref,                 # (T_BLK, B_pad, H_pad)    layer-1 h per step
               hT_ref, cT_ref):        # (L, B_pad, H_pad)        state carry + final output
        @pl.when(pl.program_id(0) == 0)
        def _():
            hT_ref[...] = h0_ref[...]
            cT_ref[...] = c0_ref[...]

        # hT/cT output blocks are grid-invariant -> VMEM-resident carry.
        h0p = hT_ref[0]
        c0p = cT_ref[0]
        h1p = hT_ref[1]
        c1p = cT_ref[1]

        for tt in range(T_BLK):        # static, fully unrolled time block
            # Layer 0: input half precomputed in bulk; only h_prev @ W_hh here.
            g0 = g0_ref[tt] + jnp.dot(h0p.astype(jnp.bfloat16), whh0_ref[...],
                                      preferred_element_type=jnp.float32)
            i0, f0, gg0, o0 = gates(g0)
            c0p = f0 * c0p + i0 * gg0
            h0p = o0 * jnp.tanh(c0p)

            # Layer 1: single fused matmul over concatenated [h0_new | h1_prev].
            # (dropout = 0 in the module, so nothing between layers)
            inp1 = jnp.concatenate([h0p, h1p], axis=-1).astype(jnp.bfloat16)
            g1 = (jnp.dot(inp1, w1_ref[...],
                          preferred_element_type=jnp.float32) + b1_ref[...])
            i1, f1, gg1, o1 = gates(g1)
            c1p = f1 * c1p + i1 * gg1
            h1p = o1 * jnp.tanh(c1p)

            h1_ref[tt] = h1p

        hT_ref[0] = h0p
        cT_ref[0] = c0p
        hT_ref[1] = h1p
        cT_ref[1] = c1p

    return kernel


# ---------------------------------------------------------------------------
# Weight preparation: transpose to (in, out), pad H -> H_pad per gate so each
# gate block occupies lanes [k*H_pad, (k+1)*H_pad).
# ---------------------------------------------------------------------------
def _pad_gate_weight(w, H, H_pad, in_dim, in_pad):
    """PyTorch (4H, in) gate-stacked weight -> (in_pad, 4*H_pad), gate-major
    columns, zero-padded rows/columns (padded lanes compute exact zeros)."""
    w4 = w.reshape(4, H, in_dim).astype(jnp.float32)
    w4p = jnp.zeros((4, H_pad, in_pad), jnp.float32).at[:, :H, :in_dim].set(w4)
    return jnp.transpose(w4p, (2, 0, 1)).reshape(in_pad, 4 * H_pad)


def _pad_gate_bias(b, H, H_pad):
    b4 = b.reshape(4, H).astype(jnp.float32)
    b4p = jnp.zeros((4, H_pad), jnp.float32).at[:, :H].set(b4)
    return b4p.reshape(1, 4 * H_pad)


def text_generation_forward(x_tokens, h0, c0, params):
    """Pallas version of TextGenerationModel.forward.

    x_tokens: int32 (batch, seq)
    h0, c0:   f32 (num_layers=2, batch, hidden)
    returns (output (seq, batch, vocab), (hT, cT))
    """
    B, S = x_tokens.shape
    L, _, H = h0.shape
    V = params["embedding"].shape[1]
    assert L == 2

    H_pad = _round_up(H, 128)      # gate slices land on 128-lane boundaries
    B_pad = _round_up(B, 8)        # f32 sublane alignment
    T_BLK = _pick_t_blk(S)
    bf16 = jnp.bfloat16

    # ---- weight prep: (in, out) layout, gate-lane-aligned padding, bf16 MXU operands
    wih0_p = _pad_gate_weight(params["w_ih_l0"], H, H_pad, V, V).astype(bf16)
    whh0_p = _pad_gate_weight(params["w_hh_l0"], H, H_pad, H, H_pad).astype(bf16)
    b0_p = _pad_gate_bias(params["b_ih_l0"] + params["b_hh_l0"], H, H_pad)
    wih1_p = _pad_gate_weight(params["w_ih_l1"], H, H_pad, H, H_pad)
    whh1_p = _pad_gate_weight(params["w_hh_l1"], H, H_pad, H, H_pad)
    w1_p = jnp.concatenate([wih1_p, whh1_p], axis=0).astype(bf16)   # (2Hp, 4Hp)
    b1_p = _pad_gate_bias(params["b_ih_l1"] + params["b_hh_l1"], H, H_pad)
    wlin_p = (jnp.zeros((H_pad, V), jnp.float32)
              .at[:H].set(params["w_lin"].T.astype(jnp.float32))).astype(bf16)
    blin = params["b_lin"].astype(jnp.float32)[None, :]

    # ---- embedding gather, directly in time-major layout (only the tiny token
    #      matrix is transposed; no (S,B,V) activation transpose in HBM).
    # TODO(synk): jnp.take clamps out-of-range indices whereas nn.Embedding errors.
    tok = jnp.zeros((S, B_pad), x_tokens.dtype).at[:, :B].set(x_tokens.T)
    x_sbv = jnp.take(params["embedding"], tok, axis=0)              # (S, B_pad, V)

    # ---- (1) hoisted bulk input->gate precompute for layer 0 (full-MXU matmul)
    g0 = matmul_bias(x_sbv.reshape(S * B_pad, V).astype(bf16), wih0_p, b0_p)
    g0 = g0.reshape(S, B_pad, 4 * H_pad)

    # ---- (2) recurrent kernel over time blocks
    h0_p = jnp.zeros((L, B_pad, H_pad), jnp.float32).at[:, :B, :H].set(h0)
    c0_p = jnp.zeros((L, B_pad, H_pad), jnp.float32).at[:, :B, :H].set(c0)

    kernel = make_recurrent_kernel(H_pad, T_BLK)
    grid_spec = pltpu.PrefetchScalarGridSpec(
        num_scalar_prefetch=0,
        grid=(S // T_BLK,),
        in_specs=[
            pl.BlockSpec((T_BLK, B_pad, 4 * H_pad), lambda t: (t, 0, 0)),  # g0 block
            pl.BlockSpec((L, B_pad, H_pad), lambda t: (0, 0, 0)),          # h0
            pl.BlockSpec((L, B_pad, H_pad), lambda t: (0, 0, 0)),          # c0
            pl.BlockSpec((H_pad, 4 * H_pad), lambda t: (0, 0)),            # W_hh l0
            pl.BlockSpec((2 * H_pad, 4 * H_pad), lambda t: (0, 0)),        # fused W l1
            pl.BlockSpec((1, 4 * H_pad), lambda t: (0, 0)),                # b l1
        ],
        out_specs=[
            pl.BlockSpec((T_BLK, B_pad, H_pad), lambda t: (t, 0, 0)),      # h1 per step
            pl.BlockSpec((L, B_pad, H_pad), lambda t: (0, 0, 0)),          # hT (carry)
            pl.BlockSpec((L, B_pad, H_pad), lambda t: (0, 0, 0)),          # cT (carry)
        ],
    )
    h1_all, hT_p, cT_p = pl.pallas_call(
        kernel,
        grid_spec=grid_spec,
        out_shape=(jax.ShapeDtypeStruct((S, B_pad, H_pad), jnp.float32),
                   jax.ShapeDtypeStruct((L, B_pad, H_pad), jnp.float32),
                   jax.ShapeDtypeStruct((L, B_pad, H_pad), jnp.float32)),
        compiler_params=pltpu.CompilerParams(
            dimension_semantics=("arbitrary",),        # serial recurrence in time
            vmem_limit_bytes=32 * 1024 * 1024),
    )(g0, h0_p, c0_p, whh0_p, w1_p, b1_p)

    # ---- (3) hoisted bulk output projection (full-MXU matmul)
    logits = matmul_bias(h1_all.reshape(S * B_pad, H_pad).astype(bf16),
                         wlin_p, blin)
    logits = logits.reshape(S, B_pad, V)[:, :B, :]

    return logits, (hT_p[:, :B, :H], cT_p[:, :B, :H])


# ---------------------------------------------------------------------------
# Plain-JAX f32 reference with PyTorch LSTM semantics (gate order i, f, g, o).
# ---------------------------------------------------------------------------
def reference_forward(x_tokens, h0, c0, params):
    emb = jnp.take(params["embedding"], x_tokens, axis=0)
    x = jnp.transpose(emb, (1, 0, 2))                    # (S, B, V)

    def cell(inp, h, c, wih, whh, bih, bhh):
        g = inp @ wih.T + h @ whh.T + bih + bhh
        i, f, gg, o = jnp.split(g, 4, axis=-1)
        c_new = jax.nn.sigmoid(f) * c + jax.nn.sigmoid(i) * jnp.tanh(gg)
        h_new = jax.nn.sigmoid(o) * jnp.tanh(c_new)
        return h_new, c_new

    def step(carry, x_t):
        h0_, c0_, h1_, c1_ = carry
        h0n, c0n = cell(x_t, h0_, c0_, params["w_ih_l0"], params["w_hh_l0"],
                        params["b_ih_l0"], params["b_hh_l0"])
        h1n, c1n = cell(h0n, h1_, c1_, params["w_ih_l1"], params["w_hh_l1"],
                        params["b_ih_l1"], params["b_hh_l1"])
        return (h0n, c0n, h1n, c1n), h1n

    carry, outs = jax.lax.scan(step, (h0[0], c0[0], h0[1], c0[1]), x)
    out = outs @ params["w_lin"].T + params["b_lin"]
    hT = jnp.stack([carry[0], carry[2]])
    cT = jnp.stack([carry[1], carry[3]])
    return out, (hT, cT)


def init_params(key, batch_size, seq_length, vocab, hidden):
    keys = jax.random.split(key, 11)
    bound = 1.0 / float(hidden) ** 0.5

    def u(k, shape):
        return jax.random.uniform(k, shape, jnp.float32, -bound, bound)

    return {
        "embedding": jax.random.normal(
            keys[0], (batch_size * seq_length, vocab), jnp.float32),
        "w_ih_l0": u(keys[1], (4 * hidden, vocab)),
        "w_hh_l0": u(keys[2], (4 * hidden, hidden)),
        "b_ih_l0": u(keys[3], (4 * hidden,)),
        "b_hh_l0": u(keys[4], (4 * hidden,)),
        "w_ih_l1": u(keys[5], (4 * hidden, hidden)),
        "w_hh_l1": u(keys[6], (4 * hidden, hidden)),
        "b_ih_l1": u(keys[7], (4 * hidden,)),
        "b_hh_l1": u(keys[8], (4 * hidden,)),
        "w_lin": u(keys[9], (vocab, hidden)),
        "b_lin": u(keys[10], (vocab,)),
    }


if __name__ == "__main__":
    BATCH, SEQ, VOCAB, HIDDEN, LAYERS = 2, 8, 16, 32, 2

    key = jax.random.PRNGKey(0)
    k_tok, k_h, k_c, k_par = jax.random.split(key, 4)

    # nn.Embedding(batch*seq, vocab): indices must lie in [0, batch*seq)
    x_tokens = jax.random.randint(k_tok, (BATCH, SEQ), 0, BATCH * SEQ, jnp.int32)
    h0 = jax.random.normal(k_h, (LAYERS, BATCH, HIDDEN), jnp.float32)
    c0 = jax.random.normal(k_c, (LAYERS, BATCH, HIDDEN), jnp.float32)
    params = init_params(k_par, BATCH, SEQ, VOCAB, HIDDEN)

    out, (hT, cT) = jax.jit(text_generation_forward)(x_tokens, h0, c0, params)
    jax.block_until_ready((out, hT, cT))

    ref_out, (ref_h, ref_c) = reference_forward(x_tokens, h0, c0, params)
    assert out.shape == (SEQ, BATCH, VOCAB)
    assert hT.shape == (LAYERS, BATCH, HIDDEN) and cT.shape == hT.shape
    # bf16 MXU operands -> looser tolerance vs the pure-f32 reference.
    assert jnp.allclose(out, ref_out, atol=5e-2, rtol=5e-2)
    assert jnp.allclose(hT, ref_h, atol=5e-2, rtol=5e-2)
    assert jnp.allclose(cT, ref_c, atol=5e-2, rtol=5e-2)

    print("KERNEL_OK")
</pallas_src>

<mosaic_0001>
module attributes {stable_mosaic.version = 11 : i64} {
  func.func @_matmul_bias_kernel(%arg0: i32, %arg1: memref<64x16xbf16, #tpu.memory_space<vmem>>, %arg2: memref<16x512xbf16, #tpu.memory_space<vmem>>, %arg3: memref<1x512xf32, #tpu.memory_space<vmem>>, %arg4: memref<64x512xf32, #tpu.memory_space<vmem>>) attributes {dimension_semantics = [#tpu.dimension_semantics<parallel>], iteration_bounds = array<i64: 1>, scalar_prefetch = 0 : i64, scratch_operands = 0 : i64, tpu.core_type = #tpu.core_type<tc>, window_params = [{transform_indices = @transform_0, window_bounds = array<i64: 64, 16>}, {pipeline_mode = #tpu.pipeline_mode<synchronous>, transform_indices = @transform_1, window_bounds = array<i64: 16, 512>}, {pipeline_mode = #tpu.pipeline_mode<synchronous>, transform_indices = @transform_2, window_bounds = array<i64: 1, 512>}, {transform_indices = @transform_3, window_bounds = array<i64: 64, 512>}]} {
    %c0 = arith.constant 0 : index
    %c0_0 = arith.constant 0 : index
    %0 = vector.load %arg1[%c0, %c0_0] : memref<64x16xbf16, #tpu.memory_space<vmem>>, vector<64x16xbf16>
    %c0_1 = arith.constant 0 : index
    %c0_2 = arith.constant 0 : index
    %1 = vector.load %arg2[%c0_1, %c0_2] : memref<16x512xbf16, #tpu.memory_space<vmem>>, vector<16x512xbf16>
    %cst = arith.constant dense<0.000000e+00> : vector<64x512xf32>
    %2 = tpu.matmul %0, %1, %cst {dimension_numbers = #tpu.dot_dimension_numbers<[1], [0], [0], [1], [0, 0, 1, 1], [], []>} : vector<64x16xbf16>, vector<16x512xbf16>, vector<64x512xf32> -> vector<64x512xf32>
    %c0_3 = arith.constant 0 : index
    %c0_4 = arith.constant 0 : index
    %3 = vector.load %arg3[%c0_3, %c0_4] : memref<1x512xf32, #tpu.memory_space<vmem>>, vector<1x512xf32>
    %4 = vector.broadcast %3 : vector<1x512xf32> to vector<64x512xf32>
    %5 = arith.addf %2, %4 : vector<64x512xf32>
    %c0_5 = arith.constant 0 : index
    %c0_6 = arith.constant 0 : index
    %6 = vector.load %arg4[%c0_5, %c0_6] : memref<64x512xf32, #tpu.memory_space<vmem>>, vector<64x512xf32>
    tpu.vector_store %arg4[%c0_5, %c0_6], %5 {strides = array<i32>} : memref<64x512xf32, #tpu.memory_space<vmem>>, vector<64x512xf32>,
    return
  }
  func.func @transform_0(%arg0: i32) -> (i32, i32) {
    %c0_i32 = arith.constant 0 : i32
    %c0_i32_0 = arith.constant 0 : i32
    return %arg0, %c0_i32 : i32, i32
  }
  func.func @transform_1(%arg0: i32) -> (i32, i32) {
    %c0_i32 = arith.constant 0 : i32
    %c0_i32_0 = arith.constant 0 : i32
    %c0_i32_1 = arith.constant 0 : i32
    return %c0_i32, %c0_i32_0 : i32, i32
  }
  func.func @transform_2(%arg0: i32) -> (i32, i32) {
    %c0_i32 = arith.constant 0 : i32
    %c0_i32_0 = arith.constant 0 : i32
    %c0_i32_1 = arith.constant 0 : i32
    return %c0_i32, %c0_i32_0 : i32, i32
  }
  func.func @transform_3(%arg0: i32) -> (i32, i32) {
    %c0_i32 = arith.constant 0 : i32
    %c0_i32_0 = arith.constant 0 : i32
    return %arg0, %c0_i32 : i32, i32
  }
}

module attributes {stable_mosaic.version = 11 : i64} {
  func.func @kernel(%arg0: i32, %arg1: memref<4x8x512xf32, #tpu.memory_space<vmem>>, %arg2: memref<2x8x128xf32, #tpu.memory_space<vmem>>, %arg3: memref<2x8x128xf32, #tpu.memory_space<vmem>>, %arg4: memref<128x512xbf16, #tpu.memory_space<vmem>>, %arg5: memref<256x512xbf16, #tpu.memory_space<vmem>>, %arg6: memref<1x512xf32, #tpu.memory_space<vmem>>, %arg7: memref<4x8x128xf32, #tpu.memory_space<vmem>>, %arg8: memref<2x8x128xf32, #tpu.memory_space<vmem>>, %arg9: memref<2x8x128xf32, #tpu.memory_space<vmem>>) attributes {dimension_semantics = [#tpu.dimension_semantics<arbitrary>], iteration_bounds = array<i64: 2>, scalar_prefetch = 0 : i64, scratch_operands = 0 : i64, tpu.core_type = #tpu.core_type<tc>, window_params = [{transform_indices = @transform_0, window_bounds = array<i64: 4, 8, 512>}, {pipeline_mode = #tpu.pipeline_mode<synchronous>, transform_indices = @transform_1, window_bounds = array<i64: 2, 8, 128>}, {pipeline_mode = #tpu.pipeline_mode<synchronous>, transform_indices = @transform_2, window_bounds = array<i64: 2, 8, 128>}, {pipeline_mode = #tpu.pipeline_mode<synchronous>, transform_indices = @transform_3, window_bounds = array<i64: 128, 512>}, {pipeline_mode = #tpu.pipeline_mode<synchronous>, transform_indices = @transform_4, window_bounds = array<i64: 256, 512>}, {pipeline_mode = #tpu.pipeline_mode<synchronous>, transform_indices = @transform_5, window_bounds = array<i64: 1, 512>}, {transform_indices = @transform_6, window_bounds = array<i64: 4, 8, 128>}, {pipeline_mode = #tpu.pipeline_mode<synchronous>, transform_indices = @transform_7, window_bounds = array<i64: 2, 8, 128>}, {pipeline_mode = #tpu.pipeline_mode<synchronous>, transform_indices = @transform_8, window_bounds = array<i64: 2, 8, 128>}]} {
    %c0_i32 = arith.constant 0 : i32
    %0 = arith.cmpi eq, %arg0, %c0_i32 : i32
    %1 = arith.extui %0 : i1 to i32
    %c0_i32_0 = arith.constant 0 : i32
    %2 = arith.cmpi ne, %1, %c0_i32_0 : i32
    scf.if %2 {
      %c0_100 = arith.constant 0 : index
      %c0_101 = arith.constant 0 : index
      %c0_102 = arith.constant 0 : index
      %287 = vector.load %arg2[%c0_100, %c0_101, %c0_102] : memref<2x8x128xf32, #tpu.memory_space<vmem>>, vector<2x8x128xf32>
      %c0_103 = arith.constant 0 : index
      %c0_104 = arith.constant 0 : index
      %c0_105 = arith.constant 0 : index
      %288 = vector.load %arg8[%c0_103, %c0_104, %c0_105] : memref<2x8x128xf32, #tpu.memory_space<vmem>>, vector<2x8x128xf32>
      tpu.vector_store %arg8[%c0_103, %c0_104, %c0_105], %287 {strides = array<i32>} : memref<2x8x128xf32, #tpu.memory_space<vmem>>, vector<2x8x128xf32>,
      %c0_106 = arith.constant 0 : index
      %c0_107 = arith.constant 0 : index
      %c0_108 = arith.constant 0 : index
      %289 = vector.load %arg3[%c0_106, %c0_107, %c0_108] : memref<2x8x128xf32, #tpu.memory_space<vmem>>, vector<2x8x128xf32>
      %c0_109 = arith.constant 0 : index
      %c0_110 = arith.constant 0 : index
      %c0_111 = arith.constant 0 : index
      %290 = vector.load %arg9[%c0_109, %c0_110, %c0_111] : memref<2x8x128xf32, #tpu.memory_space<vmem>>, vector<2x8x128xf32>
      tpu.vector_store %arg9[%c0_109, %c0_110, %c0_111], %289 {strides = array<i32>} : memref<2x8x128xf32, #tpu.memory_space<vmem>>, vector<2x8x128xf32>,
    } else {
    }
    %c0 = arith.constant 0 : index
    %c0_1 = arith.constant 0 : index
    %c0_2 = arith.constant 0 : index
    %3 = vector.load %arg8[%c0, %c0_1, %c0_2] : memref<2x8x128xf32, #tpu.memory_space<vmem>>, vector<1x8x128xf32>
    %4 = vector.shape_cast %3 : vector<1x8x128xf32> to vector<8x128xf32>
    %c0_3 = arith.constant 0 : index
    %c0_4 = arith.constant 0 : index
    %c0_5 = arith.constant 0 : index
    %5 = vector.load %arg9[%c0_3, %c0_4, %c0_5] : memref<2x8x128xf32, #tpu.memory_space<vmem>>, vector<1x8x128xf32>
    %6 = vector.shape_cast %5 : vector<1x8x128xf32> to vector<8x128xf32>
    %c1 = arith.constant 1 : index
    %c0_6 = arith.constant 0 : index
    %c0_7 = arith.constant 0 : index
    %7 = vector.load %arg8[%c1, %c0_6, %c0_7] : memref<2x8x128xf32, #tpu.memory_space<vmem>>, vector<1x8x128xf32>
    %8 = vector.shape_cast %7 : vector<1x8x128xf32> to vector<8x128xf32>
    %c1_8 = arith.constant 1 : index
    %c0_9 = arith.constant 0 : index
    %c0_10 = arith.constant 0 : index
    %9 = vector.load %arg9[%c1_8, %c0_9, %c0_10] : memref<2x8x128xf32, #tpu.memory_space<vmem>>, vector<1x8x128xf32>
    %10 = vector.shape_cast %9 : vector<1x8x128xf32> to vector<8x128xf32>
    %c0_11 = arith.constant 0 : index
    %c0_12 = arith.constant 0 : index
    %c0_13 = arith.constant 0 : index
    %11 = vector.load %arg1[%c0_11, %c0_12, %c0_13] : memref<4x8x512xf32, #tpu.memory_space<vmem>>, vector<1x8x512xf32>
    %12 = vector.shape_cast %11 : vector<1x8x512xf32> to vector<8x512xf32>
    %13 = arith.truncf %4 : vector<8x128xf32> to vector<8x128xbf16>
    %c0_14 = arith.constant 0 : index
    %c0_15 = arith.constant 0 : index
    %14 = vector.load %arg4[%c0_14, %c0_15] : memref<128x512xbf16, #tpu.memory_space<vmem>>, vector<128x512xbf16>
    %cst = arith.constant dense<0.000000e+00> : vector<8x512xf32>
    %15 = tpu.matmul %13, %14, %cst {dimension_numbers = #tpu.dot_dimension_numbers<[1], [0], [0], [1], [0, 0, 1, 1], [], []>} : vector<8x128xbf16>, vector<128x512xbf16>, vector<8x512xf32> -> vector<8x512xf32>
    %16 = arith.addf %12, %15 : vector<8x512xf32>
    %17 = vector.extract_strided_slice %16 {offsets = [0, 0], sizes = [8, 128], strides = [1, 1]} : vector<8x512xf32> to vector<8x128xf32>
    %18 = arith.negf %17 : vector<8x128xf32>
    %19 = math.exp %18 : vector<8x128xf32>
    %cst_16 = arith.constant 1.000000e+00 : f32
    %20 = vector.broadcast %cst_16 : f32 to vector<8x128xf32>
    %21 = arith.addf %20, %19 : vector<8x128xf32>
    %22 = arith.divf %20, %21 : vector<8x128xf32>
    %23 = vector.extract_strided_slice %16 {offsets = [0, 128], sizes = [8, 128], strides = [1, 1]} : vector<8x512xf32> to vector<8x128xf32>
    %24 = arith.negf %23 : vector<8x128xf32>
    %25 = math.exp %24 : vector<8x128xf32>
    %cst_17 = arith.constant 1.000000e+00 : f32
    %26 = vector.broadcast %cst_17 : f32 to vector<8x128xf32>
    %27 = arith.addf %26, %25 : vector<8x128xf32>
    %28 = arith.divf %26, %27 : vector<8x128xf32>
    %29 = vector.extract_strided_slice %16 {offsets = [0, 256], sizes = [8, 128], strides = [1, 1]} : vector<8x512xf32> to vector<8x128xf32>
    %30 = math.tanh %29 : vector<8x128xf32>
    %31 = vector.extract_strided_slice %16 {offsets = [0, 384], sizes = [8, 128], strides = [1, 1]} : vector<8x512xf32> to vector<8x128xf32>
    %32 = arith.negf %31 : vector<8x128xf32>
    %33 = math.exp %32 : vector<8x128xf32>
    %cst_18 = arith.constant 1.000000e+00 : f32
    %34 = vector.broadcast %cst_18 : f32 to vector<8x128xf32>
    %35 = arith.addf %34, %33 : vector<8x128xf32>
    %36 = arith.divf %34, %35 : vector<8x128xf32>
    %37 = arith.mulf %28, %6 : vector<8x128xf32>
    %38 = arith.mulf %22, %30 : vector<8x128xf32>
    %39 = arith.addf %37, %38 : vector<8x128xf32>
    %40 = math.tanh %39 : vector<8x128xf32>
    %41 = arith.mulf %36, %40 : vector<8x128xf32>
    %42 = tpu.concatenate %41, %8 in 1 : vector<8x128xf32>, vector<8x128xf32> -> vector<8x256xf32>
    %43 = arith.truncf %42 : vector<8x256xf32> to vector<8x256xbf16>
    %c0_19 = arith.constant 0 : index
    %c0_20 = arith.constant 0 : index
    %44 = vector.load %arg5[%c0_19, %c0_20] : memref<256x512xbf16, #tpu.memory_space<vmem>>, vector<256x512xbf16>
    %cst_21 = arith.constant dense<0.000000e+00> : vector<8x512xf32>
    %45 = tpu.matmul %43, %44, %cst_21 {dimension_numbers = #tpu.dot_dimension_numbers<[1], [0], [0], [1], [0, 0, 1, 1], [], []>} : vector<8x256xbf16>, vector<256x512xbf16>, vector<8x512xf32> -> vector<8x512xf32>
    %c0_22 = arith.constant 0 : index
    %c0_23 = arith.constant 0 : index
    %46 = vector.load %arg6[%c0_22, %c0_23] : memref<1x512xf32, #tpu.memory_space<vmem>>, vector<1x512xf32>
    %47 = vector.broadcast %46 : vector<1x512xf32> to vector<8x512xf32>
    %48 = arith.addf %45, %47 : vector<8x512xf32>
    %49 = vector.extract_strided_slice %48 {offsets = [0, 0], sizes = [8, 128], strides = [1, 1]} : vector<8x512xf32> to vector<8x128xf32>
    %50 = arith.negf %49 : vector<8x128xf32>
    %51 = math.exp %50 : vector<8x128xf32>
    %cst_24 = arith.constant 1.000000e+00 : f32
    %52 = vector.broadcast %cst_24 : f32 to vector<8x128xf32>
    %53 = arith.addf %52, %51 : vector<8x128xf32>
    %54 = arith.divf %52, %53 : vector<8x128xf32>
    %55 = vector.extract_strided_slice %48 {offsets = [0, 128], sizes = [8, 128], strides = [1, 1]} : vector<8x512xf32> to vector<8x128xf32>
    %56 = arith.negf %55 : vector<8x128xf32>
    %57 = math.exp %56 : vector<8x128xf32>
    %cst_25 = arith.constant 1.000000e+00 : f32
    %58 = vector.broadcast %cst_25 : f32 to vector<8x128xf32>
    %59 = arith.addf %58, %57 : vector<8x128xf32>
    %60 = arith.divf %58, %59 : vector<8x128xf32>
    %61 = vector.extract_strided_slice %48 {offsets = [0, 256], sizes = [8, 128], strides = [1, 1]} : vector<8x512xf32> to vector<8x128xf32>
    %62 = math.tanh %61 : vector<8x128xf32>
    %63 = vector.extract_strided_slice %48 {offsets = [0, 384], sizes = [8, 128], strides = [1, 1]} : vector<8x512xf32> to vector<8x128xf32>
    %64 = arith.negf %63 : vector<8x128xf32>
    %65 = math.exp %64 : vector<8x128xf32>
    %cst_26 = arith.constant 1.000000e+00 : f32
    %66 = vector.broadcast %cst_26 : f32 to vector<8x128xf32>
    %67 = arith.addf %66, %65 : vector<8x128xf32>
    %68 = arith.divf %66, %67 : vector<8x128xf32>
    %69 = arith.mulf %60, %10 : vector<8x128xf32>
    %70 = arith.mulf %54, %62 : vector<8x128xf32>
    %71 = arith.addf %69, %70 : vector<8x128xf32>
    %72 = math.tanh %71 : vector<8x128xf32>
    %73 = arith.mulf %68, %72 : vector<8x128xf32>
    %c0_27 = arith.constant 0 : index
    %c0_28 = arith.constant 0 : index
    %c0_29 = arith.constant 0 : index
    %74 = vector.load %arg7[%c0_27, %c0_28, %c0_29] : memref<4x8x128xf32, #tpu.memory_space<vmem>>, vector<1x8x128xf32>
    %75 = vector.shape_cast %74 : vector<1x8x128xf32> to vector<8x128xf32>
    %76 = vector.shape_cast %73 : vector<8x128xf32> to vector<1x8x128xf32>
    tpu.vector_store %arg7[%c0_27, %c0_28, %c0_29], %76 {strides = array<i32>} : memref<4x8x128xf32, #tpu.memory_space<vmem>>, vector<1x8x128xf32>,
    %c1_30 = arith.constant 1 : index
    %c0_31 = arith.constant 0 : index
    %c0_32 = arith.constant 0 : index
    %77 = vector.load %arg1[%c1_30, %c0_31, %c0_32] : memref<4x8x512xf32, #tpu.memory_space<vmem>>, vector<1x8x512xf32>
    %78 = vector.shape_cast %77 : vector<1x8x512xf32> to vector<8x512xf32>
    %79 = arith.truncf %41 : vector<8x128xf32> to vector<8x128xbf16>
    %c0_33 = arith.constant 0 : index
    %c0_34 = arith.constant 0 : index
    %80 = vector.load %arg4[%c0_33, %c0_34] : memref<128x512xbf16, #tpu.memory_space<vmem>>, vector<128x512xbf16>
    %cst_35 = arith.constant dense<0.000000e+00> : vector<8x512xf32>
    %81 = tpu.matmul %79, %80, %cst_35 {dimension_numbers = #tpu.dot_dimension_numbers<[1], [0], [0], [1], [0, 0, 1, 1], [], []>} : vector<8x128xbf16>, vector<128x512xbf16>, vector<8x512xf32> -> vector<8x512xf32>
    %82 = arith.addf %78, %81 : vector<8x512xf32>
    %83 = vector.extract_strided_slice %82 {offsets = [0, 0], sizes = [8, 128], strides = [1, 1]} : vector<8x512xf32> to vector<8x128xf32>
    %84 = arith.negf %83 : vector<8x128xf32>
    %85 = math.exp %84 : vector<8x128xf32>
    %cst_36 = arith.constant 1.000000e+00 : f32
    %86 = vector.broadcast %cst_36 : f32 to vector<8x128xf32>
    %87 = arith.addf %86, %85 : vector<8x128xf32>
    %88 = arith.divf %86, %87 : vector<8x128xf32>
    %89 = vector.extract_strided_slice %82 {offsets = [0, 128], sizes = [8, 128], strides = [1, 1]} : vector<8x512xf32> to vector<8x128xf32>
    %90 = arith.negf %89 : vector<8x128xf32>
    %91 = math.exp %90 : vector<8x128xf32>
    %cst_37 = arith.constant 1.000000e+00 : f32
    %92 = vector.broadcast %cst_37 : f32 to vector<8x128xf32>
    %93 = arith.addf %92, %91 : vector<8x128xf32>
    %94 = arith.divf %92, %93 : vector<8x128xf32>
    %95 = vector.extract_strided_slice %82 {offsets = [0, 256], sizes = [8, 128], strides = [1, 1]} : vector<8x512xf32> to vector<8x128xf32>
    %96 = math.tanh %95 : vector<8x128xf32>
    %97 = vector.extract_strided_slice %82 {offsets = [0, 384], sizes = [8, 128], strides = [1, 1]} : vector<8x512xf32> to vector<8x128xf32>
    %98 = arith.negf %97 : vector<8x128xf32>
    %99 = math.exp %98 : vector<8x128xf32>
    %cst_38 = arith.constant 1.000000e+00 : f32
    %100 = vector.broadcast %cst_38 : f32 to vector<8x128xf32>
    %101 = arith.addf %100, %99 : vector<8x128xf32>
    %102 = arith.divf %100, %101 : vector<8x128xf32>
    %103 = arith.mulf %94, %39 : vector<8x128xf32>
    %104 = arith.mulf %88, %96 : vector<8x128xf32>
    %105 = arith.addf %103, %104 : vector<8x128xf32>
    %106 = math.tanh %105 : vector<8x128xf32>
    %107 = arith.mulf %102, %106 : vector<8x128xf32>
    %108 = tpu.concatenate %107, %73 in 1 : vector<8x128xf32>, vector<8x128xf32> -> vector<8x256xf32>
    %109 = arith.truncf %108 : vector<8x256xf32> to vector<8x256xbf16>
    %c0_39 = arith.constant 0 : index
    %c0_40 = arith.constant 0 : index
    %110 = vector.load %arg5[%c0_39, %c0_40] : memref<256x512xbf16, #tpu.memory_space<vmem>>, vector<256x512xbf16>
    %cst_41 = arith.constant dense<0.000000e+00> : vector<8x512xf32>
    %111 = tpu.matmul %109, %110, %cst_41 {dimension_numbers = #tpu.dot_dimension_numbers<[1], [0], [0], [1], [0, 0, 1, 1], [], []>} : vector<8x256xbf16>, vector<256x512xbf16>, vector<8x512xf32> -> vector<8x512xf32>
    %c0_42 = arith.constant 0 : index
    %c0_43 = arith.constant 0 : index
    %112 = vector.load %arg6[%c0_42, %c0_43] : memref<1x512xf32, #tpu.memory_space<vmem>>, vector<1x512xf32>
    %113 = vector.broadcast %112 : vector<1x512xf32> to vector<8x512xf32>
    %114 = arith.addf %111, %113 : vector<8x512xf32>
    %115 = vector.extract_strided_slice %114 {offsets = [0, 0], sizes = [8, 128], strides = [1, 1]} : vector<8x512xf32> to vector<8x128xf32>
    %116 = arith.negf %115 : vector<8x128xf32>
    %117 = math.exp %116 : vector<8x128xf32>
    %cst_44 = arith.constant 1.000000e+00 : f32
    %118 = vector.broadcast %cst_44 : f32 to vector<8x128xf32>
    %119 = arith.addf %118, %117 : vector<8x128xf32>
    %120 = arith.divf %118, %119 : vector<8x128xf32>
    %121 = vector.extract_strided_slice %114 {offsets = [0, 128], sizes = [8, 128], strides = [1, 1]} : vector<8x512xf32> to vector<8x128xf32>
    %122 = arith.negf %121 : vector<8x128xf32>
    %123 = math.exp %122 : vector<8x128xf32>
    %cst_45 = arith.constant 1.000000e+00 : f32
    %124 = vector.broadcast %cst_45 : f32 to vector<8x128xf32>
    %125 = arith.addf %124, %123 : vector<8x128xf32>
    %126 = arith.divf %124, %125 : vector<8x128xf32>
    %127 = vector.extract_strided_slice %114 {offsets = [0, 256], sizes = [8, 128], strides = [1, 1]} : vector<8x512xf32> to vector<8x128xf32>
    %128 = math.tanh %127 : vector<8x128xf32>
    %129 = vector.extract_strided_slice %114 {offsets = [0, 384], sizes = [8, 128], strides = [1, 1]} : vector<8x512xf32> to vector<8x128xf32>
    %130 = arith.negf %129 : vector<8x128xf32>
    %131 = math.exp %130 : vector<8x128xf32>
    %cst_46 = arith.constant 1.000000e+00 : f32
    %132 = vector.broadcast %cst_46 : f32 to vector<8x128xf32>
    %133 = arith.addf %132, %131 : vector<8x128xf32>
    %134 = arith.divf %132, %133 : vector<8x128xf32>
    %135 = arith.mulf %126, %71 : vector<8x128xf32>
    %136 = arith.mulf %120, %128 : vector<8x128xf32>
    %137 = arith.addf %135, %136 : vector<8x128xf32>
    %138 = math.tanh %137 : vector<8x128xf32>
    %139 = arith.mulf %134, %138 : vector<8x128xf32>
    %c1_47 = arith.constant 1 : index
    %c0_48 = arith.constant 0 : index
    %c0_49 = arith.constant 0 : index
    %140 = vector.load %arg7[%c1_47, %c0_48, %c0_49] : memref<4x8x128xf32, #tpu.memory_space<vmem>>, vector<1x8x128xf32>
    %141 = vector.shape_cast %140 : vector<1x8x128xf32> to vector<8x128xf32>
    %142 = vector.shape_cast %139 : vector<8x128xf32> to vector<1x8x128xf32>
    tpu.vector_store %arg7[%c1_47, %c0_48, %c0_49], %142 {strides = array<i32>} : memref<4x8x128xf32, #tpu.memory_space<vmem>>, vector<1x8x128xf32>,
    %c2 = arith.constant 2 : index
    %c0_50 = arith.constant 0 : index
    %c0_51 = arith.constant 0 : index
    %143 = vector.load %arg1[%c2, %c0_50, %c0_51] : memref<4x8x512xf32, #tpu.memory_space<vmem>>, vector<1x8x512xf32>
    %144 = vector.shape_cast %143 : vector<1x8x512xf32> to vector<8x512xf32>
    %145 = arith.truncf %107 : vector<8x128xf32> to vector<8x128xbf16>
    %c0_52 = arith.constant 0 : index
    %c0_53 = arith.constant 0 : index
    %146 = vector.load %arg4[%c0_52, %c0_53] : memref<128x512xbf16, #tpu.memory_space<vmem>>, vector<128x512xbf16>
    %cst_54 = arith.constant dense<0.000000e+00> : vector<8x512xf32>
    %147 = tpu.matmul %145, %146, %cst_54 {dimension_numbers = #tpu.dot_dimension_numbers<[1], [0], [0], [1], [0, 0, 1, 1], [], []>} : vector<8x128xbf16>, vector<128x512xbf16>, vector<8x512xf32> -> vector<8x512xf32>
    %148 = arith.addf %144, %147 : vector<8x512xf32>
    %149 = vector.extract_strided_slice %148 {offsets = [0, 0], sizes = [8, 128], strides = [1, 1]} : vector<8x512xf32> to vector<8x128xf32>
    %150 = arith.negf %149 : vector<8x128xf32>
    %151 = math.exp %150 : vector<8x128xf32>
    %cst_55 = arith.constant 1.000000e+00 : f32
    %152 = vector.broadcast %cst_55 : f32 to vector<8x128xf32>
    %153 = arith.addf %152, %151 : vector<8x128xf32>
    %154 = arith.divf %152, %153 : vector<8x128xf32>
    %155 = vector.extract_strided_slice %148 {offsets = [0, 128], sizes = [8, 128], strides = [1, 1]} : vector<8x512xf32> to vector<8x128xf32>
    %156 = arith.negf %155 : vector<8x128xf32>
    %157 = math.exp %156 : vector<8x128xf32>
    %cst_56 = arith.constant 1.000000e+00 : f32
    %158 = vector.broadcast %cst_56 : f32 to vector<8x128xf32>
    %159 = arith.addf %158, %157 : vector<8x128xf32>
    %160 = arith.divf %158, %159 : vector<8x128xf32>
    %161 = vector.extract_strided_slice %148 {offsets = [0, 256], sizes = [8, 128], strides = [1, 1]} : vector<8x512xf32> to vector<8x128xf32>
    %162 = math.tanh %161 : vector<8x128xf32>
    %163 = vector.extract_strided_slice %148 {offsets = [0, 384], sizes = [8, 128], strides = [1, 1]} : vector<8x512xf32> to vector<8x128xf32>
    %164 = arith.negf %163 : vector<8x128xf32>
    %165 = math.exp %164 : vector<8x128xf32>
    %cst_57 = arith.constant 1.000000e+00 : f32
    %166 = vector.broadcast %cst_57 : f32 to vector<8x128xf32>
    %167 = arith.addf %166, %165 : vector<8x128xf32>
    %168 = arith.divf %166, %167 : vector<8x128xf32>
    %169 = arith.mulf %160, %105 : vector<8x128xf32>
    %170 = arith.mulf %154, %162 : vector<8x128xf32>
    %171 = arith.addf %169, %170 : vector<8x128xf32>
    %172 = math.tanh %171 : vector<8x128xf32>
    %173 = arith.mulf %168, %172 : vector<8x128xf32>
    %174 = tpu.concatenate %173, %139 in 1 : vector<8x128xf32>, vector<8x128xf32> -> vector<8x256xf32>
    %175 = arith.truncf %174 : vector<8x256xf32> to vector<8x256xbf16>
    %c0_58 = arith.constant 0 : index
    %c0_59 = arith.constant 0 : index
    %176 = vector.load %arg5[%c0_58, %c0_59] : memref<256x512xbf16, #tpu.memory_space<vmem>>, vector<256x512xbf16>
    %cst_60 = arith.constant dense<0.000000e+00> : vector<8x512xf32>
    %177 = tpu.matmul %175, %176, %cst_60 {dimension_numbers = #tpu.dot_dimension_numbers<[1], [0], [0], [1], [0, 0, 1, 1], [], []>} : vector<8x256xbf16>, vector<256x512xbf16>, vector<8x512xf32> -> vector<8x512xf32>
    %c0_61 = arith.constant 0 : index
    %c0_62 = arith.constant 0 : index
    %178 = vector.load %arg6[%c0_61, %c0_62] : memref<1x512xf32, #tpu.memory_space<vmem>>, vector<1x512xf32>
    %179 = vector.broadcast %178 : vector<1x512xf32> to vector<8x512xf32>
    %180 = arith.addf %177, %179 : vector<8x512xf32>
    %181 = vector.extract_strided_slice %180 {offsets = [0, 0], sizes = [8, 128], strides = [1, 1]} : vector<8x512xf32> to vector<8x128xf32>
    %182 = arith.negf %181 : vector<8x128xf32>
    %183 = math.exp %182 : vector<8x128xf32>
    %cst_63 = arith.constant 1.000000e+00 : f32
    %184 = vector.broadcast %cst_63 : f32 to vector<8x128xf32>
    %185 = arith.addf %184, %183 : vector<8x128xf32>
    %186 = arith.divf %184, %185 : vector<8x128xf32>
    %187 = vector.extract_strided_slice %180 {offsets = [0, 128], sizes = [8, 128], strides = [1, 1]} : vector<8x512xf32> to vector<8x128xf32>
    %188 = arith.negf %187 : vector<8x128xf32>
    %189 = math.exp %188 : vector<8x128xf32>
    %cst_64 = arith.constant 1.000000e+00 : f32
    %190 = vector.broadcast %cst_64 : f32 to vector<8x128xf32>
    %191 = arith.addf %190, %189 : vector<8x128xf32>
    %192 = arith.divf %190, %191 : vector<8x128xf32>
    %193 = vector.extract_strided_slice %180 {offsets = [0, 256], sizes = [8, 128], strides = [1, 1]} : vector<8x512xf32> to vector<8x128xf32>
    %194 = math.tanh %193 : vector<8x128xf32>
    %195 = vector.extract_strided_slice %180 {offsets = [0, 384], sizes = [8, 128], strides = [1, 1]} : vector<8x512xf32> to vector<8x128xf32>
    %196 = arith.negf %195 : vector<8x128xf32>
    %197 = math.exp %196 : vector<8x128xf32>
    %cst_65 = arith.constant 1.000000e+00 : f32
    %198 = vector.broadcast %cst_65 : f32 to vector<8x128xf32>
    %199 = arith.addf %198, %197 : vector<8x128xf32>
    %200 = arith.divf %198, %199 : vector<8x128xf32>
    %201 = arith.mulf %192, %137 : vector<8x128xf32>
    %202 = arith.mulf %186, %194 : vector<8x128xf32>
    %203 = arith.addf %201, %202 : vector<8x128xf32>
    %204 = math.tanh %203 : vector<8x128xf32>
    %205 = arith.mulf %200, %204 : vector<8x128xf32>
    %c2_66 = arith.constant 2 : index
    %c0_67 = arith.constant 0 : index
    %c0_68 = arith.constant 0 : index
    %206 = vector.load %arg7[%c2_66, %c0_67, %c0_68] : memref<4x8x128xf32, #tpu.memory_space<vmem>>, vector<1x8x128xf32>
    %207 = vector.shape_cast %206 : vector<1x8x128xf32> to vector<8x128xf32>
    %208 = vector.shape_cast %205 : vector<8x128xf32> to vector<1x8x128xf32>
    tpu.vector_store %arg7[%c2_66, %c0_67, %c0_68], %208 {strides = array<i32>} : memref<4x8x128xf32, #tpu.memory_space<vmem>>, vector<1x8x128xf32>,
    %c3 = arith.constant 3 : index
    %c0_69 = arith.constant 0 : index
    %c0_70 = arith.constant 0 : index
    %209 = vector.load %arg1[%c3, %c0_69, %c0_70] : memref<4x8x512xf32, #tpu.memory_space<vmem>>, vector<1x8x512xf32>
    %210 = vector.shape_cast %209 : vector<1x8x512xf32> to vector<8x512xf32>
    %211 = arith.truncf %173 : vector<8x128xf32> to vector<8x128xbf16>
    %c0_71 = arith.constant 0 : index
    %c0_72 = arith.constant 0 : index
    %212 = vector.load %arg4[%c0_71, %c0_72] : memref<128x512xbf16, #tpu.memory_space<vmem>>, vector<128x512xbf16>
    %cst_73 = arith.constant dense<0.000000e+00> : vector<8x512xf32>
    %213 = tpu.matmul %211, %212, %cst_73 {dimension_numbers = #tpu.dot_dimension_numbers<[1], [0], [0], [1], [0, 0, 1, 1], [], []>} : vector<8x128xbf16>, vector<128x512xbf16>, vector<8x512xf32> -> vector<8x512xf32>
    %214 = arith.addf %210, %213 : vector<8x512xf32>
    %215 = vector.extract_strided_slice %214 {offsets = [0, 0], sizes = [8, 128], strides = [1, 1]} : vector<8x512xf32> to vector<8x128xf32>
    %216 = arith.negf %215 : vector<8x128xf32>
    %217 = math.exp %216 : vector<8x128xf32>
    %cst_74 = arith.constant 1.000000e+00 : f32
    %218 = vector.broadcast %cst_74 : f32 to vector<8x128xf32>
    %219 = arith.addf %218, %217 : vector<8x128xf32>
    %220 = arith.divf %218, %219 : vector<8x128xf32>
    %221 = vector.extract_strided_slice %214 {offsets = [0, 128], sizes = [8, 128], strides = [1, 1]} : vector<8x512xf32> to vector<8x128xf32>
    %222 = arith.negf %221 : vector<8x128xf32>
    %223 = math.exp %222 : vector<8x128xf32>
    %cst_75 = arith.constant 1.000000e+00 : f32
    %224 = vector.broadcast %cst_75 : f32 to vector<8x128xf32>
    %225 = arith.addf %224, %223 : vector<8x128xf32>
    %226 = arith.divf %224, %225 : vector<8x128xf32>
    %227 = vector.extract_strided_slice %214 {offsets = [0, 256], sizes = [8, 128], strides = [1, 1]} : vector<8x512xf32> to vector<8x128xf32>
    %228 = math.tanh %227 : vector<8x128xf32>
    %229 = vector.extract_strided_slice %214 {offsets = [0, 384], sizes = [8, 128], strides = [1, 1]} : vector<8x512xf32> to vector<8x128xf32>
    %230 = arith.negf %229 : vector<8x128xf32>
    %231 = math.exp %230 : vector<8x128xf32>
    %cst_76 = arith.constant 1.000000e+00 : f32
    %232 = vector.broadcast %cst_76 : f32 to vector<8x128xf32>
    %233 = arith.addf %232, %231 : vector<8x128xf32>
    %234 = arith.divf %232, %233 : vector<8x128xf32>
    %235 = arith.mulf %226, %171 : vector<8x128xf32>
    %236 = arith.mulf %220, %228 : vector<8x128xf32>
    %237 = arith.addf %235, %236 : vector<8x128xf32>
    %238 = math.tanh %237 : vector<8x128xf32>
    %239 = arith.mulf %234, %238 : vector<8x128xf32>
    %240 = tpu.concatenate %239, %205 in 1 : vector<8x128xf32>, vector<8x128xf32> -> vector<8x256xf32>
    %241 = arith.truncf %240 : vector<8x256xf32> to vector<8x256xbf16>
    %c0_77 = arith.constant 0 : index
    %c0_78 = arith.constant 0 : index
    %242 = vector.load %arg5[%c0_77, %c0_78] : memref<256x512xbf16, #tpu.memory_space<vmem>>, vector<256x512xbf16>
    %cst_79 = arith.constant dense<0.000000e+00> : vector<8x512xf32>
    %243 = tpu.matmul %241, %242, %cst_79 {dimension_numbers = #tpu.dot_dimension_numbers<[1], [0], [0], [1], [0, 0, 1, 1], [], []>} : vector<8x256xbf16>, vector<256x512xbf16>, vector<8x512xf32> -> vector<8x512xf32>
    %c0_80 = arith.constant 0 : index
    %c0_81 = arith.constant 0 : index
    %244 = vector.load %arg6[%c0_80, %c0_81] : memref<1x512xf32, #tpu.memory_space<vmem>>, vector<1x512xf32>
    %245 = vector.broadcast %244 : vector<1x512xf32> to vector<8x512xf32>
    %246 = arith.addf %243, %245 : vector<8x512xf32>
    %247 = vector.extract_strided_slice %246 {offsets = [0, 0], sizes = [8, 128], strides = [1, 1]} : vector<8x512xf32> to vector<8x128xf32>
    %248 = arith.negf %247 : vector<8x128xf32>
    %249 = math.exp %248 : vector<8x128xf32>
    %cst_82 = arith.constant 1.000000e+00 : f32
    %250 = vector.broadcast %cst_82 : f32 to vector<8x128xf32>
    %251 = arith.addf %250, %249 : vector<8x128xf32>
    %252 = arith.divf %250, %251 : vector<8x128xf32>
    %253 = vector.extract_strided_slice %246 {offsets = [0, 128], sizes = [8, 128], strides = [1, 1]} : vector<8x512xf32> to vector<8x128xf32>
    %254 = arith.negf %253 : vector<8x128xf32>
    %255 = math.exp %254 : vector<8x128xf32>
    %cst_83 = arith.constant 1.000000e+00 : f32
    %256 = vector.broadcast %cst_83 : f32 to vector<8x128xf32>
    %257 = arith.addf %256, %255 : vector<8x128xf32>
    %258 = arith.divf %256, %257 : vector<8x128xf32>
    %259 = vector.extract_strided_slice %246 {offsets = [0, 256], sizes = [8, 128], strides = [1, 1]} : vector<8x512xf32> to vector<8x128xf32>
    %260 = math.tanh %259 : vector<8x128xf32>
    %261 = vector.extract_strided_slice %246 {offsets = [0, 384], sizes = [8, 128], strides = [1, 1]} : vector<8x512xf32> to vector<8x128xf32>
    %262 = arith.negf %261 : vector<8x128xf32>
    %263 = math.exp %262 : vector<8x128xf32>
    %cst_84 = arith.constant 1.000000e+00 : f32
    %264 = vector.broadcast %cst_84 : f32 to vector<8x128xf32>
    %265 = arith.addf %264, %263 : vector<8x128xf32>
    %266 = arith.divf %264, %265 : vector<8x128xf32>
    %267 = arith.mulf %258, %203 : vector<8x128xf32>
    %268 = arith.mulf %252, %260 : vector<8x128xf32>
    %269 = arith.addf %267, %268 : vector<8x128xf32>
    %270 = math.tanh %269 : vector<8x128xf32>
    %271 = arith.mulf %266, %270 : vector<8x128xf32>
    %c3_85 = arith.constant 3 : index
    %c0_86 = arith.constant 0 : index
    %c0_87 = arith.constant 0 : index
    %272 = vector.load %arg7[%c3_85, %c0_86, %c0_87] : memref<4x8x128xf32, #tpu.memory_space<vmem>>, vector<1x8x128xf32>
    %273 = vector.shape_cast %272 : vector<1x8x128xf32> to vector<8x128xf32>
    %274 = vector.shape_cast %271 : vector<8x128xf32> to vector<1x8x128xf32>
    tpu.vector_store %arg7[%c3_85, %c0_86, %c0_87], %274 {strides = array<i32>} : memref<4x8x128xf32, #tpu.memory_space<vmem>>, vector<1x8x128xf32>,
    %c0_88 = arith.constant 0 : index
    %c0_89 = arith.constant 0 : index
    %c0_90 = arith.constant 0 : index
    %275 = vector.load %arg8[%c0_88, %c0_89, %c0_90] : memref<2x8x128xf32, #tpu.memory_space<vmem>>, vector<1x8x128xf32>
    %276 = vector.shape_cast %275 : vector<1x8x128xf32> to vector<8x128xf32>
    %277 = vector.shape_cast %239 : vector<8x128xf32> to vector<1x8x128xf32>
    tpu.vector_store %arg8[%c0_88, %c0_89, %c0_90], %277 {strides = array<i32>} : memref<2x8x128xf32, #tpu.memory_space<vmem>>, vector<1x8x128xf32>,
    %c0_91 = arith.constant 0 : index
    %c0_92 = arith.constant 0 : index
    %c0_93 = arith.constant 0 : index
    %278 = vector.load %arg9[%c0_91, %c0_92, %c0_93] : memref<2x8x128xf32, #tpu.memory_space<vmem>>, vector<1x8x128xf32>
    %279 = vector.shape_cast %278 : vector<1x8x128xf32> to vector<8x128xf32>
    %280 = vector.shape_cast %237 : vector<8x128xf32> to vector<1x8x128xf32>
    tpu.vector_store %arg9[%c0_91, %c0_92, %c0_93], %280 {strides = array<i32>} : memref<2x8x128xf32, #tpu.memory_space<vmem>>, vector<1x8x128xf32>,
    %c1_94 = arith.constant 1 : index
    %c0_95 = arith.constant 0 : index
    %c0_96 = arith.constant 0 : index
    %281 = vector.load %arg8[%c1_94, %c0_95, %c0_96] : memref<2x8x128xf32, #tpu.memory_space<vmem>>, vector<1x8x128xf32>
    %282 = vector.shape_cast %281 : vector<1x8x128xf32> to vector<8x128xf32>
    %283 = vector.shape_cast %271 : vector<8x128xf32> to vector<1x8x128xf32>
    tpu.vector_store %arg8[%c1_94, %c0_95, %c0_96], %283 {strides = array<i32>} : memref<2x8x128xf32, #tpu.memory_space<vmem>>, vector<1x8x128xf32>,
    %c1_97 = arith.constant 1 : index
    %c0_98 = arith.constant 0 : index
    %c0_99 = arith.constant 0 : index
    %284 = vector.load %arg9[%c1_97, %c0_98, %c0_99] : memref<2x8x128xf32, #tpu.memory_space<vmem>>, vector<1x8x128xf32>
    %285 = vector.shape_cast %284 : vector<1x8x128xf32> to vector<8x128xf32>
    %286 = vector.shape_cast %269 : vector<8x128xf32> to vector<1x8x128xf32>
    tpu.vector_store %arg9[%c1_97, %c0_98, %c0_99], %286 {strides = array<i32>} : memref<2x8x128xf32, #tpu.memory_space<vmem>>, vector<1x8x128xf32>,
    return
  }
  func.func @transform_0(%arg0: i32) -> (i32, i32, i32) {
    %c0_i32 = arith.constant 0 : i32
    %c0_i32_0 = arith.constant 0 : i32
    %c0_i32_1 = arith.constant 0 : i32
    return %arg0, %c0_i32, %c0_i32_0 : i32, i32, i32
  }
  func.func @transform_1(%arg0: i32) -> (i32, i32, i32) {
    %c0_i32 = arith.constant 0 : i32
    %c0_i32_0 = arith.constant 0 : i32
    %c0_i32_1 = arith.constant 0 : i32
    %c0_i32_2 = arith.constant 0 : i32
    return %c0_i32, %c0_i32_0, %c0_i32_1 : i32, i32, i32
  }
  func.func @transform_2(%arg0: i32) -> (i32, i32, i32) {
    %c0_i32 = arith.constant 0 : i32
    %c0_i32_0 = arith.constant 0 : i32
    %c0_i32_1 = arith.constant 0 : i32
    %c0_i32_2 = arith.constant 0 : i32
    return %c0_i32, %c0_i32_0, %c0_i32_1 : i32, i32, i32
  }
  func.func @transform_3(%arg0: i32) -> (i32, i32) {
    %c0_i32 = arith.constant 0 : i32
    %c0_i32_0 = arith.constant 0 : i32
    %c0_i32_1 = arith.constant 0 : i32
    return %c0_i32, %c0_i32_0 : i32, i32
  }
  func.func @transform_4(%arg0: i32) -> (i32, i32) {
    %c0_i32 = arith.constant 0 : i32
    %c0_i32_0 = arith.constant 0 : i32
    %c0_i32_1 = arith.constant 0 : i32
    return %c0_i32, %c0_i32_0 : i32, i32
  }
  func.func @transform_5(%arg0: i32) -> (i32, i32) {
    %c0_i32 = arith.constant 0 : i32
    %c0_i32_0 = arith.constant 0 : i32
    %c0_i32_1 = arith.constant 0 : i32
    return %c0_i32, %c0_i32_0 : i32, i32
  }
  func.func @transform_6(%arg0: i32) -> (i32, i32, i32) {
    %c0_i32 = arith.constant 0 : i32
    %c0_i32_0 = arith.constant 0 : i32
    %c0_i32_1 = arith.constant 0 : i32
    return %arg0, %c0_i32, %c0_i32_0 : i32, i32, i32
  }
  func.func @transform_7(%arg0: i32) -> (i32, i32, i32) {
    %c0_i32 = arith.constant 0 : i32
    %c0_i32_0 = arith.constant 0 : i32
    %c0_i32_1 = arith.constant 0 : i32
    %c0_i32_2 = arith.constant 0 : i32
    return %c0_i32, %c0_i32_0, %c0_i32_1 : i32, i32, i32
  }
  func.func @transform_8(%arg0: i32) -> (i32, i32, i32) {
    %c0_i32 = arith.constant 0 : i32
    %c0_i32_0 = arith.constant 0 : i32
    %c0_i32_1 = arith.constant 0 : i32
    %c0_i32_2 = arith.constant 0 : i32
    return %c0_i32, %c0_i32_0, %c0_i32_1 : i32, i32, i32
  }
}

module attributes {stable_mosaic.version = 11 : i64} {
  func.func @_matmul_bias_kernel(%arg0: i32, %arg1: memref<64x128xbf16, #tpu.memory_space<vmem>>, %arg2: memref<128x16xbf16, #tpu.memory_space<vmem>>, %arg3: memref<1x16xf32, #tpu.memory_space<vmem>>, %arg4: memref<64x16xf32, #tpu.memory_space<vmem>>) attributes {dimension_semantics = [#tpu.dimension_semantics<parallel>], iteration_bounds = array<i64: 1>, scalar_prefetch = 0 : i64, scratch_operands = 0 : i64, tpu.core_type = #tpu.core_type<tc>, window_params = [{transform_indices = @transform_0, window_bounds = array<i64: 64, 128>}, {pipeline_mode = #tpu.pipeline_mode<synchronous>, transform_indices = @transform_1, window_bounds = array<i64: 128, 16>}, {pipeline_mode = #tpu.pipeline_mode<synchronous>, transform_indices = @transform_2, window_bounds = array<i64: 1, 16>}, {transform_indices = @transform_3, window_bounds = array<i64: 64, 16>}]} {
    %c0 = arith.constant 0 : index
    %c0_0 = arith.constant 0 : index
    %0 = vector.load %arg1[%c0, %c0_0] : memref<64x128xbf16, #tpu.memory_space<vmem>>, vector<64x128xbf16>
    %c0_1 = arith.constant 0 : index
    %c0_2 = arith.constant 0 : index
    %1 = vector.load %arg2[%c0_1, %c0_2] : memref<128x16xbf16, #tpu.memory_space<vmem>>, vector<128x16xbf16>
    %cst = arith.constant dense<0.000000e+00> : vector<64x16xf32>
    %2 = tpu.matmul %0, %1, %cst {dimension_numbers = #tpu.dot_dimension_numbers<[1], [0], [0], [1], [0, 0, 1, 1], [], []>} : vector<64x128xbf16>, vector<128x16xbf16>, vector<64x16xf32> -> vector<64x16xf32>
    %c0_3 = arith.constant 0 : index
    %c0_4 = arith.constant 0 : index
    %3 = vector.load %arg3[%c0_3, %c0_4] : memref<1x16xf32, #tpu.memory_space<vmem>>, vector<1x16xf32>
    %4 = vector.broadcast %3 : vector<1x16xf32> to vector<64x16xf32>
    %5 = arith.addf %2, %4 : vector<64x16xf32>
    %c0_5 = arith.constant 0 : index
    %c0_6 = arith.constant 0 : index
    %6 = vector.load %arg4[%c0_5, %c0_6] : memref<64x16xf32, #tpu.memory_space<vmem>>, vector<64x16xf32>
    tpu.vector_store %arg4[%c0_5, %c0_6], %5 {strides = array<i32>} : memref<64x16xf32, #tpu.memory_space<vmem>>, vector<64x16xf32>,
    return
  }
  func.func @transform_0(%arg0: i32) -> (i32, i32) {
    %c0_i32 = arith.constant 0 : i32
    %c0_i32_0 = arith.constant 0 : i32
    return %arg0, %c0_i32 : i32, i32
  }
  func.func @transform_1(%arg0: i32) -> (i32, i32) {
    %c0_i32 = arith.constant 0 : i32
    %c0_i32_0 = arith.constant 0 : i32
    %c0_i32_1 = arith.constant 0 : i32
    return %c0_i32, %c0_i32_0 : i32, i32
  }
  func.func @transform_2(%arg0: i32) -> (i32, i32) {
    %c0_i32 = arith.constant 0 : i32
    %c0_i32_0 = arith.constant 0 : i32
    %c0_i32_1 = arith.constant 0 : i32
    return %c0_i32, %c0_i32_0 : i32, i32
  }
  func.func @transform_3(%arg0: i32) -> (i32, i32) {
    %c0_i32 = arith.constant 0 : i32
    %c0_i32_0 = arith.constant 0 : i32
    return %arg0, %c0_i32 : i32, i32
  }
}

</mosaic_0001>

<bundles_post_ra>
// kernel: text_generation_forward.3
= control target key start
LH: loop header
LB: loop body
LE: loop exit
PB: predicated region body
PF: predicated region fallthrough
CT: control target
= control target key end

     0   :  { %v311_v1 = vmov 0   ;;  %vm89_vm0 = vcmask 130048   ;;  %v29_v9 = vlaneseq  ;;  %s503_s1 = inlined_call_operand.vmem [shape: bf16[16,512], index: 1, kind: input, shape index: {}]   ;;  %s504_s0 = inlined_call_operand.vmem [shape: bf16[64,16], index: 0, kind: input, shape index: {}]   ;;  %s505_s2 = inlined_call_operand.vmem [shape: f32[1,512], index: 2, kind: input, shape index: {}]   ;;  %s506_s3 = inlined_call_operand.vmem [shape: f32[64,512], index: 3, kind: output, shape index: {}]  }
   0x1   :  { %v301_v0 = vld [vmem:[%s503_s1 + $0x4] ss:$16 sps:$4 sm:$0xff]   ;;  %134 = vmatprep.mubr.bf16.mxu0 %v311_v1  ;;  %207 = vmatprep.mubr.bf16.mxu1 %v311_v1  ;;  %v303_v2 = vld [vmem:[%s503_s1 + $0xc] ss:$16 sps:$4 sm:$0xff]   ;;  %v305_v3 = vld [vmem:[%s503_s1] ss:$16 sps:$4 sm:$0xff]  }
   0x2   :  { %102 = vmatprep.subr.bf16.mxu0 %v301_v0  ;;  %v306_v4 = vld [vmem:[%s503_s1 + $0x8] ss:$16 sps:$4 sm:$0xff]   ;;  %175 = vmatprep.subr.bf16.mxu1 %v303_v2  ;;  %v307_v5 = vld [vmem:[%s504_s0] sm:$0xff]   ;;  %v309_v7 = vld [vmem:[%s504_s0 + $0x10] sm:$0xff]   ;;  %v30_v10 = vshrl.u32 %v29_v9, 7 }
   0x3   :  { %103 = vmatpush1.bf16.msra.mxu0 %v305_v3  ;;  %176 = vmatpush1.bf16.msra.mxu1 %v306_v4  ;;  %v308_v6 = vld [vmem:[%s504_s0 + $0x8] sm:$0xff]   ;;  %v310_v8 = vld [vmem:[%s504_s0 + $0x18] sm:$0xff]   ;;  %v27_v13 = vld [vmem:[%s505_s2] sm:$0xf] }
   0x4   :  { %v31_v11 = vsub.s32 0, %v30_v10  ;;  %v39_v12 = vsub.s32 2, %v30_v10  ;;  %v35_v14 = vsub.s32 1, %v30_v10  ;;  %v43_v15 = vsub.s32 3, %v30_v10 }
   0x6   :  { %292 = vmatmul.mubr.msk.bf16.vlgmr.msra.gmra.mrb[0].mxu0 %vm89_vm0, %v307_v5  ;;  %296 = vmatmul.mubr.msk.bf16.vlgmr.msra.gmra.mrb[0].mxu1 %vm89_vm0, %v307_v5  ;;  %v367_v16 = vrot.slane %v27_v13, %v31_v11  ;;  %v369_v17 = vrot.slane %v27_v13, %v39_v12  ;;  %v371_v18 = vrot.slane %v27_v13, %v35_v14 }
   0x7   :  { %144 = vmatprep.mubr.bf16.mxu0 %v311_v1  ;;  %217 = vmatprep.mubr.bf16.mxu1 %v311_v1  ;;  %v373_v19 = vrot.slane %v27_v13, %v43_v15 }
   0xe   :  { %293 = vmatmul.mubr.msk.bf16.gmra.mrb[4].mxu0 %vm89_vm0, %v308_v6  ;;  %297 = vmatmul.mubr.msk.bf16.gmra.mrb[4].mxu1 %vm89_vm0, %v308_v6 }
   0xf   :  { %154 = vmatprep.mubr.bf16.mxu0 %v311_v1  ;;  %227 = vmatprep.mubr.bf16.mxu1 %v311_v1 }
  0x16   :  { %294 = vmatmul.mubr.msk.bf16.gmra.mrb[8].mxu0 %vm89_vm0, %v309_v7  ;;  %298 = vmatmul.mubr.msk.bf16.gmra.mrb[8].mxu1 %vm89_vm0, %v309_v7 }
  0x17   :  { %164 = vmatprep.mubr.bf16.mxu0 %v311_v1  ;;  %237 = vmatprep.mubr.bf16.mxu1 %v311_v1 }
  0x1e   :  { %295 = vmatmul.mubr.msk.bf16.gmra.mrb[12].mxu0 %vm89_vm0, %v310_v8  ;;  %299 = vmatmul.mubr.msk.bf16.gmra.mrb[12].mxu1 %vm89_vm0, %v310_v8 }
  0xd9   :  { %v136_v20 = vpop.f32.mrb[0].mxu0  ;;  %v209_v21 = vpop.f32.mrb[0].mxu1 }
  0xda   :  { %v137_v22 = vadd.f32 %v136_v20, %v367_v16  ;;  %v210_v23 = vadd.f32 %v209_v21, %v369_v17  ;;  %v138_v24 = vpop.f32.mrb[1].mxu0  ;;  %v211_v25 = vpop.f32.mrb[1].mxu1 }
  0xdb   :  { %v139_v26 = vadd.f32 %v138_v24, %v371_v18  ;;  %v212_v27 = vadd.f32 %v211_v25, %v373_v19  ;;  %v140_v28 = vpop.f32.mrb[2].mxu0  ;;  %v213_v29 = vpop.f32.mrb[2].mxu1 }
  0xdc   :  { %248 = vst [vmem:[%s506_s3] sm:$0xff] %v137_v22  ;;  %250 = vst [vmem:[%s506_s3 + $0x10] sm:$0xff] %v210_v23  ;;  %v141_v30 = vadd.f32 %v140_v28, %v367_v16  ;;  %v214_v31 = vadd.f32 %v213_v29, %v369_v17  ;;  %v142_v32 = vpop.f32.mrb[3].mxu0  ;;  %v215_v33 = vpop.f32.mrb[3].mxu1 }
  0xdd   :  { %249 = vst [vmem:[%s506_s3 + $0x8] sm:$0xff] %v139_v26  ;;  %251 = vst [vmem:[%s506_s3 + $0x18] sm:$0xff] %v212_v27  ;;  %v143_v34 = vadd.f32 %v142_v32, %v371_v18  ;;  %v216_v35 = vadd.f32 %v215_v33, %v373_v19 }
  0xde   :  { %252 = vst [vmem:[%s506_s3 + $0x20] sm:$0xff] %v141_v30  ;;  %254 = vst [vmem:[%s506_s3 + $0x30] sm:$0xff] %v214_v31 }
  0xdf   :  { %253 = vst [vmem:[%s506_s3 + $0x28] sm:$0xff] %v143_v34  ;;  %255 = vst [vmem:[%s506_s3 + $0x38] sm:$0xff] %v216_v35 }
  0xe1   :  { %v146_v36 = vpop.f32.mrb[4].mxu0  ;;  %v219_v37 = vpop.f32.mrb[4].mxu1 }
  0xe2   :  { %v147_v38 = vadd.f32 %v146_v36, %v367_v16  ;;  %v220_v39 = vadd.f32 %v219_v37, %v369_v17  ;;  %v148_v40 = vpop.f32.mrb[5].mxu0  ;;  %v221_v41 = vpop.f32.mrb[5].mxu1 }
  0xe3   :  { %v149_v42 = vadd.f32 %v148_v40, %v371_v18  ;;  %v222_v43 = vadd.f32 %v221_v41, %v373_v19  ;;  %v150_v44 = vpop.f32.mrb[6].mxu0  ;;  %v223_v45 = vpop.f32.mrb[6].mxu1 }
  0xe4   :  { %256 = vst [vmem:[%s506_s3 + $0x40] sm:$0xff] %v147_v38  ;;  %258 = vst [vmem:[%s506_s3 + $0x50] sm:$0xff] %v220_v39  ;;  %v151_v46 = vadd.f32 %v150_v44, %v367_v16  ;;  %v224_v47 = vadd.f32 %v223_v45, %v369_v17  ;;  %v152_v48 = vpop.f32.mrb[7].mxu0  ;;  %v225_v49 = vpop.f32.mrb[7].mxu1 }
  0xe5   :  { %257 = vst [vmem:[%s506_s3 + $0x48] sm:$0xff] %v149_v42  ;;  %259 = vst [vmem:[%s506_s3 + $0x58] sm:$0xff] %v222_v43  ;;  %v153_v50 = vadd.f32 %v152_v48, %v371_v18  ;;  %v226_v51 = vadd.f32 %v225_v49, %v373_v19 }
  0xe6   :  { %260 = vst [vmem:[%s506_s3 + $0x60] sm:$0xff] %v151_v46  ;;  %262 = vst [vmem:[%s506_s3 + $0x70] sm:$0xff] %v224_v47 }
  0xe7   :  { %261 = vst [vmem:[%s506_s3 + $0x68] sm:$0xff] %v153_v50  ;;  %263 = vst [vmem:[%s506_s3 + $0x78] sm:$0xff] %v226_v51 }
  0xe9   :  { %v156_v52 = vpop.f32.mrb[8].mxu0  ;;  %v229_v53 = vpop.f32.mrb[8].mxu1 }
  0xea   :  { %v157_v54 = vadd.f32 %v156_v52, %v367_v16  ;;  %v230_v55 = vadd.f32 %v229_v53, %v369_v17  ;;  %v158_v56 = vpop.f32.mrb[9].mxu0  ;;  %v231_v57 = vpop.f32.mrb[9].mxu1 }
  0xeb   :  { %v159_v58 = vadd.f32 %v158_v56, %v371_v18  ;;  %v232_v59 = vadd.f32 %v231_v57, %v373_v19  ;;  %v160_v60 = vpop.f32.mrb[10].mxu0  ;;  %v233_v61 = vpop.f32.mrb[10].mxu1 }
  0xec   :  { %264 = vst [vmem:[%s506_s3 + $0x80] sm:$0xff] %v157_v54  ;;  %266 = vst [vmem:[%s506_s3 + $0x90] sm:$0xff] %v230_v55  ;;  %v161_v62 = vadd.f32 %v160_v60, %v367_v16  ;;  %v234_v63 = vadd.f32 %v233_v61, %v369_v17  ;;  %v162_v0 = vpop.f32.mrb[11].mxu0  ;;  %v235_v1 = vpop.f32.mrb[11].mxu1 }
  0xed   :  { %265 = vst [vmem:[%s506_s3 + $0x88] sm:$0xff] %v159_v58  ;;  %267 = vst [vmem:[%s506_s3 + $0x98] sm:$0xff] %v232_v59  ;;  %v163_v2 = vadd.f32 %v162_v0, %v371_v18  ;;  %v236_v3 = vadd.f32 %v235_v1, %v373_v19 }
  0xee   :  { %268 = vst [vmem:[%s506_s3 + $0xa0] sm:$0xff] %v161_v62  ;;  %270 = vst [vmem:[%s506_s3 + $0xb0] sm:$0xff] %v234_v63 }
  0xef   :  { %269 = vst [vmem:[%s506_s3 + $0xa8] sm:$0xff] %v163_v2  ;;  %271 = vst [vmem:[%s506_s3 + $0xb8] sm:$0xff] %v236_v3 }
  0xf1   :  { %v166_v4 = vpop.f32.mrb[12].mxu0  ;;  %v239_v5 = vpop.f32.mrb[12].mxu1 }
  0xf2   :  { %v167_v6 = vadd.f32 %v166_v4, %v367_v16  ;;  %v240_v7 = vadd.f32 %v239_v5, %v369_v17  ;;  %v168_v8 = vpop.f32.mrb[13].mxu0  ;;  %v241_v9 = vpop.f32.mrb[13].mxu1 }
  0xf3   :  { %v169_v10 = vadd.f32 %v168_v8, %v371_v18  ;;  %v242_v11 = vadd.f32 %v241_v9, %v373_v19  ;;  %v170_v12 = vpop.f32.mrb[14].mxu0  ;;  %v243_v13 = vpop.f32.mrb[14].mxu1 }
  0xf4   :  { %272 = vst [vmem:[%s506_s3 + $0xc0] sm:$0xff] %v167_v6  ;;  %274 = vst [vmem:[%s506_s3 + $0xd0] sm:$0xff] %v240_v7  ;;  %v171_v14 = vadd.f32 %v170_v12, %v367_v16  ;;  %v244_v15 = vadd.f32 %v243_v13, %v369_v17  ;;  %v172_v20 = vpop.f32.mrb[15].mxu0  ;;  %v245_v21 = vpop.f32.mrb[15].mxu1 }
  0xf5   :  { %273 = vst [vmem:[%s506_s3 + $0xc8] sm:$0xff] %v169_v10  ;;  %275 = vst [vmem:[%s506_s3 + $0xd8] sm:$0xff] %v242_v11  ;;  %v173_v22 = vadd.f32 %v172_v20, %v371_v18  ;;  %v246_v23 = vadd.f32 %v245_v21, %v373_v19 }
  0xf6   :  { %276 = vst [vmem:[%s506_s3 + $0xe0] sm:$0xff] %v171_v14  ;;  %278 = vst [vmem:[%s506_s3 + $0xf0] sm:$0xff] %v244_v15 }
  0xf7   :  { %277 = vst [vmem:[%s506_s3 + $0xe8] sm:$0xff] %v173_v22  ;;  %279 = vst [vmem:[%s506_s3 + $0xf8] sm:$0xff] %v246_v23 }

// kernel: text_generation_forward.5
= control target key start
LH: loop header
LB: loop body
LE: loop exit
PB: predicated region body
PF: predicated region fallthrough
CT: control target
= control target key end

     0   :  { %vm183_vm0 = vcmask 130048   ;;  %s364_s1 = inlined_call_operand.vmem [shape: bf16[128,16], index: 1, kind: input, shape index: {}]   ;;  %s365_s0 = inlined_call_operand.vmem [shape: bf16[64,128], index: 0, kind: input, shape index: {}]   ;;  %s366_s2 = inlined_call_operand.vmem [shape: f32[1,16], index: 2, kind: input, shape index: {}]   ;;  %s367_s3 = inlined_call_operand.vmem [shape: f32[64,16], index: 3, kind: output, shape index: {}]  }
   0x1   :  { %v261_v0 = vld [vmem:[%s364_s1] sm:$0xff]   ;;  %v262_v1 = vld [vmem:[%s364_s1 + $0x8] sm:$0xff]   ;;  %v263_v2 = vld [vmem:[%s364_s1 + $0x10] sm:$0xff]  }
   0x2   :  { %221 = vmatprep.subr.bf16.mxu0 %v261_v0  ;;  %245 = vmatprep.subr.bf16.mxu1 %v261_v0  ;;  %v264_v3 = vld [vmem:[%s364_s1 + $0x18] sm:$0xff]   ;;  %v269_v4 = vld [vmem:[%s365_s0] sm:$0xff]   ;;  %v270_v5 = vld [vmem:[%s365_s0 + $0x10] sm:$0xff]  }
   0x3   :  { %222 = vmatpush3.bf16.msra.mxu0 %v261_v0  ;;  %253 = vmatpush3.bf16.msra.mxu1 %v261_v0  ;;  %v265_v6 = vld [vmem:[%s364_s1 + $0x20] sm:$0xff]   ;;  %v266_v7 = vld [vmem:[%s364_s1 + $0x28] sm:$0xff]   ;;  %v267_v8 = vld [vmem:[%s364_s1 + $0x30] sm:$0xff]  }
   0x4   :  { %223 = vmatprep.subr.bf16.mxu0 %v262_v1  ;;  %246 = vmatprep.subr.bf16.mxu1 %v262_v1  ;;  %v268_v9 = vld [vmem:[%s364_s1 + $0x38] sm:$0xff]   ;;  %v271_v10 = vld [vmem:[%s365_s0 + $0x8] sm:$0xff]   ;;  %v196_v12 = vld [vmem:[%s366_s2] ss:$0 sm:$0xff] }
   0x5   :  { %237 = vmatprep.mubr.bf16.mxu0 %v269_v4  ;;  %241 = vmatprep.mubr.bf16.mxu1 %v270_v5  ;;  %v272_v11 = vld [vmem:[%s365_s0 + $0x18] sm:$0xff]  }
   0x7   :  { %224 = vmatpush3.bf16.msra.mxu0 %v262_v1  ;;  %254 = vmatpush3.bf16.msra.mxu1 %v262_v1 }
   0x8   :  { %225 = vmatprep.subr.bf16.mxu0 %v263_v2  ;;  %247 = vmatprep.subr.bf16.mxu1 %v263_v2 }
   0xb   :  { %226 = vmatpush3.bf16.msra.mxu0 %v263_v2  ;;  %255 = vmatpush3.bf16.msra.mxu1 %v263_v2 }
   0xc   :  { %227 = vmatprep.subr.bf16.mxu0 %v264_v3  ;;  %248 = vmatprep.subr.bf16.mxu1 %v264_v3 }
   0xf   :  { %228 = vmatpush3.bf16.msra.mxu0 %v264_v3  ;;  %256 = vmatpush3.bf16.msra.mxu1 %v264_v3 }
  0x10   :  { %229 = vmatprep.subr.bf16.mxu0 %v265_v6  ;;  %249 = vmatprep.subr.bf16.mxu1 %v265_v6 }
  0x13   :  { %230 = vmatpush3.bf16.msra.mxu0 %v265_v6  ;;  %257 = vmatpush3.bf16.msra.mxu1 %v265_v6 }
  0x14   :  { %231 = vmatprep.subr.bf16.mxu0 %v266_v7  ;;  %250 = vmatprep.subr.bf16.mxu1 %v266_v7 }
  0x17   :  { %232 = vmatpush3.bf16.msra.mxu0 %v266_v7  ;;  %258 = vmatpush3.bf16.msra.mxu1 %v266_v7 }
  0x18   :  { %233 = vmatprep.subr.bf16.mxu0 %v267_v8  ;;  %251 = vmatprep.subr.bf16.mxu1 %v267_v8 }
  0x1b   :  { %234 = vmatpush3.bf16.msra.mxu0 %v267_v8  ;;  %259 = vmatpush3.bf16.msra.mxu1 %v267_v8 }
  0x1c   :  { %235 = vmatprep.subr.bf16.mxu0 %v268_v9  ;;  %252 = vmatprep.subr.bf16.mxu1 %v268_v9 }
  0x1f   :  { %236 = vmatpush3.bf16.msra.mxu0 %v268_v9  ;;  %260 = vmatpush3.bf16.msra.mxu1 %v268_v9 }
  0x22   :  { %238 = vmatmul.mubr.bf16.vlgmr.msra.gmra.mrb[0].mxu0 %v271_v10  ;;  %242 = vmatmul.mubr.bf16.vlgmr.msra.gmra.mrb[0].mxu1 %v272_v11 }
  0xf5   :  { %v239_v13 = vpop.f32.mrb[0].mxu0  ;;  %v243_v14 = vpop.f32.mrb[0].mxu1 }
  0xf6   :  { %v161_v15 = vadd.f32 %v239_v13, %v196_v12  ;;  %v177_v16 = vadd.f32 %v243_v14, %v196_v12  ;;  %v152_v17 = vpop.f32.mrb[1].mxu0  ;;  %v168_v18 = vpop.f32.mrb[1].mxu1 }
  0xf7   :  { %v153_v19 = vadd.f32 %v196_v12, %v152_v17  ;;  %v169_v20 = vadd.f32 %v196_v12, %v168_v18  ;;  %v240_v21 = vpop.f32.mrb[2].mxu0  ;;  %v244_v22 = vpop.f32.mrb[2].mxu1 }
  0xf8   :  { %186 = vst.msk [vmem:[%s367_s3 + $0x10] sm:$0xff] %vm183_vm0, %v161_v15  ;;  %190 = vst.msk [vmem:[%s367_s3 + $0x30] sm:$0xff] %vm183_vm0, %v177_v16  ;;  %v164_v23 = vadd.f32 %v240_v21, %v196_v12  ;;  %v180_v24 = vadd.f32 %v244_v22, %v196_v12  ;;  %v155_v25 = vpop.f32.mrb[3].mxu0  ;;  %v171_v26 = vpop.f32.mrb[3].mxu1 }
  0xf9   :  { %184 = vst.msk [vmem:[%s367_s3] sm:$0xff] %vm183_vm0, %v153_v19  ;;  %188 = vst.msk [vmem:[%s367_s3 + $0x20] sm:$0xff] %vm183_vm0, %v169_v20  ;;  %v156_v27 = vadd.f32 %v196_v12, %v155_v25  ;;  %v172_v28 = vadd.f32 %v196_v12, %v171_v26 }
  0xfa   :  { %187 = vst.msk [vmem:[%s367_s3 + $0x18] sm:$0xff] %vm183_vm0, %v164_v23  ;;  %191 = vst.msk [vmem:[%s367_s3 + $0x38] sm:$0xff] %vm183_vm0, %v180_v24 }
  0xfb   :  { %185 = vst.msk [vmem:[%s367_s3 + $0x8] sm:$0xff] %vm183_vm0, %v156_v27  ;;  %189 = vst.msk [vmem:[%s367_s3 + $0x28] sm:$0xff] %vm183_vm0, %v172_v28 }

// kernel: text_generation_forward.4
= control target key start
LH: loop header
LB: loop body
LE: loop exit
PB: predicated region body
PF: predicated region fallthrough
CT: control target
= control target key end

     0   :  { %s4609_s27 = smov 0   ;;  %s6116_s0 = inlined_call_operand.vmem [shape: f32[8,8,512], index: 0, kind: input, shape index: {}]   ;;  %s6117_s1 = inlined_call_operand.vmem [shape: f32[2,8,128], index: 1, kind: input, shape index: {}]   ;;  %s6118_s2 = inlined_call_operand.vmem [shape: f32[2,8,128], index: 2, kind: input, shape index: {}]   ;;  %s6119_s3 = inlined_call_operand.vmem [shape: bf16[128,512], index: 3, kind: input, shape index: {}]   ;;  %s6120_s4 = inlined_call_operand.vmem [shape: bf16[256,512], index: 4, kind: input, shape index: {}]   ;;  %s6121_s5 = inlined_call_operand.vmem [shape: f32[1,512], index: 5, kind: input, shape index: {}]   ;;  %s6122_s6 = inlined_call_operand.vmem [shape: f32[8,8,128], index: 6, kind: output, shape index: {0}]   ;;  %s6123_s7 = inlined_call_operand.vmem [shape: f32[2,8,128], index: 7, kind: output, shape index: {1}]   ;;  %s6124_s8 = inlined_call_operand.vmem [shape: f32[2,8,128], index: 8, kind: output, shape index: {2}]  }
   0x1 LB: > { %s3689_s28 = sadd.s32 4294967295, %s4561_s27   ;;  %p3693_p0 = scmp.ge.s32.totalorder %s4561_s27, 1  ;;  %s4561_s27 = sphi %s4609_s27, %s19_s27  }
   0x2   : > { %p259_p1 = scmp.lt.s32.totalorder %s4561_s27, 3 }
   0x4   : > { %p260_p2 = pnand %p3693_p0, %p259_p1 }
   0x6   : > { %263 = sbr.rel (%p260_p2) target bundleno = 1451 (0x5ab), region = 44 }
   0xd   : > { %s3694_s29 = sshll.u32 %s3689_s28, 2  ;;  %p3699_p4 = scmp.ne.s32.totalorder %s3689_s28, 0 }
   0xe   : > { %p295_p3 = scmp.lt.s32.totalorder %s3694_s29, 7  ;;  %v312_v0 = vld [vmem:[%s6117_s1] sm:$0xff] (!%p3699_p4)  ;;  %v313_v1 = vld [vmem:[%s6117_s1 + $0x8] sm:$0xff] (!%p3699_p4) }
   0xf   : > { %311 = sbr.rel (%p3699_p4) target bundleno = 22 (0x16), region = 48  ;;  %v316_v2 = vld [vmem:[%s6118_s2] sm:$0xff] (!%p3699_p4)  ;;  %314 = vst [vmem:[%s6123_s7] sm:$0xff] (!%p3699_p4), %v312_v0  ;;  %315 = vst [vmem:[%s6123_s7 + $0x8] sm:$0xff] (!%p3699_p4), %v313_v1  ;;  %v317_v3 = vld [vmem:[%s6118_s2 + $0x8] sm:$0xff] (!%p3699_p4) }
  0x10   : > { %s6452_s29 = smov (!%p295_p3, %s3694_s29), 7  ;;  %318 = vst [vmem:[%s6124_s8] sm:$0xff] (!%p3699_p4), %v316_v2  ;;  %319 = vst [vmem:[%s6124_s8 + $0x8] sm:$0xff] (!%p3699_p4), %v317_v3 }
  0x11   : > { %s4129_s30 = sshll.u32 %s6452_s29, 5  ;;  %s3698_s9 = sshll.u32 %s6452_s29, 3 }
  0x12   : > { %s4620_s12 = scalar_lea.vmem %s6116_s0, %s4129_s30  ;;  %s4625_s15 = scalar_lea.vmem %s6122_s6, %s3698_s9 }
  0x16 PF: > { %v4654_v4 = vld [vmem:[%s6119_s3 + $0x4] ss:$16 sps:$4 sm:$0xff]   ;;  %v4659_v5 = vld [vmem:[%s6119_s3] ss:$16 sps:$4 sm:$0xff]   ;;  %v6125_v6 = vmov 0  }
  0x17   : > { %555 = vmatprep.mubr.bf16.mxu0 %v6125_v6  ;;  %596 = vmatprep.mubr.bf16.mxu1 %v6125_v6  ;;  %v4667_v7 = vld [vmem:[%s6119_s3 + $0x24] ss:$16 sps:$4 sm:$0xff]   ;;  %v4673_v8 = vld [vmem:[%s6119_s3 + $0x20] ss:$16 sps:$4 sm:$0xff]   ;;  %v4684_v10 = vld [vmem:[%s6119_s3 + $0xc] ss:$16 sps:$4 sm:$0xff]  }
  0x18   : > { %523 = vmatprep.subr.bf16.mxu0 %v4654_v4  ;;  %v4679_v9 = vld [vmem:[%s6119_s3 + $0x44] ss:$16 sps:$4 sm:$0xff]   ;;  %v4689_v11 = vld [vmem:[%s6119_s3 + $0x8] ss:$16 sps:$4 sm:$0xff]   ;;  %v4695_v12 = vld [vmem:[%s6119_s3 + $0x40] ss:$16 sps:$4 sm:$0xff]   ;;  %564 = vmatprep.subr.bf16.mxu1 %v4684_v10 }
  0x19   : > { %524 = vmatpush1.bf16.msra.mxu0 %v4659_v5  ;;  %v4702_v13 = vld [vmem:[%s6119_s3 + $0x64] ss:$16 sps:$4 sm:$0xff]   ;;  %565 = vmatpush1.bf16.msra.mxu1 %v4689_v11  ;;  %v4708_v14 = vld [vmem:[%s6119_s3 + $0x2c] ss:$16 sps:$4 sm:$0xff]   ;;  %v4713_v15 = vld [vmem:[%s6119_s3 + $0x28] ss:$16 sps:$4 sm:$0xff]  }
  0x1a   : > { %525 = vmatprep.subr.bf16.mxu0 %v4667_v7  ;;  %566 = vmatprep.subr.bf16.mxu1 %v4708_v14  ;;  %v4720_v16 = vld [vmem:[%s6119_s3 + $0x60] ss:$16 sps:$4 sm:$0xff]   ;;  %v4725_v17 = vld [vmem:[%s6119_s3 + $0x84] ss:$16 sps:$4 sm:$0xff]   ;;  %v4730_v18 = vld [vmem:[%s6119_s3 + $0x4c] ss:$16 sps:$4 sm:$0xff]  }
  0x1b   : > { %v4737_v19 = vld [vmem:[%s6119_s3 + $0x48] ss:$16 sps:$4 sm:$0xff]   ;;  %v4743_v20 = vld [vmem:[%s6119_s3 + $0x6c] ss:$16 sps:$4 sm:$0xff]   ;;  %v4749_v21 = vld [vmem:[%s6119_s3 + $0x80] ss:$16 sps:$4 sm:$0xff]  }
  0x1c   : > { %v4755_v22 = vld [vmem:[%s6119_s3 + $0xa4] ss:$16 sps:$4 sm:$0xff]   ;;  %v4761_v23 = vld [vmem:[%s6119_s3 + $0x68] ss:$16 sps:$4 sm:$0xff]   ;;  %v4767_v24 = vld [vmem:[%s6119_s3 + $0x8c] ss:$16 sps:$4 sm:$0xff]  }
  0x1d   : > { %526 = vmatpush1.bf16.msra.mxu0 %v4673_v8  ;;  %567 = vmatpush1.bf16.msra.mxu1 %v4713_v15  ;;  %v4772_v25 = vld [vmem:[%s6119_s3 + $0xa0] ss:$16 sps:$4 sm:$0xff]   ;;  %v4778_v26 = vld [vmem:[%s6119_s3 + $0xc4] ss:$16 sps:$4 sm:$0xff]   ;;  %v4785_v27 = vld [vmem:[%s6119_s3 + $0x88] ss:$16 sps:$4 sm:$0xff]  }
  0x1e   : > { %527 = vmatprep.subr.bf16.mxu0 %v4679_v9  ;;  %568 = vmatprep.subr.bf16.mxu1 %v4730_v18  ;;  %v4791_v28 = vld [vmem:[%s6119_s3 + $0xac] ss:$16 sps:$4 sm:$0xff]   ;;  %v4796_v29 = vld [vmem:[%s6119_s3 + $0xc0] ss:$16 sps:$4 sm:$0xff]   ;;  %v4802_v30 = vld [vmem:[%s6119_s3 + $0xe4] ss:$16 sps:$4 sm:$0xff]  }
  0x1f   : > { %v4809_v31 = vld [vmem:[%s6119_s3 + $0xa8] ss:$16 sps:$4 sm:$0xff]   ;;  %v4815_v32 = vld [vmem:[%s6119_s3 + $0xcc] ss:$16 sps:$4 sm:$0xff]   ;;  %v4820_v33 = vld [vmem:[%s6119_s3 + $0xe0] ss:$16 sps:$4 sm:$0xff]  }
  0x20   : > { %v320_v34 = vld [vmem:[%s6123_s7] sm:$0xff]  ;;  %v4829_v35 = vld [vmem:[%s6119_s3 + $0xc8] ss:$16 sps:$4 sm:$0xff]   ;;  %v4842_v37 = vld [vmem:[%s6119_s3 + $0xec] ss:$16 sps:$4 sm:$0xff]  }
  0x21   : > { %528 = vmatpush1.bf16.msra.mxu0 %v4695_v12  ;;  %569 = vmatpush1.bf16.msra.mxu1 %v4737_v19  ;;  %v4836_v36 = vld [vmem:[%s6120_s4 + $0x4] ss:$16 sps:$4 sm:$0xff]   ;;  %v330_v38 = vpack.c.bf16 %v320_v34, %v320_v34  ;;  %v4847_v39 = vld [vmem:[%s6119_s3 + $0xe8] ss:$16 sps:$4 sm:$0xff]   ;;  %v4853_v40 = vld [vmem:[%s6120_s4] ss:$16 sps:$4 sm:$0xff]  }
  0x22   : > { %529 = vmatprep.subr.bf16.mxu0 %v4702_v13  ;;  %570 = vmatprep.subr.bf16.mxu1 %v4743_v20  ;;  %v4860_v41 = vld [vmem:[%s6120_s4 + $0xc] ss:$16 sps:$4 sm:$0xff]   ;;  %v4865_v42 = vld [vmem:[%s6120_s4 + $0x24] ss:$16 sps:$4 sm:$0xff]   ;;  %v4871_v43 = vld [vmem:[%s6120_s4 + $0x20] ss:$16 sps:$4 sm:$0xff]  }
  0x23   : > { %v4876_v44 = vld [vmem:[%s6120_s4 + $0x8] ss:$16 sps:$4 sm:$0xff]   ;;  %v4881_v45 = vld [vmem:[%s6120_s4 + $0x44] ss:$16 sps:$4 sm:$0xff]   ;;  %v4887_v46 = vld [vmem:[%s6120_s4 + $0x2c] ss:$16 sps:$4 sm:$0xff]  }
  0x24   : > { %v4895_v47 = vld [vmem:[%s6120_s4 + $0x40] ss:$16 sps:$4 sm:$0xff]   ;;  %v4900_v48 = vld [vmem:[%s6120_s4 + $0x28] ss:$16 sps:$4 sm:$0xff]   ;;  %v4905_v49 = vld [vmem:[%s6120_s4 + $0x64] ss:$16 sps:$4 sm:$0xff]  }
  0x25   : > { %530 = vmatpush1.bf16.msra.mxu0 %v4720_v16  ;;  %571 = vmatpush1.bf16.msra.mxu1 %v4761_v23  ;;  %v4911_v50 = vld [vmem:[%s6120_s4 + $0x4c] ss:$16 sps:$4 sm:$0xff]   ;;  %v4919_v51 = vld [vmem:[%s6120_s4 + $0x60] ss:$16 sps:$4 sm:$0xff]   ;;  %v4924_v52 = vld [vmem:[%s6120_s4 + $0x48] ss:$16 sps:$4 sm:$0xff]  }
  0x26   : > { %531 = vmatprep.subr.bf16.mxu0 %v4725_v17  ;;  %572 = vmatprep.subr.bf16.mxu1 %v4767_v24  ;;  %6236 = vst [vmem:[#allocation2_spill] sm:$0xff] %v4919_v51  ;;  %v4930_v53 = vld [vmem:[%s6120_s4 + $0x6c] ss:$16 sps:$4 sm:$0xff]   ;;  %v4938_v54 = vld [vmem:[%s6120_s4 + $0x68] ss:$16 sps:$4 sm:$0xff]  }
  0x27   : > { %6237 = vst [vmem:[#allocation3_spill] sm:$0xff] %v4938_v54  ;;  %v4947_v55 = vld [vmem:[%s6120_s4 + $0x84] ss:$16 sps:$4 sm:$0xff]   ;;  %v4952_v56 = vld [vmem:[%s6120_s4 + $0x8c] ss:$16 sps:$4 sm:$0xff]  }
  0x28   : > { %6238 = vst [vmem:[#allocation4_spill] sm:$0xff] %v4947_v55  ;;  %6239 = vst [vmem:[#allocation5_spill] sm:$0xff] %v4952_v56  ;;  %v4957_v57 = vld [vmem:[%s6120_s4 + $0x80] ss:$16 sps:$4 sm:$0xff]   ;;  %v4962_v58 = vld [vmem:[%s6120_s4 + $0x88] ss:$16 sps:$4 sm:$0xff]  }
  0x29   : > { %532 = vmatpush1.bf16.msra.mxu0 %v4749_v21  ;;  %573 = vmatpush1.bf16.msra.mxu1 %v4785_v27  ;;  %6240 = vst [vmem:[#allocation6_spill] sm:$0xff] %v4957_v57  ;;  %6241 = vst [vmem:[#allocation7_spill] sm:$0xff] %v4962_v58  ;;  %v4971_v59 = vld [vmem:[%s6120_s4 + $0xa4] ss:$16 sps:$4 sm:$0xff]   ;;  %v4976_v60 = vld [vmem:[%s6120_s4 + $0xac] ss:$16 sps:$4 sm:$0xff]  }
  0x2a   : > { %533 = vmatprep.subr.bf16.mxu0 %v4755_v22  ;;  %574 = vmatprep.subr.bf16.mxu1 %v4791_v28  ;;  %6242 = vst [vmem:[#allocation8_spill] sm:$0xff] %v4971_v59  ;;  %6243 = vst [vmem:[#allocation9_spill] sm:$0xff] %v4976_v60  ;;  %v4981_v61 = vld [vmem:[%s6120_s4 + $0xa0] ss:$16 sps:$4 sm:$0xff]   ;;  %v4986_v62 = vld [vmem:[%s6120_s4 + $0xa8] ss:$16 sps:$4 sm:$0xff]  }
  0x2b   : > { %6244 = vst [vmem:[#allocation10_spill] sm:$0xff] %v4981_v61  ;;  %6245 = vst [vmem:[#allocation11_spill] sm:$0xff] %v4986_v62  ;;  %v4995_v63 = vld [vmem:[%s6120_s4 + $0xc4] ss:$16 sps:$4 sm:$0xff]   ;;  %v5000_v0 = vld [vmem:[%s6120_s4 + $0xcc] ss:$16 sps:$4 sm:$0xff]  }
  0x2c   : > { %6246 = vst [vmem:[#allocation12_spill] sm:$0xff] %v4995_v63  ;;  %6247 = vst [vmem:[#allocation13_spill] sm:$0xff] %v5000_v0  ;;  %v5005_v1 = vld [vmem:[%s6120_s4 + $0xc0] ss:$16 sps:$4 sm:$0xff]   ;;  %v5010_v2 = vld [vmem:[%s6120_s4 + $0xc8] ss:$16 sps:$4 sm:$0xff]  }
  0x2d   : > { %534 = vmatpush1.bf16.msra.mxu0 %v4772_v25  ;;  %575 = vmatpush1.bf16.msra.mxu1 %v4809_v31  ;;  %6248 = vst [vmem:[#allocation14_spill] sm:$0xff] %v5005_v1  ;;  %6249 = vst [vmem:[#allocation15_spill] sm:$0xff] %v5010_v2  ;;  %v5019_v3 = vld [vmem:[%s6120_s4 + $0xe4] ss:$16 sps:$4 sm:$0xff]   ;;  %v5024_v34 = vld [vmem:[%s6120_s4 + $0xec] ss:$16 sps:$4 sm:$0xff]  }
  0x2e   : > { %535 = vmatprep.subr.bf16.mxu0 %v4778_v26  ;;  %576 = vmatprep.subr.bf16.mxu1 %v4815_v32  ;;  %6250 = vst [vmem:[#allocation16_spill] sm:$0xff] %v5019_v3  ;;  %6251 = vst [vmem:[#allocation17_spill] sm:$0xff] %v5024_v34  ;;  %v5034_v6 = vld [vmem:[%s6120_s4 + $0xe8] ss:$16 sps:$4 sm:$0xff]  }
  0x2f   : > { %6253 = vst [vmem:[#allocation19_spill] sm:$0xff] %v5034_v6 }
  0x31   : > { %536 = vmatpush1.bf16.msra.mxu0 %v4796_v29  ;;  %577 = vmatpush1.bf16.msra.mxu1 %v4829_v35 }
  0x32   : > { %537 = vmatprep.subr.bf16.mxu0 %v4802_v30  ;;  %578 = vmatprep.subr.bf16.mxu1 %v4842_v37 }
  0x35   : > { %538 = vmatpush1.bf16.msra.mxu0 %v4820_v33  ;;  %579 = vmatpush1.bf16.msra.mxu1 %v4847_v39 }
  0x36   : > { %1041 = vmatprep.subr.bf16.mxu0 %v4836_v36  ;;  %1082 = vmatprep.subr.bf16.mxu1 %v4860_v41 }
  0x38   : > { %556 = vmatmul.mubr.bf16.vlgmr.msra.gmra.mrb[0].mxu0 %v330_v38  ;;  %597 = vmatmul.mubr.bf16.vlgmr.msra.gmra.mrb[0].mxu1 %v330_v38  ;;  %v5029_v38 = vld [vmem:[%s6120_s4 + $0xe0] ss:$16 sps:$4 sm:$0xff]  }
  0x39   : > { %1042 = vmatpush1.bf16.msra.mxu0 %v4853_v40  ;;  %1083 = vmatpush1.bf16.msra.mxu1 %v4876_v44  ;;  %6252 = vst [vmem:[#allocation18_spill] sm:$0xff] %v5029_v38 }
  0x3a   : > { %1043 = vmatprep.subr.bf16.mxu0 %v4865_v42  ;;  %1084 = vmatprep.subr.bf16.mxu1 %v4887_v46 }
  0x3d   : > { %1044 = vmatpush1.bf16.msra.mxu0 %v4871_v43  ;;  %1085 = vmatpush1.bf16.msra.mxu1 %v4900_v48 }
  0x3e   : > { %1045 = vmatprep.subr.bf16.mxu0 %v4881_v45  ;;  %1086 = vmatprep.subr.bf16.mxu1 %v4911_v50 }
  0x41   : > { %1046 = vmatpush1.bf16.msra.mxu0 %v4895_v47  ;;  %1087 = vmatpush1.bf16.msra.mxu1 %v4924_v52 }
  0x42   : > { %1047 = vmatprep.subr.bf16.mxu0 %v4905_v49  ;;  %1088 = vmatprep.subr.bf16.mxu1 %v4930_v53 }
  0x45   : > { %1048 = vmatpush1.bf16.msra.mxu0 %v4919_v51  ;;  %1089 = vmatpush1.bf16.msra.mxu1 %v4938_v54 }
  0x46   : > { %1049 = vmatprep.subr.bf16.mxu0 %v4947_v55  ;;  %1090 = vmatprep.subr.bf16.mxu1 %v4952_v56 }
  0x49   : > { %1050 = vmatpush1.bf16.msra.mxu0 %v4957_v57  ;;  %1091 = vmatpush1.bf16.msra.mxu1 %v4962_v58 }
  0x4a   : > { %1051 = vmatprep.subr.bf16.mxu0 %v4971_v59  ;;  %1092 = vmatprep.subr.bf16.mxu1 %v4976_v60 }
  0x4d   : > { %1052 = vmatpush1.bf16.msra.mxu0 %v4981_v61  ;;  %1093 = vmatpush1.bf16.msra.mxu1 %v4986_v62 }
  0x4e   : > { %1053 = vmatprep.subr.bf16.mxu0 %v4995_v63  ;;  %1094 = vmatprep.subr.bf16.mxu1 %v5000_v0  ;;  %v5196_v0 = vld [vmem:[%s6120_s4 + $0x1c0] ss:$16 sps:$4 sm:$0xff]  }
  0x4f   : > { %6280 = vst [vmem:[#allocation46_spill] sm:$0xff] %v5196_v0  ;;  %v5223_v63 = vld [vmem:[%s6120_s4 + $0x1e0] ss:$16 sps:$4 sm:$0xff]  }
  0x50   : > { %6284 = vst [vmem:[#allocation50_spill] sm:$0xff] %v5223_v63 }
  0x51   : > { %1054 = vmatpush1.bf16.msra.mxu0 %v5005_v1  ;;  %1095 = vmatpush1.bf16.msra.mxu1 %v5010_v2  ;;  %v5043_v2 = vld [vmem:[%s6120_s4 + $0x104] ss:$16 sps:$4 sm:$0xff]   ;;  %v5048_v1 = vld [vmem:[%s6120_s4 + $0x10c] ss:$16 sps:$4 sm:$0xff]  }
  0x52   : > { %1055 = vmatprep.subr.bf16.mxu0 %v5019_v3  ;;  %1096 = vmatprep.subr.bf16.mxu1 %v5024_v34  ;;  %6254 = vst [vmem:[#allocation20_spill] sm:$0xff] %v5043_v2  ;;  %6255 = vst [vmem:[#allocation21_spill] sm:$0xff] %v5048_v1  ;;  %v5053_v3 = vld [vmem:[%s6120_s4 + $0x100] ss:$16 sps:$4 sm:$0xff]  }
  0x53   : > { %6256 = vst [vmem:[#allocation22_spill] sm:$0xff] %v5053_v3  ;;  %v5077_v34 = vld [vmem:[%s6120_s4 + $0x120] ss:$16 sps:$4 sm:$0xff]  }
  0x54   : > { %6260 = vst [vmem:[#allocation26_spill] sm:$0xff] %v5077_v34 }
  0x55   : > { %1056 = vmatpush1.bf16.msra.mxu0 %v5029_v38  ;;  %1097 = vmatpush1.bf16.msra.mxu1 %v5034_v6  ;;  %v5059_v6 = vld [vmem:[%s6120_s4 + $0x108] ss:$16 sps:$4 sm:$0xff]   ;;  %v5067_v38 = vld [vmem:[%s6120_s4 + $0x124] ss:$16 sps:$4 sm:$0xff]  }
  0x56   : > { %1057 = vmatprep.subr.bf16.mxu0 %v5043_v2  ;;  %6257 = vst [vmem:[#allocation23_spill] sm:$0xff] %v5059_v6  ;;  %1098 = vmatprep.subr.bf16.mxu1 %v5048_v1  ;;  %6258 = vst [vmem:[#allocation24_spill] sm:$0xff] %v5067_v38  ;;  %v5072_v2 = vld [vmem:[%s6120_s4 + $0x12c] ss:$16 sps:$4 sm:$0xff]  }
  0x57   : > { %6259 = vst [vmem:[#allocation25_spill] sm:$0xff] %v5072_v2  ;;  %v5096_v1 = vld [vmem:[%s6120_s4 + $0x14c] ss:$16 sps:$4 sm:$0xff]  }
  0x58   : > { %6263 = vst [vmem:[#allocation29_spill] sm:$0xff] %v5096_v1 }
  0x59   : > { %1058 = vmatpush1.bf16.msra.mxu0 %v5053_v3  ;;  %1099 = vmatpush1.bf16.msra.mxu1 %v5059_v6  ;;  %v5082_v3 = vld [vmem:[%s6120_s4 + $0x128] ss:$16 sps:$4 sm:$0xff]   ;;  %v5091_v6 = vld [vmem:[%s6120_s4 + $0x144] ss:$16 sps:$4 sm:$0xff]  }
  0x5a   : > { %6261 = vst [vmem:[#allocation27_spill] sm:$0xff] %v5082_v3  ;;  %1059 = vmatprep.subr.bf16.mxu0 %v5067_v38  ;;  %1100 = vmatprep.subr.bf16.mxu1 %v5072_v2  ;;  %6262 = vst [vmem:[#allocation28_spill] sm:$0xff] %v5091_v6  ;;  %v5101_v38 = vld [vmem:[%s6120_s4 + $0x140] ss:$16 sps:$4 sm:$0xff]   ;;  %v5120_v2 = vld [vmem:[%s6120_s4 + $0x16c] ss:$16 sps:$4 sm:$0xff]  }
  0x5b   : > { %6264 = vst [vmem:[#allocation30_spill] sm:$0xff] %v5101_v38  ;;  %6267 = vst [vmem:[#allocation33_spill] sm:$0xff] %v5120_v2 }
  0x5d   : > { %1060 = vmatpush1.bf16.msra.mxu0 %v5077_v34  ;;  %1101 = vmatpush1.bf16.msra.mxu1 %v5082_v3  ;;  %v5106_v34 = vld [vmem:[%s6120_s4 + $0x148] ss:$16 sps:$4 sm:$0xff]   ;;  %v5115_v3 = vld [vmem:[%s6120_s4 + $0x164] ss:$16 sps:$4 sm:$0xff]  }
  0x5e   : > { %6265 = vst [vmem:[#allocation31_spill] sm:$0xff] %v5106_v34  ;;  %1061 = vmatprep.subr.bf16.mxu0 %v5091_v6  ;;  %1102 = vmatprep.subr.bf16.mxu1 %v5096_v1  ;;  %6266 = vst [vmem:[#allocation32_spill] sm:$0xff] %v5115_v3  ;;  %v5125_v6 = vld [vmem:[%s6120_s4 + $0x160] ss:$16 sps:$4 sm:$0xff]   ;;  %v5144_v1 = vld [vmem:[%s6120_s4 + $0x18c] ss:$16 sps:$4 sm:$0xff]  }
  0x5f   : > { %6268 = vst [vmem:[#allocation34_spill] sm:$0xff] %v5125_v6  ;;  %6271 = vst [vmem:[#allocation37_spill] sm:$0xff] %v5144_v1 }
  0x61   : > { %1062 = vmatpush1.bf16.msra.mxu0 %v5101_v38  ;;  %1103 = vmatpush1.bf16.msra.mxu1 %v5106_v34  ;;  %v5130_v38 = vld [vmem:[%s6120_s4 + $0x168] ss:$16 sps:$4 sm:$0xff]   ;;  %v5139_v34 = vld [vmem:[%s6120_s4 + $0x184] ss:$16 sps:$4 sm:$0xff]  }
  0x62   : > { %6269 = vst [vmem:[#allocation35_spill] sm:$0xff] %v5130_v38  ;;  %1063 = vmatprep.subr.bf16.mxu0 %v5115_v3  ;;  %1104 = vmatprep.subr.bf16.mxu1 %v5120_v2  ;;  %6270 = vst [vmem:[#allocation36_spill] sm:$0xff] %v5139_v34  ;;  %v5149_v3 = vld [vmem:[%s6120_s4 + $0x180] ss:$16 sps:$4 sm:$0xff]   ;;  %v5168_v2 = vld [vmem:[%s6120_s4 + $0x1a4] ss:$16 sps:$4 sm:$0xff]  }
  0x63   : > { %6272 = vst [vmem:[#allocation38_spill] sm:$0xff] %v5149_v3  ;;  %6275 = vst [vmem:[#allocation41_spill] sm:$0xff] %v5168_v2 }
  0x65   : > { %1064 = vmatpush1.bf16.msra.mxu0 %v5125_v6  ;;  %1105 = vmatpush1.bf16.msra.mxu1 %v5130_v38  ;;  %v5154_v6 = vld [vmem:[%s6120_s4 + $0x188] ss:$16 sps:$4 sm:$0xff]   ;;  %v5163_v38 = vld [vmem:[%s6120_s4 + $0x1a0] ss:$16 sps:$4 sm:$0xff]  }
  0x66   : > { %6273 = vst [vmem:[#allocation39_spill] sm:$0xff] %v5154_v6  ;;  %1065 = vmatprep.subr.bf16.mxu0 %v5139_v34  ;;  %1106 = vmatprep.subr.bf16.mxu1 %v5144_v1  ;;  %6274 = vst [vmem:[#allocation40_spill] sm:$0xff] %v5163_v38  ;;  %v5173_v34 = vld [vmem:[%s6120_s4 + $0x1a8] ss:$16 sps:$4 sm:$0xff]   ;;  %v5189_v1 = vld [vmem:[%s6120_s4 + $0x1cc] ss:$16 sps:$4 sm:$0xff]  }
  0x67   : > { %6276 = vst [vmem:[#allocation42_spill] sm:$0xff] %v5173_v34  ;;  %6279 = vst [vmem:[#allocation45_spill] sm:$0xff] %v5189_v1 }
  0x69   : > { %1066 = vmatpush1.bf16.msra.mxu0 %v5149_v3  ;;  %1107 = vmatpush1.bf16.msra.mxu1 %v5154_v6  ;;  %v5178_v3 = vld [vmem:[%s6120_s4 + $0x1ac] ss:$16 sps:$4 sm:$0xff]   ;;  %v5183_v6 = vld [vmem:[%s6120_s4 + $0x1c4] ss:$16 sps:$4 sm:$0xff]  }
  0x6a   : > { %6277 = vst [vmem:[#allocation43_spill] sm:$0xff] %v5178_v3  ;;  %6278 = vst [vmem:[#allocation44_spill] sm:$0xff] %v5183_v6  ;;  %1067 = vmatprep.subr.bf16.mxu0 %v5168_v2  ;;  %1108 = vmatprep.subr.bf16.mxu1 %v5178_v3  ;;  %v5203_v2 = vld [vmem:[%s6120_s4 + $0x1c8] ss:$16 sps:$4 sm:$0xff]   ;;  %v5208_v3 = vld [vmem:[%s6120_s4 + $0x1e4] ss:$16 sps:$4 sm:$0xff]  }
  0x6b   : > { %6281 = vst [vmem:[#allocation47_spill] sm:$0xff] %v5203_v2  ;;  %6282 = vst [vmem:[#allocation48_spill] sm:$0xff] %v5208_v3 }
  0x6d   : > { %1068 = vmatpush1.bf16.msra.mxu0 %v5163_v38  ;;  %1109 = vmatpush1.bf16.msra.mxu1 %v5173_v34  ;;  %v3700_v38 = vld [vmem:[%s6123_s7 + $0x8] sm:$0xff] }
  0x6e   : > { %1069 = vmatprep.subr.bf16.mxu0 %v5183_v6  ;;  %1110 = vmatprep.subr.bf16.mxu1 %v5189_v1  ;;  %v5217_v6 = vld [vmem:[%s6120_s4 + $0x1ec] ss:$16 sps:$4 sm:$0xff]   ;;  %v634_v34 = vpack.c.bf16 %v3700_v38, %v3700_v38  ;;  %v5230_v1 = vld [vmem:[%s6120_s4 + $0x1e8] ss:$16 sps:$4 sm:$0xff]   ;;  %v326_v38 = vld [vmem:[%s4620_s12] sm:$0xff] }
  0x6f   : > { %6283 = vst [vmem:[#allocation49_spill] sm:$0xff] %v5217_v6  ;;  %6285 = vst [vmem:[#allocation51_spill] sm:$0xff] %v5230_v1 }
  0x70   : > { %1073 = vmatprep.mubr.bf16.mxu0 %v634_v34  ;;  %1114 = vmatprep.mubr.bf16.mxu1 %v634_v34  ;;  %v329_v34 = vld [vmem:[%s4620_s12 + $0x18] sm:$0xff] }
  0x71   : > { %1070 = vmatpush1.bf16.msra.mxu0 %v5196_v0  ;;  %1111 = vmatpush1.bf16.msra.mxu1 %v5203_v2  ;;  %v327_v2 = vld [vmem:[%s4620_s12 + $0x8] sm:$0xff] }
  0x72   : > { %1071 = vmatprep.subr.bf16.mxu0 %v5208_v3  ;;  %1112 = vmatprep.subr.bf16.mxu1 %v5217_v6 }
  0x75   : > { %1072 = vmatpush1.bf16.msra.mxu0 %v5223_v63  ;;  %1113 = vmatpush1.bf16.msra.mxu1 %v5230_v1 }
  0x76   : > { %1345 = vmatprep.subr.bf16.mxu0 %v4654_v4  ;;  %1386 = vmatprep.subr.bf16.mxu1 %v4684_v10  ;;  %v328_v10 = vld [vmem:[%s4620_s12 + $0x10] sm:$0xff] }
 0x10b   : > { %v557_v3 = vpop.f32.mrb[0].mxu0  ;;  %v598_v63 = vpop.f32.mrb[0].mxu1 }
 0x10c   : > { %v605_v0 = vadd.f32 %v557_v3, %v326_v38  ;;  %v559_v62 = vpop.f32.mrb[1].mxu0  ;;  %v600_v1 = vpop.f32.mrb[1].mxu1  ;;  %v607_v54 = vadd.f32 %v598_v63, %v328_v10  ;;  %v6333_v10 = vld [vmem:[#allocation48_spill] sm:$0xff] }
 0x10d   : > { %v606_v61 = vadd.f32 %v559_v62, %v327_v2  ;;  %v561_v60 = vpop.f32.mrb[2].mxu0  ;;  %v608_v57 = vadd.f32 %v600_v1, %v329_v34  ;;  %v602_v4 = vpop.f32.mrb[2].mxu1  ;;  %v6286_v2 = vmov 0   ;;  %v6331_v34 = vld [vmem:[#allocation46_spill] sm:$0xff] }
 0x10e   : > { %v3734_v59 = vmul.f32 -1.442695, %v605_v0  ;;  %v562_v6 = vpop.f32.mrb[3].mxu0  ;;  %v603_v56 = vpop.f32.mrb[3].mxu1  ;;  %v6332_v4 = vld [vmem:[#allocation47_spill] sm:$0xff] }
 0x10f   : > { %v3735_v58 = vmul.f32 -1.442695, %v606_v61  ;;  %v3736_v55 = vmul.f32 -1.442695, %v608_v57 }
 0x110   : > { %4427 = vpow2.f32 %v3734_v59 }
 0x111   : > { %4429 = vpow2.f32 %v3735_v58  ;;  %v321_v58 = vld [vmem:[%s6124_s8] sm:$0xff] }
 0x112   : > { %4431 = vpow2.f32 %v3736_v55 }
 0x113   : > { %4433 = vtanh.f32 %v607_v54 }
 0x11a   : > { %v4428_v51 = vpop.eup %4427 }
 0x11b   : > { %v4430_v3 = vpop.eup %4429  ;;  %v612_v38 = vadd.f32 1.0, %v4428_v51 }
 0x11c   : > { %v618_v60 = vadd.f32 1.0, %v4430_v3  ;;  %v4432_v6 = vpop.eup %4431  ;;  %v6334_v3 = vld [vmem:[#allocation49_spill] sm:$0xff] }
 0x11d   : > { %4435 = vrcp.f32 %v612_v38  ;;  %v4434_v61 = vpop.eup %4433  ;;  %v625_v62 = vadd.f32 1.0, %v4432_v6  ;;  %v6335_v38 = vld [vmem:[#allocation50_spill] sm:$0xff] }
 0x11e   : > { %4437 = vrcp.f32 %v618_v60  ;;  %v6336_v60 = vld [vmem:[#allocation51_spill] sm:$0xff]  ;;  %v5346_v6 = vld [vmem:[%s6119_s3 + $0x4] ss:$16 sps:$4 sm:$0xff]  }
 0x11f   : > { %4439 = vrcp.f32 %v625_v62 }
 0x127   : > { %v4436_v59 = vpop.eup %4435 }
 0x128   : > { %v4438_v56 = vpop.eup %4437  ;;  %v629_v0 = vmul.f32 %v4436_v59, %v4434_v61  ;;  %v5351_v61 = vld [vmem:[%s6119_s3 + $0xc] ss:$16 sps:$4 sm:$0xff]  }
 0x129   : > { %v628_v57 = vmul.f32 %v4438_v56, %v321_v58  ;;  %v4440_v51 = vpop.eup %4439  ;;  %v701_v58 = vlaneseq  ;;  %v699_v56 = vld [vmem:[%s6121_s5] sm:$0xf] }
 0x12b   : > { %v5244_v63 = vadd.f32 %v629_v0, %v628_v57  ;;  %v702_v59 = vshrl.u32 %v701_v58, 7 }
 0x12d   : > { %4441 = vtanh.f32 %v5244_v63  ;;  %v5355_v62 = vsub.s32 0, %v702_v59  ;;  %v5360_v0 = vsub.s32 1, %v702_v59 }
 0x12f   : > { %v704_v57 = vrot.slane %v699_v56, %v5355_v62 }
 0x137   : > { %v4442_v54 = vpop.eup %4441 }
 0x138   : > { %v632_v55 = vmul.f32 %v4442_v54, %v4440_v51  ;;  %v708_v51 = vrot.slane %v699_v56, %v5360_v0 }
 0x13a   : > { %v633_v1 = vpack.c.bf16 %v632_v55, %v632_v55 }
 0x13c   : > { %1074 = vmatmul.mubr.bf16.vlgmr.msra.gmra.mrb[4].mxu0 %v633_v1  ;;  %1115 = vmatmul.mubr.bf16.vlgmr.msra.gmra.mrb[4].mxu1 %v633_v1 }
 0x13d   : > { %1346 = vmatpush1.bf16.msra.mxu0 %v4659_v5  ;;  %1387 = vmatpush1.bf16.msra.mxu1 %v4689_v11  ;;  %v6287_v5 = vld [vmem:[#allocation2_spill] sm:$0xff] }
 0x13e   : > { %1347 = vmatprep.subr.bf16.mxu0 %v4667_v7  ;;  %1388 = vmatprep.subr.bf16.mxu1 %v4708_v14  ;;  %v6288_v7 = vld [vmem:[#allocation3_spill] sm:$0xff]  ;;  %v6291_v11 = vld [vmem:[#allocation6_spill] sm:$0xff]  ;;  %v6294_v14 = vld [vmem:[#allocation9_spill] sm:$0xff]  ;;  %6337 = vst [vmem:[#allocation2_spill] sm:$0xff] %v5355_v62 }
 0x13f   : > { %1377 = vmatprep.mubr.bf16.mxu0 %v6286_v2  ;;  %1418 = vmatprep.mubr.bf16.mxu1 %v6286_v2  ;;  %6338 = vst [vmem:[#allocation3_spill] sm:$0xff] %v5360_v0 }
 0x141   : > { %1348 = vmatpush1.bf16.msra.mxu0 %v4673_v8  ;;  %1389 = vmatpush1.bf16.msra.mxu1 %v4713_v15  ;;  %v6289_v8 = vld [vmem:[#allocation4_spill] sm:$0xff]  ;;  %v6295_v15 = vld [vmem:[#allocation10_spill] sm:$0xff] }
 0x142   : > { %1349 = vmatprep.subr.bf16.mxu0 %v4679_v9  ;;  %1390 = vmatprep.subr.bf16.mxu1 %v4730_v18  ;;  %v6290_v9 = vld [vmem:[#allocation5_spill] sm:$0xff] }
 0x143   : > { %v6298_v18 = vld [vmem:[#allocation13_spill] sm:$0xff] }
 0x145   : > { %1350 = vmatpush1.bf16.msra.mxu0 %v4695_v12  ;;  %1391 = vmatpush1.bf16.msra.mxu1 %v4737_v19  ;;  %v6292_v12 = vld [vmem:[#allocation7_spill] sm:$0xff]  ;;  %v6299_v19 = vld [vmem:[#allocation14_spill] sm:$0xff] }
 0x146   : > { %1351 = vmatprep.subr.bf16.mxu0 %v4702_v13  ;;  %1392 = vmatprep.subr.bf16.mxu1 %v4743_v20  ;;  %v6293_v13 = vld [vmem:[#allocation8_spill] sm:$0xff]  ;;  %v6300_v20 = vld [vmem:[#allocation15_spill] sm:$0xff] }
 0x149   : > { %1352 = vmatpush1.bf16.msra.mxu0 %v4720_v16  ;;  %1393 = vmatpush1.bf16.msra.mxu1 %v4761_v23  ;;  %v6296_v16 = vld [vmem:[#allocation11_spill] sm:$0xff]  ;;  %v6303_v23 = vld [vmem:[#allocation18_spill] sm:$0xff] }
 0x14a   : > { %1353 = vmatprep.subr.bf16.mxu0 %v4725_v17  ;;  %1394 = vmatprep.subr.bf16.mxu1 %v4767_v24  ;;  %v6297_v17 = vld [vmem:[#allocation12_spill] sm:$0xff]  ;;  %v6304_v24 = vld [vmem:[#allocation19_spill] sm:$0xff] }
 0x14d   : > { %1354 = vmatpush1.bf16.msra.mxu0 %v4749_v21  ;;  %1395 = vmatpush1.bf16.msra.mxu1 %v4785_v27  ;;  %v6301_v21 = vld [vmem:[#allocation16_spill] sm:$0xff]  ;;  %v6307_v27 = vld [vmem:[#allocation22_spill] sm:$0xff] }
 0x14e   : > { %1355 = vmatprep.subr.bf16.mxu0 %v4755_v22  ;;  %1396 = vmatprep.subr.bf16.mxu1 %v4791_v28  ;;  %v6302_v22 = vld [vmem:[#allocation17_spill] sm:$0xff]  ;;  %v6308_v28 = vld [vmem:[#allocation23_spill] sm:$0xff] }
 0x151   : > { %1356 = vmatpush1.bf16.msra.mxu0 %v4772_v25  ;;  %1397 = vmatpush1.bf16.msra.mxu1 %v4809_v31  ;;  %v6305_v25 = vld [vmem:[#allocation20_spill] sm:$0xff]  ;;  %v6311_v31 = vld [vmem:[#allocation26_spill] sm:$0xff] }
 0x152   : > { %1357 = vmatprep.subr.bf16.mxu0 %v4778_v26  ;;  %1398 = vmatprep.subr.bf16.mxu1 %v4815_v32  ;;  %v6306_v26 = vld [vmem:[#allocation21_spill] sm:$0xff]  ;;  %v6312_v32 = vld [vmem:[#allocation27_spill] sm:$0xff] }
 0x155   : > { %1358 = vmatpush1.bf16.msra.mxu0 %v4796_v29  ;;  %1399 = vmatpush1.bf16.msra.mxu1 %v4829_v35  ;;  %v6309_v29 = vld [vmem:[#allocation24_spill] sm:$0xff]  ;;  %v6314_v35 = vld [vmem:[#allocation29_spill] sm:$0xff] }
 0x156   : > { %1359 = vmatprep.subr.bf16.mxu0 %v4802_v30  ;;  %1400 = vmatprep.subr.bf16.mxu1 %v4842_v37  ;;  %v6310_v30 = vld [vmem:[#allocation25_spill] sm:$0xff]  ;;  %v6316_v37 = vld [vmem:[#allocation31_spill] sm:$0xff] }
 0x159   : > { %1360 = vmatpush1.bf16.msra.mxu0 %v4820_v33  ;;  %1401 = vmatpush1.bf16.msra.mxu1 %v4847_v39  ;;  %v6313_v33 = vld [vmem:[#allocation28_spill] sm:$0xff] }
 0x15a   : > { %1863 = vmatprep.subr.bf16.mxu0 %v4836_v36  ;;  %1904 = vmatprep.subr.bf16.mxu1 %v4860_v41  ;;  %v6315_v36 = vld [vmem:[#allocation30_spill] sm:$0xff]  ;;  %v6317_v39 = vld [vmem:[#allocation32_spill] sm:$0xff] }
 0x15b   : > { %v6319_v41 = vld [vmem:[#allocation34_spill] sm:$0xff] }
 0x15c   : > { %1378 = vmatmul.mubr.bf16.vlgmr.msra.gmra.mrb[8].mxu0 %v633_v1  ;;  %1419 = vmatmul.mubr.bf16.vlgmr.msra.gmra.mrb[8].mxu1 %v633_v1  ;;  %v5364_v1 = vsub.s32 3, %v702_v59 }
 0x15d   : > { %1864 = vmatpush1.bf16.msra.mxu0 %v4853_v40  ;;  %1905 = vmatpush1.bf16.msra.mxu1 %v4876_v44  ;;  %v6318_v40 = vld [vmem:[#allocation33_spill] sm:$0xff] }
 0x15e   : > { %1865 = vmatprep.subr.bf16.mxu0 %v4865_v42  ;;  %1906 = vmatprep.subr.bf16.mxu1 %v4887_v46  ;;  %v6320_v42 = vld [vmem:[#allocation35_spill] sm:$0xff]  ;;  %v6322_v44 = vld [vmem:[#allocation37_spill] sm:$0xff] }
 0x15f   : > { %v6324_v46 = vld [vmem:[#allocation39_spill] sm:$0xff] }
 0x161   : > { %1866 = vmatpush1.bf16.msra.mxu0 %v4871_v43  ;;  %1907 = vmatpush1.bf16.msra.mxu1 %v4900_v48  ;;  %v6321_v43 = vld [vmem:[#allocation36_spill] sm:$0xff]  ;;  %v6326_v48 = vld [vmem:[#allocation43_spill] sm:$0xff] }
 0x162   : > { %1867 = vmatprep.subr.bf16.mxu0 %v4881_v45  ;;  %1908 = vmatprep.subr.bf16.mxu1 %v4911_v50  ;;  %v6323_v45 = vld [vmem:[#allocation38_spill] sm:$0xff] }
 0x163   : > { %v6328_v50 = vld [vmem:[#allocation42_spill] sm:$0xff] }
 0x165   : > { %1868 = vmatpush1.bf16.msra.mxu0 %v4895_v47  ;;  %1909 = vmatpush1.bf16.msra.mxu1 %v4924_v52  ;;  %v6325_v47 = vld [vmem:[#allocation41_spill] sm:$0xff]  ;;  %v6329_v52 = vld [vmem:[#allocation44_spill] sm:$0xff] }
 0x166   : > { %1869 = vmatprep.subr.bf16.mxu0 %v4905_v49  ;;  %1910 = vmatprep.subr.bf16.mxu1 %v4930_v53  ;;  %v6327_v49 = vld [vmem:[#allocation40_spill] sm:$0xff]  ;;  %v6330_v53 = vld [vmem:[#allocation45_spill] sm:$0xff] }
 0x169   : > { %1870 = vmatpush1.bf16.msra.mxu0 %v6287_v5  ;;  %1911 = vmatpush1.bf16.msra.mxu1 %v6288_v7 }
 0x16a   : > { %1871 = vmatprep.subr.bf16.mxu0 %v6289_v8  ;;  %1912 = vmatprep.subr.bf16.mxu1 %v6290_v9 }
 0x16d   : > { %1872 = vmatpush1.bf16.msra.mxu0 %v6291_v11  ;;  %1913 = vmatpush1.bf16.msra.mxu1 %v6292_v12 }
 0x16e   : > { %1873 = vmatprep.subr.bf16.mxu0 %v6293_v13  ;;  %1914 = vmatprep.subr.bf16.mxu1 %v6294_v14 }
 0x171   : > { %1874 = vmatpush1.bf16.msra.mxu0 %v6295_v15  ;;  %1915 = vmatpush1.bf16.msra.mxu1 %v6296_v16 }
 0x172   : > { %1875 = vmatprep.subr.bf16.mxu0 %v6297_v17  ;;  %1916 = vmatprep.subr.bf16.mxu1 %v6298_v18  ;;  %v716_v17 = vrot.slane %v699_v56, %v5364_v1  ;;  %v5367_v18 = vsub.s32 2, %v702_v59 }
 0x175   : > { %1876 = vmatpush1.bf16.msra.mxu0 %v6299_v19  ;;  %1917 = vmatpush1.bf16.msra.mxu1 %v6300_v20  ;;  %v712_v20 = vrot.slane %v699_v56, %v5367_v18 }
 0x176   : > { %1877 = vmatprep.subr.bf16.mxu0 %v6301_v21  ;;  %1918 = vmatprep.subr.bf16.mxu1 %v6302_v22 }
 0x179   : > { %1878 = vmatpush1.bf16.msra.mxu0 %v6303_v23  ;;  %1919 = vmatpush1.bf16.msra.mxu1 %v6304_v24 }
 0x17a   : > { %1879 = vmatprep.subr.bf16.mxu0 %v6305_v25  ;;  %1920 = vmatprep.subr.bf16.mxu1 %v6306_v26 }
 0x17d   : > { %1880 = vmatpush1.bf16.msra.mxu0 %v6307_v27  ;;  %1921 = vmatpush1.bf16.msra.mxu1 %v6308_v28 }
 0x17e   : > { %1881 = vmatprep.subr.bf16.mxu0 %v6309_v29  ;;  %1922 = vmatprep.subr.bf16.mxu1 %v6310_v30  ;;  %v3701_v29 = vld [vmem:[%s6124_s8 + $0x8] sm:$0xff] }
 0x181   : > { %1882 = vmatpush1.bf16.msra.mxu0 %v6311_v31  ;;  %1923 = vmatpush1.bf16.msra.mxu1 %v6312_v32 }
 0x182   : > { %1883 = vmatprep.subr.bf16.mxu0 %v6313_v33  ;;  %1924 = vmatprep.subr.bf16.mxu1 %v6314_v35 }
 0x185   : > { %1884 = vmatpush1.bf16.msra.mxu0 %v6315_v36  ;;  %1925 = vmatpush1.bf16.msra.mxu1 %v6316_v37  ;;  %v3804_v36 = vld [vmem:[%s4620_s12 + $0x20] sm:$0xff]  ;;  %v3805_v37 = vld [vmem:[%s4620_s12 + $0x28] sm:$0xff] }
 0x186   : > { %1885 = vmatprep.subr.bf16.mxu0 %v6317_v39  ;;  %1926 = vmatprep.subr.bf16.mxu1 %v6318_v40 }
 0x189   : > { %1886 = vmatpush1.bf16.msra.mxu0 %v6319_v41  ;;  %1927 = vmatpush1.bf16.msra.mxu1 %v6320_v42 }
 0x18a   : > { %1887 = vmatprep.subr.bf16.mxu0 %v6321_v43  ;;  %1928 = vmatprep.subr.bf16.mxu1 %v6322_v44 }
 0x18d   : > { %1888 = vmatpush1.bf16.msra.mxu0 %v6323_v45  ;;  %1929 = vmatpush1.bf16.msra.mxu1 %v6324_v46 }
 0x18e   : > { %1889 = vmatprep.subr.bf16.mxu0 %v6325_v47  ;;  %1930 = vmatprep.subr.bf16.mxu1 %v6326_v48 }
 0x191   : > { %1890 = vmatpush1.bf16.msra.mxu0 %v6327_v49  ;;  %1931 = vmatpush1.bf16.msra.mxu1 %v6328_v50 }
 0x192   : > { %1891 = vmatprep.subr.bf16.mxu0 %v6329_v52  ;;  %1932 = vmatprep.subr.bf16.mxu1 %v6330_v53  ;;  %v3807_v53 = vld [vmem:[%s4620_s12 + $0x38] sm:$0xff] }
 0x195   : > { %1892 = vmatpush1.bf16.msra.mxu0 %v6331_v34  ;;  %1933 = vmatpush1.bf16.msra.mxu1 %v6332_v4  ;;  %v3806_v4 = vld [vmem:[%s4620_s12 + $0x30] sm:$0xff] }
 0x196   : > { %1893 = vmatprep.subr.bf16.mxu0 %v6333_v10  ;;  %1934 = vmatprep.subr.bf16.mxu1 %v6334_v3 }
 0x199   : > { %1894 = vmatpush1.bf16.msra.mxu0 %v6335_v38  ;;  %1935 = vmatpush1.bf16.msra.mxu1 %v6336_v60 }
 0x19a   : > { %2168 = vmatprep.subr.bf16.mxu0 %v5346_v6  ;;  %2209 = vmatprep.subr.bf16.mxu1 %v5351_v61 }
 0x20f   : > { %v1075_v54 = vpop.f32.mrb[4].mxu0  ;;  %v1116_v55 = vpop.f32.mrb[4].mxu1 }
 0x210   : > { %v1076_v5 = vadd.f32 %v1075_v54, %v704_v57  ;;  %v1077_v7 = vpop.f32.mrb[5].mxu0  ;;  %v1118_v8 = vpop.f32.mrb[5].mxu1  ;;  %v1117_v22 = vadd.f32 %v1116_v55, %v712_v20 }
 0x211   : > { %v1078_v9 = vadd.f32 %v1077_v7, %v708_v51  ;;  %v1079_v11 = vpop.f32.mrb[6].mxu0  ;;  %v1120_v12 = vpop.f32.mrb[6].mxu1  ;;  %v1119_v19 = vadd.f32 %v1118_v8, %v716_v17  ;;  %v5388_v17 = vld [vmem:[%s6119_s3] ss:$16 sps:$4 sm:$0xff]  }
 0x212   : > { %v3801_v13 = vmul.f32 -1.442695, %v1076_v5  ;;  %v1080_v14 = vpop.f32.mrb[7].mxu0  ;;  %v1121_v15 = vpop.f32.mrb[7].mxu1 }
 0x213   : > { %v3802_v16 = vmul.f32 -1.442695, %v1078_v9  ;;  %v3803_v21 = vmul.f32 -1.442695, %v1119_v19  ;;  %v5393_v19 = vld [vmem:[%s6119_s3 + $0x8] ss:$16 sps:$4 sm:$0xff]  }
 0x214   : > { %4443 = vpow2.f32 %v3801_v13 }
 0x215   : > { %4445 = vpow2.f32 %v3802_v16 }
 0x216   : > { %4447 = vpow2.f32 %v3803_v21  ;;  %v5405_v21 = vld [vmem:[%s6119_s3 + $0x2c] ss:$16 sps:$4 sm:$0xff]  }
 0x217   : > { %4449 = vtanh.f32 %v1117_v22  ;;  %v5414_v22 = vld [vmem:[%s6119_s3 + $0x20] ss:$16 sps:$4 sm:$0xff]  }
 0x21e   : > { %v4444_v23 = vpop.eup %4443 }
 0x21f   : > { %v4446_v24 = vpop.eup %4445  ;;  %v1126_v25 = vadd.f32 1.0, %v4444_v23  ;;  %v5419_v23 = vld [vmem:[%s6119_s3 + $0x28] ss:$16 sps:$4 sm:$0xff]  }
 0x220   : > { %v1132_v26 = vadd.f32 1.0, %v4446_v24  ;;  %v4448_v27 = vpop.eup %4447  ;;  %v5426_v24 = vld [vmem:[%s6119_s3 + $0x44] ss:$16 sps:$4 sm:$0xff]  }
 0x221   : > { %4451 = vrcp.f32 %v1126_v25  ;;  %v4450_v28 = vpop.eup %4449  ;;  %v1139_v33 = vadd.f32 1.0, %v4448_v27  ;;  %v5431_v25 = vld [vmem:[%s6119_s3 + $0x4c] ss:$16 sps:$4 sm:$0xff]   ;;  %v5445_v27 = vld [vmem:[%s6119_s3 + $0x48] ss:$16 sps:$4 sm:$0xff]  }
 0x222   : > { %4453 = vrcp.f32 %v1132_v26  ;;  %v5440_v26 = vld [vmem:[%s6119_s3 + $0x40] ss:$16 sps:$4 sm:$0xff]  }
 0x223   : > { %4455 = vrcp.f32 %v1139_v33  ;;  %v5481_v33 = vld [vmem:[%s6119_s3 + $0x8c] ss:$16 sps:$4 sm:$0xff]  }
 0x22b   : > { %v4452_v30 = vpop.eup %4451 }
 0x22c   : > { %v4454_v31 = vpop.eup %4453  ;;  %v1143_v32 = vmul.f32 %v4452_v30, %v4450_v28  ;;  %v5452_v28 = vld [vmem:[%s6119_s3 + $0x64] ss:$16 sps:$4 sm:$0xff]   ;;  %v5464_v30 = vld [vmem:[%s6119_s3 + $0x60] ss:$16 sps:$4 sm:$0xff]  }
 0x22d   : > { %v1142_v35 = vmul.f32 %v4454_v31, %v3701_v29  ;;  %v4456_v10 = vpop.eup %4455  ;;  %v5457_v29 = vld [vmem:[%s6119_s3 + $0x6c] ss:$16 sps:$4 sm:$0xff]   ;;  %v5469_v31 = vld [vmem:[%s6119_s3 + $0x68] ss:$16 sps:$4 sm:$0xff]  }
 0x22f   : > { %v5375_v39 = vadd.f32 %v1143_v32, %v1142_v35  ;;  %v1379_v40 = vpop.f32.mrb[8].mxu0  ;;  %v1420_v41 = vpop.f32.mrb[8].mxu1  ;;  %v5476_v32 = vld [vmem:[%s6119_s3 + $0x84] ss:$16 sps:$4 sm:$0xff]   ;;  %v5488_v35 = vld [vmem:[%s6119_s3 + $0x80] ss:$16 sps:$4 sm:$0xff]  }
 0x230   : > { %v1427_v42 = vadd.f32 %v3804_v36, %v1379_v40  ;;  %v1381_v43 = vpop.f32.mrb[9].mxu0  ;;  %v1422_v44 = vpop.f32.mrb[9].mxu1  ;;  %v1429_v60 = vadd.f32 %v3806_v4, %v1420_v41  ;;  %v5493_v36 = vld [vmem:[%s6119_s3 + $0x88] ss:$16 sps:$4 sm:$0xff]   ;;  %v5505_v40 = vld [vmem:[%s6119_s3 + $0xac] ss:$16 sps:$4 sm:$0xff]  }
 0x231   : > { %v1428_v45 = vadd.f32 %v3805_v37, %v1381_v43  ;;  %v1383_v46 = vpop.f32.mrb[10].mxu0  ;;  %v1424_v47 = vpop.f32.mrb[10].mxu1  ;;  %4457 = vtanh.f32 %v5375_v39  ;;  %v1430_v34 = vadd.f32 %v3807_v53, %v1422_v44  ;;  %v5500_v37 = vld [vmem:[%s6119_s3 + $0xa4] ss:$16 sps:$4 sm:$0xff]   ;;  %v5512_v41 = vld [vmem:[%s6119_s3 + $0xa0] ss:$16 sps:$4 sm:$0xff]  }
 0x232   : > { %v3840_v48 = vmul.f32 -1.442695, %v1427_v42  ;;  %v1384_v49 = vpop.f32.mrb[11].mxu0  ;;  %v1425_v50 = vpop.f32.mrb[11].mxu1  ;;  %v5517_v42 = vld [vmem:[%s6119_s3 + $0xa8] ss:$16 sps:$4 sm:$0xff]  }
 0x233   : > { %v3841_v52 = vmul.f32 -1.442695, %v1428_v45  ;;  %v3842_v38 = vmul.f32 -1.442695, %v1430_v34  ;;  %v5524_v43 = vld [vmem:[%s6119_s3 + $0xc4] ss:$16 sps:$4 sm:$0xff]  }
 0x234   : > { %4459 = vpow2.f32 %v3840_v48  ;;  %v5529_v44 = vld [vmem:[%s6119_s3 + $0xcc] ss:$16 sps:$4 sm:$0xff]   ;;  %v5536_v45 = vld [vmem:[%s6119_s3 + $0xc0] ss:$16 sps:$4 sm:$0xff]   ;;  %v5541_v46 = vld [vmem:[%s6119_s3 + $0xc8] ss:$16 sps:$4 sm:$0xff]  }
 0x235   : > { %4461 = vpow2.f32 %v3841_v52  ;;  %v5548_v47 = vld [vmem:[%s6119_s3 + $0xe4] ss:$16 sps:$4 sm:$0xff]   ;;  %v5553_v48 = vld [vmem:[%s6119_s3 + $0xec] ss:$16 sps:$4 sm:$0xff]   ;;  %v5560_v49 = vld [vmem:[%s6119_s3 + $0xe0] ss:$16 sps:$4 sm:$0xff]  }
 0x236   : > { %4463 = vpow2.f32 %v3842_v38  ;;  %v5565_v50 = vld [vmem:[%s6119_s3 + $0xe8] ss:$16 sps:$4 sm:$0xff]   ;;  %v5576_v52 = vld [vmem:[%s6120_s4 + $0x4] ss:$16 sps:$4 sm:$0xff]   ;;  %v5581_v53 = vld [vmem:[%s6120_s4 + $0xc] ss:$16 sps:$4 sm:$0xff]  }
 0x237   : > { %4465 = vtanh.f32 %v1429_v60  ;;  %v5586_v34 = vld [vmem:[%s6120_s4] ss:$16 sps:$4 sm:$0xff]   ;;  %v5591_v4 = vld [vmem:[%s6120_s4 + $0x8] ss:$16 sps:$4 sm:$0xff]  }
 0x238   : > { %v5610_v38 = vld [vmem:[%s6120_s4 + $0x20] ss:$16 sps:$4 sm:$0xff]   ;;  %v5615_v60 = vld [vmem:[%s6120_s4 + $0x28] ss:$16 sps:$4 sm:$0xff]  }
 0x23b   : > { %v4458_v3 = vpop.eup %4457 }
 0x23c   : > { %v1146_v58 = vmul.f32 %v4458_v3, %v4456_v10  ;;  %v5600_v10 = vld [vmem:[%s6120_s4 + $0x24] ss:$16 sps:$4 sm:$0xff]   ;;  %v5605_v3 = vld [vmem:[%s6120_s4 + $0x2c] ss:$16 sps:$4 sm:$0xff]  }
 0x23e   : > { %v4460_v59 = vpop.eup %4459  ;;  %1147 = vst [vmem:[%s4625_s15] sm:$0xff] %v1146_v58  ;;  %v1456_v56 = vpack.c.bf16 %v1146_v58, %v1146_v58  ;;  %v5624_v58 = vld [vmem:[%s6120_s4 + $0x44] ss:$16 sps:$4 sm:$0xff]  }
 0x23f   : > { %v4462_v57 = vpop.eup %4461  ;;  %v1434_v51 = vadd.f32 1.0, %v4460_v59  ;;  %v5629_v59 = vld [vmem:[%s6120_s4 + $0x4c] ss:$16 sps:$4 sm:$0xff]  }
 0x240   : > { %v1440_v54 = vadd.f32 1.0, %v4462_v57  ;;  %1895 = vmatprep.mubr.bf16.mxu0 %v1456_v56  ;;  %1936 = vmatprep.mubr.bf16.mxu1 %v1456_v56  ;;  %v4464_v55 = vpop.eup %4463  ;;  %6339 = vst [vmem:[#allocation4_spill] sm:$0xff] %v5629_v59  ;;  %v5634_v56 = vld [vmem:[%s6120_s4 + $0x40] ss:$16 sps:$4 sm:$0xff]   ;;  %v5639_v57 = vld [vmem:[%s6120_s4 + $0x48] ss:$16 sps:$4 sm:$0xff]  }
 0x241   : > { %4467 = vrcp.f32 %v1434_v51  ;;  %v4466_v5 = vpop.eup %4465  ;;  %v1447_v11 = vadd.f32 1.0, %v4464_v55  ;;  %6340 = vst [vmem:[#allocation5_spill] sm:$0xff] %v5634_v56  ;;  %6341 = vst [vmem:[#allocation6_spill] sm:$0xff] %v5639_v57  ;;  %v5648_v51 = vld [vmem:[%s6120_s4 + $0x64] ss:$16 sps:$4 sm:$0xff]  }
 0x242   : > { %4469 = vrcp.f32 %v1440_v54  ;;  %6342 = vst [vmem:[#allocation7_spill] sm:$0xff] %v5648_v51  ;;  %v5653_v54 = vld [vmem:[%s6120_s4 + $0x6c] ss:$16 sps:$4 sm:$0xff]   ;;  %v5658_v55 = vld [vmem:[%s6120_s4 + $0x60] ss:$16 sps:$4 sm:$0xff]  }
 0x243   : > { %4471 = vrcp.f32 %v1447_v11  ;;  %6343 = vst [vmem:[#allocation8_spill] sm:$0xff] %v5653_v54  ;;  %6344 = vst [vmem:[#allocation9_spill] sm:$0xff] %v5658_v55  ;;  %v5687_v11 = vld [vmem:[%s6120_s4 + $0x88] ss:$16 sps:$4 sm:$0xff]  }
 0x244   : > { %6349 = vst [vmem:[#allocation14_spill] sm:$0xff] %v5687_v11 }
 0x24b   : > { %v4468_v7 = vpop.eup %4467 }
 0x24c   : > { %v4470_v8 = vpop.eup %4469  ;;  %v1451_v9 = vmul.f32 %v4468_v7, %v4466_v5  ;;  %v5663_v5 = vld [vmem:[%s6120_s4 + $0x68] ss:$16 sps:$4 sm:$0xff]   ;;  %v5672_v7 = vld [vmem:[%s6120_s4 + $0x84] ss:$16 sps:$4 sm:$0xff]  }
 0x24d   : > { %v1450_v12 = vmul.f32 %v4470_v8, %v5244_v63  ;;  %v4472_v14 = vpop.eup %4471  ;;  %v5400_v63 = vld [vmem:[%s6119_s3 + $0x24] ss:$16 sps:$4 sm:$0xff]   ;;  %6345 = vst [vmem:[#allocation10_spill] sm:$0xff] %v5663_v5  ;;  %6346 = vst [vmem:[#allocation11_spill] sm:$0xff] %v5672_v7  ;;  %v5677_v8 = vld [vmem:[%s6120_s4 + $0x8c] ss:$16 sps:$4 sm:$0xff]  }
 0x24e   : > { %6347 = vst [vmem:[#allocation12_spill] sm:$0xff] %v5677_v8 }
 0x24f   : > { %v5382_v13 = vadd.f32 %v1451_v9, %v1450_v12  ;;  %v5682_v9 = vld [vmem:[%s6120_s4 + $0x80] ss:$16 sps:$4 sm:$0xff]   ;;  %v5696_v12 = vld [vmem:[%s6120_s4 + $0xa4] ss:$16 sps:$4 sm:$0xff]  }
 0x250   : > { %6348 = vst [vmem:[#allocation13_spill] sm:$0xff] %v5682_v9  ;;  %6350 = vst [vmem:[#allocation15_spill] sm:$0xff] %v5696_v12 }
 0x251   : > { %4473 = vtanh.f32 %v5382_v13 }
 0x25b   : > { %v4474_v15 = vpop.eup %4473 }
 0x25c   : > { %v1454_v16 = vmul.f32 %v4474_v15, %v4472_v14  ;;  %v5701_v14 = vld [vmem:[%s6120_s4 + $0xac] ss:$16 sps:$4 sm:$0xff]   ;;  %v5706_v15 = vld [vmem:[%s6120_s4 + $0xa0] ss:$16 sps:$4 sm:$0xff]  }
 0x25d   : > { %6351 = vst [vmem:[#allocation16_spill] sm:$0xff] %v5701_v14  ;;  %6352 = vst [vmem:[#allocation17_spill] sm:$0xff] %v5706_v15 }
 0x25e   : > { %v5395_v20 = vpack.c.bf16 %v1454_v16, %v1454_v16  ;;  %v5711_v16 = vld [vmem:[%s6120_s4 + $0xa8] ss:$16 sps:$4 sm:$0xff]  }
 0x25f   : > { %6353 = vst [vmem:[#allocation18_spill] sm:$0xff] %v5711_v16 }
 0x260   : > { %1896 = vmatmul.mubr.bf16.vlgmr.msra.gmra.mrb[12].mxu0 %v5395_v20  ;;  %1937 = vmatmul.mubr.bf16.vlgmr.msra.gmra.mrb[12].mxu1 %v5395_v20 }
 0x261   : > { %2169 = vmatpush1.bf16.msra.mxu0 %v5388_v17  ;;  %2210 = vmatpush1.bf16.msra.mxu1 %v5393_v19 }
 0x262   : > { %2170 = vmatprep.subr.bf16.mxu0 %v5400_v63  ;;  %2211 = vmatprep.subr.bf16.mxu1 %v5405_v21 }
 0x263   : > { %2200 = vmatprep.mubr.bf16.mxu0 %v6286_v2  ;;  %2241 = vmatprep.mubr.bf16.mxu1 %v6286_v2 }
 0x265   : > { %2171 = vmatpush1.bf16.msra.mxu0 %v5414_v22  ;;  %2212 = vmatpush1.bf16.msra.mxu1 %v5419_v23 }
 0x266   : > { %2172 = vmatprep.subr.bf16.mxu0 %v5426_v24  ;;  %2213 = vmatprep.subr.bf16.mxu1 %v5431_v25 }
 0x269   : > { %2173 = vmatpush1.bf16.msra.mxu0 %v5440_v26  ;;  %2214 = vmatpush1.bf16.msra.mxu1 %v5445_v27 }
 0x26a   : > { %2174 = vmatprep.subr.bf16.mxu0 %v5452_v28  ;;  %2215 = vmatprep.subr.bf16.mxu1 %v5457_v29 }
 0x26d   : > { %2175 = vmatpush1.bf16.msra.mxu0 %v5464_v30  ;;  %2216 = vmatpush1.bf16.msra.mxu1 %v5469_v31 }
 0x26e   : > { %2176 = vmatprep.subr.bf16.mxu0 %v5476_v32  ;;  %2217 = vmatprep.subr.bf16.mxu1 %v5481_v33 }
 0x271   : > { %2177 = vmatpush1.bf16.msra.mxu0 %v5488_v35  ;;  %2218 = vmatpush1.bf16.msra.mxu1 %v5493_v36 }
 0x272   : > { %2178 = vmatprep.subr.bf16.mxu0 %v5500_v37  ;;  %2219 = vmatprep.subr.bf16.mxu1 %v5505_v40 }
 0x275   : > { %2179 = vmatpush1.bf16.msra.mxu0 %v5512_v41  ;;  %2220 = vmatpush1.bf16.msra.mxu1 %v5517_v42 }
 0x276   : > { %2180 = vmatprep.subr.bf16.mxu0 %v5524_v43  ;;  %2221 = vmatprep.subr.bf16.mxu1 %v5529_v44 }
 0x279   : > { %2181 = vmatpush1.bf16.msra.mxu0 %v5536_v45  ;;  %2222 = vmatpush1.bf16.msra.mxu1 %v5541_v46 }
 0x27a   : > { %2182 = vmatprep.subr.bf16.mxu0 %v5548_v47  ;;  %2223 = vmatprep.subr.bf16.mxu1 %v5553_v48 }
 0x27d   : > { %2183 = vmatpush1.bf16.msra.mxu0 %v5560_v49  ;;  %2224 = vmatpush1.bf16.msra.mxu1 %v5565_v50 }
 0x27e   : > { %2686 = vmatprep.subr.bf16.mxu0 %v5576_v52  ;;  %2727 = vmatprep.subr.bf16.mxu1 %v5581_v53 }
 0x280   : > { %2201 = vmatmul.mubr.bf16.vlgmr.msra.gmra.mrb[16].mxu0 %v5395_v20  ;;  %2242 = vmatmul.mubr.bf16.vlgmr.msra.gmra.mrb[16].mxu1 %v5395_v20  ;;  %v5720_v20 = vld [vmem:[%s6120_s4 + $0xc4] ss:$16 sps:$4 sm:$0xff]  }
 0x281   : > { %2687 = vmatpush1.bf16.msra.mxu0 %v5586_v34  ;;  %2728 = vmatpush1.bf16.msra.mxu1 %v5591_v4  ;;  %6354 = vst [vmem:[#allocation19_spill] sm:$0xff] %v5720_v20 }
 0x282   : > { %2688 = vmatprep.subr.bf16.mxu0 %v5600_v10  ;;  %2729 = vmatprep.subr.bf16.mxu1 %v5605_v3 }
 0x285   : > { %2689 = vmatpush1.bf16.msra.mxu0 %v5610_v38  ;;  %2730 = vmatpush1.bf16.msra.mxu1 %v5615_v60 }
 0x286   : > { %2690 = vmatprep.subr.bf16.mxu0 %v5624_v58  ;;  %2731 = vmatprep.subr.bf16.mxu1 %v5629_v59 }
 0x289   : > { %2691 = vmatpush1.bf16.msra.mxu0 %v5634_v56  ;;  %2732 = vmatpush1.bf16.msra.mxu1 %v5639_v57 }
 0x28a   : > { %2692 = vmatprep.subr.bf16.mxu0 %v5648_v51  ;;  %2733 = vmatprep.subr.bf16.mxu1 %v5653_v54 }
 0x28d   : > { %2693 = vmatpush1.bf16.msra.mxu0 %v5658_v55  ;;  %2734 = vmatpush1.bf16.msra.mxu1 %v5663_v5 }
 0x28e   : > { %2694 = vmatprep.subr.bf16.mxu0 %v5672_v7  ;;  %2735 = vmatprep.subr.bf16.mxu1 %v5677_v8 }
 0x291   : > { %2695 = vmatpush1.bf16.msra.mxu0 %v5682_v9  ;;  %2736 = vmatpush1.bf16.msra.mxu1 %v5687_v11  ;;  %v5725_v11 = vld [vmem:[%s6120_s4 + $0xcc] ss:$16 sps:$4 sm:$0xff]  }
 0x292   : > { %2696 = vmatprep.subr.bf16.mxu0 %v5696_v12  ;;  %2737 = vmatprep.subr.bf16.mxu1 %v5701_v14  ;;  %6355 = vst [vmem:[#allocation20_spill] sm:$0xff] %v5725_v11  ;;  %v5730_v12 = vld [vmem:[%s6120_s4 + $0xc0] ss:$16 sps:$4 sm:$0xff]   ;;  %v5749_v14 = vld [vmem:[%s6120_s4 + $0xec] ss:$16 sps:$4 sm:$0xff]  }
 0x293   : > { %6356 = vst [vmem:[#allocation21_spill] sm:$0xff] %v5730_v12  ;;  %6359 = vst [vmem:[#allocation24_spill] sm:$0xff] %v5749_v14 }
 0x295   : > { %2697 = vmatpush1.bf16.msra.mxu0 %v5706_v15  ;;  %2738 = vmatpush1.bf16.msra.mxu1 %v5711_v16  ;;  %v5735_v15 = vld [vmem:[%s6120_s4 + $0xc8] ss:$16 sps:$4 sm:$0xff]   ;;  %v5744_v16 = vld [vmem:[%s6120_s4 + $0xe4] ss:$16 sps:$4 sm:$0xff]  }
 0x296   : > { %6357 = vst [vmem:[#allocation22_spill] sm:$0xff] %v5735_v15  ;;  %2698 = vmatprep.subr.bf16.mxu0 %v5720_v20  ;;  %2739 = vmatprep.subr.bf16.mxu1 %v5725_v11  ;;  %6358 = vst [vmem:[#allocation23_spill] sm:$0xff] %v5744_v16  ;;  %v5754_v20 = vld [vmem:[%s6120_s4 + $0xe0] ss:$16 sps:$4 sm:$0xff]   ;;  %v5773_v11 = vld [vmem:[%s6120_s4 + $0x10c] ss:$16 sps:$4 sm:$0xff]  }
 0x297   : > { %6360 = vst [vmem:[#allocation25_spill] sm:$0xff] %v5754_v20  ;;  %6363 = vst [vmem:[#allocation28_spill] sm:$0xff] %v5773_v11 }
 0x299   : > { %2699 = vmatpush1.bf16.msra.mxu0 %v5730_v12  ;;  %2740 = vmatpush1.bf16.msra.mxu1 %v5735_v15  ;;  %v5759_v12 = vld [vmem:[%s6120_s4 + $0xe8] ss:$16 sps:$4 sm:$0xff]   ;;  %v5768_v15 = vld [vmem:[%s6120_s4 + $0x104] ss:$16 sps:$4 sm:$0xff]  }
 0x29a   : > { %6361 = vst [vmem:[#allocation26_spill] sm:$0xff] %v5759_v12  ;;  %2700 = vmatprep.subr.bf16.mxu0 %v5744_v16  ;;  %2741 = vmatprep.subr.bf16.mxu1 %v5749_v14  ;;  %6362 = vst [vmem:[#allocation27_spill] sm:$0xff] %v5768_v15  ;;  %v5778_v16 = vld [vmem:[%s6120_s4 + $0x100] ss:$16 sps:$4 sm:$0xff]   ;;  %v5797_v14 = vld [vmem:[%s6120_s4 + $0x12c] ss:$16 sps:$4 sm:$0xff]  }
 0x29b   : > { %6364 = vst [vmem:[#allocation29_spill] sm:$0xff] %v5778_v16  ;;  %6367 = vst [vmem:[#allocation32_spill] sm:$0xff] %v5797_v14 }
 0x29d   : > { %2701 = vmatpush1.bf16.msra.mxu0 %v5754_v20  ;;  %2742 = vmatpush1.bf16.msra.mxu1 %v5759_v12  ;;  %v5783_v20 = vld [vmem:[%s6120_s4 + $0x108] ss:$16 sps:$4 sm:$0xff]   ;;  %v5792_v12 = vld [vmem:[%s6120_s4 + $0x124] ss:$16 sps:$4 sm:$0xff]  }
 0x29e   : > { %6365 = vst [vmem:[#allocation30_spill] sm:$0xff] %v5783_v20  ;;  %2702 = vmatprep.subr.bf16.mxu0 %v5768_v15  ;;  %2743 = vmatprep.subr.bf16.mxu1 %v5773_v11  ;;  %6366 = vst [vmem:[#allocation31_spill] sm:$0xff] %v5792_v12  ;;  %v5802_v15 = vld [vmem:[%s6120_s4 + $0x120] ss:$16 sps:$4 sm:$0xff]   ;;  %v5821_v11 = vld [vmem:[%s6120_s4 + $0x14c] ss:$16 sps:$4 sm:$0xff]  }
 0x29f   : > { %6368 = vst [vmem:[#allocation33_spill] sm:$0xff] %v5802_v15  ;;  %6371 = vst [vmem:[#allocation36_spill] sm:$0xff] %v5821_v11 }
 0x2a1   : > { %2703 = vmatpush1.bf16.msra.mxu0 %v5778_v16  ;;  %2744 = vmatpush1.bf16.msra.mxu1 %v5783_v20  ;;  %v5807_v16 = vld [vmem:[%s6120_s4 + $0x128] ss:$16 sps:$4 sm:$0xff]   ;;  %v5816_v20 = vld [vmem:[%s6120_s4 + $0x144] ss:$16 sps:$4 sm:$0xff]  }
 0x2a2   : > { %6369 = vst [vmem:[#allocation34_spill] sm:$0xff] %v5807_v16  ;;  %2704 = vmatprep.subr.bf16.mxu0 %v5792_v12  ;;  %2745 = vmatprep.subr.bf16.mxu1 %v5797_v14  ;;  %6370 = vst [vmem:[#allocation35_spill] sm:$0xff] %v5816_v20  ;;  %v5826_v12 = vld [vmem:[%s6120_s4 + $0x140] ss:$16 sps:$4 sm:$0xff]   ;;  %v5845_v14 = vld [vmem:[%s6120_s4 + $0x16c] ss:$16 sps:$4 sm:$0xff]  }
 0x2a3   : > { %6372 = vst [vmem:[#allocation37_spill] sm:$0xff] %v5826_v12  ;;  %6375 = vst [vmem:[#allocation41_spill] sm:$0xff] %v5845_v14 }
 0x2a5   : > { %2705 = vmatpush1.bf16.msra.mxu0 %v5802_v15  ;;  %2746 = vmatpush1.bf16.msra.mxu1 %v5807_v16  ;;  %v5831_v15 = vld [vmem:[%s6120_s4 + $0x148] ss:$16 sps:$4 sm:$0xff]   ;;  %v5840_v16 = vld [vmem:[%s6120_s4 + $0x164] ss:$16 sps:$4 sm:$0xff]  }
 0x2a6   : > { %6373 = vst [vmem:[#allocation38_spill] sm:$0xff] %v5831_v15  ;;  %2706 = vmatprep.subr.bf16.mxu0 %v5816_v20  ;;  %2747 = vmatprep.subr.bf16.mxu1 %v5821_v11  ;;  %6374 = vst [vmem:[#allocation39_spill] sm:$0xff] %v5840_v16  ;;  %v5850_v20 = vld [vmem:[%s6120_s4 + $0x160] ss:$16 sps:$4 sm:$0xff]   ;;  %v5869_v11 = vld [vmem:[%s6120_s4 + $0x18c] ss:$16 sps:$4 sm:$0xff]  }
 0x2a7   : > { %6376 = vst [vmem:[#allocation43_spill] sm:$0xff] %v5850_v20  ;;  %6379 = vst [vmem:[#allocation44_spill] sm:$0xff] %v5869_v11 }
 0x2a9   : > { %2707 = vmatpush1.bf16.msra.mxu0 %v5826_v12  ;;  %2748 = vmatpush1.bf16.msra.mxu1 %v5831_v15  ;;  %v5855_v12 = vld [vmem:[%s6120_s4 + $0x168] ss:$16 sps:$4 sm:$0xff]   ;;  %v5864_v15 = vld [vmem:[%s6120_s4 + $0x184] ss:$16 sps:$4 sm:$0xff]  }
 0x2aa   : > { %6377 = vst [vmem:[#allocation40_spill] sm:$0xff] %v5855_v12  ;;  %2708 = vmatprep.subr.bf16.mxu0 %v5840_v16  ;;  %2749 = vmatprep.subr.bf16.mxu1 %v5845_v14  ;;  %6378 = vst [vmem:[#allocation42_spill] sm:$0xff] %v5864_v15  ;;  %v5874_v16 = vld [vmem:[%s6120_s4 + $0x180] ss:$16 sps:$4 sm:$0xff]   ;;  %v5891_v14 = vld [vmem:[%s6120_s4 + $0x1ac] ss:$16 sps:$4 sm:$0xff]  }
 0x2ab   : > { %6380 = vst [vmem:[#allocation45_spill] sm:$0xff] %v5874_v16  ;;  %6383 = vst [vmem:[#allocation48_spill] sm:$0xff] %v5891_v14 }
 0x2ad   : > { %2709 = vmatpush1.bf16.msra.mxu0 %v5850_v20  ;;  %2750 = vmatpush1.bf16.msra.mxu1 %v5855_v12  ;;  %v5879_v20 = vld [vmem:[%s6120_s4 + $0x188] ss:$16 sps:$4 sm:$0xff]   ;;  %v5886_v12 = vld [vmem:[%s6120_s4 + $0x1a4] ss:$16 sps:$4 sm:$0xff]  }
 0x2ae   : > { %6381 = vst [vmem:[#allocation46_spill] sm:$0xff] %v5879_v20  ;;  %2710 = vmatprep.subr.bf16.mxu0 %v5864_v15  ;;  %2751 = vmatprep.subr.bf16.mxu1 %v5869_v11  ;;  %6382 = vst [vmem:[#allocation47_spill] sm:$0xff] %v5886_v12  ;;  %v5898_v15 = vld [vmem:[%s6120_s4 + $0x1a0] ss:$16 sps:$4 sm:$0xff]   ;;  %v5903_v11 = vld [vmem:[%s6120_s4 + $0x1a8] ss:$16 sps:$4 sm:$0xff]  }
 0x2af   : > { %6384 = vst [vmem:[#allocation49_spill] sm:$0xff] %v5898_v15  ;;  %6385 = vst [vmem:[#allocation50_spill] sm:$0xff] %v5903_v11 }
 0x2b1   : > { %2711 = vmatpush1.bf16.msra.mxu0 %v5874_v16  ;;  %2752 = vmatpush1.bf16.msra.mxu1 %v5879_v20  ;;  %v5910_v16 = vld [vmem:[%s6120_s4 + $0x1c4] ss:$16 sps:$4 sm:$0xff]   ;;  %v5915_v20 = vld [vmem:[%s6120_s4 + $0x1cc] ss:$16 sps:$4 sm:$0xff]  }
 0x2b2   : > { %2712 = vmatprep.subr.bf16.mxu0 %v5886_v12  ;;  %2753 = vmatprep.subr.bf16.mxu1 %v5891_v14  ;;  %6386 = vst [vmem:[#allocation51_spill] sm:$0xff] %v5910_v16  ;;  %6387 = vst [vmem:[#allocation52_spill] sm:$0xff] %v5915_v20  ;;  %v5922_v12 = vld [vmem:[%s6120_s4 + $0x1c0] ss:$16 sps:$4 sm:$0xff]   ;;  %v5927_v14 = vld [vmem:[%s6120_s4 + $0x1c8] ss:$16 sps:$4 sm:$0xff]  }
 0x2b3   : > { %6388 = vst [vmem:[#allocation53_spill] sm:$0xff] %v5922_v12  ;;  %6389 = vst [vmem:[#allocation54_spill] sm:$0xff] %v5927_v14 }
 0x2b5   : > { %2713 = vmatpush1.bf16.msra.mxu0 %v5898_v15  ;;  %2754 = vmatpush1.bf16.msra.mxu1 %v5903_v11  ;;  %v5934_v15 = vld [vmem:[%s6120_s4 + $0x1e4] ss:$16 sps:$4 sm:$0xff]   ;;  %v5939_v11 = vld [vmem:[%s6120_s4 + $0x1ec] ss:$16 sps:$4 sm:$0xff]  }
 0x2b6   : > { %2714 = vmatprep.subr.bf16.mxu0 %v5910_v16  ;;  %2755 = vmatprep.subr.bf16.mxu1 %v5915_v20  ;;  %6390 = vst [vmem:[#allocation55_spill] sm:$0xff] %v5934_v15  ;;  %6391 = vst [vmem:[#allocation56_spill] sm:$0xff] %v5939_v11  ;;  %v5946_v16 = vld [vmem:[%s6120_s4 + $0x1e0] ss:$16 sps:$4 sm:$0xff]   ;;  %v5951_v20 = vld [vmem:[%s6120_s4 + $0x1e8] ss:$16 sps:$4 sm:$0xff]  }
 0x2b7   : > { %6392 = vst [vmem:[#allocation57_spill] sm:$0xff] %v5946_v16  ;;  %6393 = vst [vmem:[#allocation58_spill] sm:$0xff] %v5951_v20 }
 0x2b9   : > { %2715 = vmatpush1.bf16.msra.mxu0 %v5922_v12  ;;  %2756 = vmatpush1.bf16.msra.mxu1 %v5927_v14  ;;  %v1521_v14 = vld [vmem:[%s6121_s5] sm:$0xf] }
 0x2ba   : > { %2716 = vmatprep.subr.bf16.mxu0 %v5934_v15  ;;  %2757 = vmatprep.subr.bf16.mxu1 %v5939_v11  ;;  %v1526_v12 = vrot.slane %v1521_v14, %v5355_v62  ;;  %v1530_v9 = vrot.slane %v1521_v14, %v5360_v0  ;;  %v1538_v57 = vrot.slane %v1521_v14, %v5364_v1 }
 0x2bb   : > { %v1534_v62 = vrot.slane %v1521_v14, %v5367_v18 }
 0x2bd   : > { %2717 = vmatpush1.bf16.msra.mxu0 %v5946_v16  ;;  %2758 = vmatpush1.bf16.msra.mxu1 %v5951_v20 }
 0x2be   : > { %2991 = vmatprep.subr.bf16.mxu0 %v5346_v6  ;;  %3032 = vmatprep.subr.bf16.mxu1 %v5351_v61 }
 0x333   : > { %v1897_v8 = vpop.f32.mrb[12].mxu0  ;;  %v1938_v15 = vpop.f32.mrb[12].mxu1 }
 0x334   : > { %v1898_v7 = vadd.f32 %v1897_v8, %v1526_v12  ;;  %v1899_v11 = vpop.f32.mrb[13].mxu0  ;;  %v1940_v5 = vpop.f32.mrb[13].mxu1  ;;  %v1939_v59 = vadd.f32 %v1938_v15, %v1534_v62  ;;  %v3912_v62 = vld [vmem:[%s4620_s12 + $0x48] sm:$0xff] }
 0x335   : > { %v1900_v16 = vadd.f32 %v1899_v11, %v1530_v9  ;;  %v1901_v55 = vpop.f32.mrb[14].mxu0  ;;  %v1942_v20 = vpop.f32.mrb[14].mxu1  ;;  %v1941_v56 = vadd.f32 %v1940_v5, %v1538_v57 }
 0x336   : > { %v3907_v54 = vmul.f32 -1.442695, %v1898_v7  ;;  %v1902_v6 = vpop.f32.mrb[15].mxu0  ;;  %v1943_v51 = vpop.f32.mrb[15].mxu1 }
 0x337   : > { %v3908_v61 = vmul.f32 -1.442695, %v1900_v16  ;;  %v3909_v0 = vmul.f32 -1.442695, %v1941_v56  ;;  %v3911_v56 = vld [vmem:[%s4620_s12 + $0x40] sm:$0xff] }
 0x338   : > { %4475 = vpow2.f32 %v3907_v54 }
 0x339   : > { %4477 = vpow2.f32 %v3908_v61 }
 0x33a   : > { %4479 = vpow2.f32 %v3909_v0 }
 0x33b   : > { %4481 = vtanh.f32 %v1939_v59 }
 0x342   : > { %v4476_v8 = vpop.eup %4475 }
 0x343   : > { %v4478_v12 = vpop.eup %4477  ;;  %v1948_v9 = vadd.f32 1.0, %v4476_v8 }
 0x344   : > { %v1954_v55 = vadd.f32 1.0, %v4478_v12  ;;  %v4480_v51 = vpop.eup %4479 }
 0x345   : > { %4483 = vrcp.f32 %v1948_v9  ;;  %v4482_v7 = vpop.eup %4481  ;;  %v1961_v57 = vadd.f32 1.0, %v4480_v51 }
 0x346   : > { %4485 = vrcp.f32 %v1954_v55 }
 0x347   : > { %4487 = vrcp.f32 %v1961_v57 }
 0x34f   : > { %v4484_v11 = vpop.eup %4483 }
 0x350   : > { %v4486_v54 = vpop.eup %4485  ;;  %v1965_v16 = vmul.f32 %v4484_v11, %v4482_v7  ;;  %v3914_v7 = vld [vmem:[%s4620_s12 + $0x58] sm:$0xff] }
 0x351   : > { %v1964_v5 = vmul.f32 %v4486_v54, %v5375_v39  ;;  %v3913_v54 = vld [vmem:[%s4620_s12 + $0x50] sm:$0xff] }
 0x353   : > { %v5969_v14 = vadd.f32 %v1965_v16, %v1964_v5  ;;  %v2202_v15 = vpop.f32.mrb[16].mxu0  ;;  %v2243_v20 = vpop.f32.mrb[16].mxu1 }
 0x354   : > { %v2250_v0 = vadd.f32 %v3911_v56, %v2202_v15  ;;  %v2204_v59 = vpop.f32.mrb[17].mxu0  ;;  %v2245_v6 = vpop.f32.mrb[17].mxu1  ;;  %v2252_v56 = vadd.f32 %v3913_v54, %v2243_v20 }
 0x355   : > { %v2251_v61 = vadd.f32 %v3912_v62, %v2204_v59  ;;  %v2206_v8 = vpop.f32.mrb[18].mxu0  ;;  %v2247_v12 = vpop.f32.mrb[18].mxu1  ;;  %4489 = vtanh.f32 %v5969_v14  ;;  %v2253_v11 = vadd.f32 %v3914_v7, %v2245_v6 }
 0x356   : > { %v3947_v9 = vmul.f32 -1.442695, %v2250_v0  ;;  %v2207_v39 = vpop.f32.mrb[19].mxu0  ;;  %v2248_v55 = vpop.f32.mrb[19].mxu1 }
 0x357   : > { %v3948_v51 = vmul.f32 -1.442695, %v2251_v61  ;;  %v4488_v16 = vpop.eup %4487  ;;  %v3949_v5 = vmul.f32 -1.442695, %v2253_v11 }
 0x358   : > { %4491 = vpow2.f32 %v3947_v9 }
 0x359   : > { %4493 = vpow2.f32 %v3948_v51 }
 0x35a   : > { %4495 = vpow2.f32 %v3949_v5  ;;  %v6435_v5 = vld [vmem:[#allocation45_spill] sm:$0xff] }
 0x35b   : > { %4497 = vtanh.f32 %v2252_v56  ;;  %v6436_v56 = vld [vmem:[#allocation46_spill] sm:$0xff] }
 0x35f   : > { %v4490_v57 = vpop.eup %4489 }
 0x360   : > { %v1968_v15 = vmul.f32 %v4490_v57, %v4488_v16 }
 0x362   : > { %v4492_v62 = vpop.eup %4491  ;;  %3910 = vst [vmem:[%s4625_s15 + $0x8] sm:$0xff] %v1968_v15  ;;  %v2279_v59 = vpack.c.bf16 %v1968_v15, %v1968_v15  ;;  %v6437_v15 = vld [vmem:[#allocation47_spill] sm:$0xff] }
 0x363   : > { %v4494_v8 = vpop.eup %4493  ;;  %v2257_v12 = vadd.f32 1.0, %v4492_v62  ;;  %v6438_v62 = vld [vmem:[#allocation48_spill] sm:$0xff] }
 0x364   : > { %v2263_v0 = vadd.f32 1.0, %v4494_v8  ;;  %2718 = vmatprep.mubr.bf16.mxu0 %v2279_v59  ;;  %2759 = vmatprep.mubr.bf16.mxu1 %v2279_v59  ;;  %v4496_v61 = vpop.eup %4495  ;;  %v6439_v59 = vld [vmem:[#allocation49_spill] sm:$0xff]  ;;  %v6440_v8 = vld [vmem:[#allocation50_spill] sm:$0xff] }
 0x365   : > { %4499 = vrcp.f32 %v2257_v12  ;;  %v4498_v6 = vpop.eup %4497  ;;  %v2270_v51 = vadd.f32 1.0, %v4496_v61  ;;  %v6441_v12 = vld [vmem:[#allocation51_spill] sm:$0xff]  ;;  %v6443_v61 = vld [vmem:[#allocation53_spill] sm:$0xff] }
 0x366   : > { %4501 = vrcp.f32 %v2263_v0  ;;  %v6442_v0 = vld [vmem:[#allocation52_spill] sm:$0xff] }
 0x367   : > { %4503 = vrcp.f32 %v2270_v51  ;;  %v6448_v51 = vld [vmem:[#allocation58_spill] sm:$0xff] }
 0x36f   : > { %v4500_v9 = vpop.eup %4499 }
 0x370   : > { %v4502_v39 = vpop.eup %4501  ;;  %v2274_v55 = vmul.f32 %v4500_v9, %v4498_v6  ;;  %v6444_v6 = vld [vmem:[#allocation54_spill] sm:$0xff]  ;;  %v6445_v9 = vld [vmem:[#allocation55_spill] sm:$0xff] }
 0x371   : > { %v2273_v20 = vmul.f32 %v4502_v39, %v5382_v13  ;;  %v4504_v11 = vpop.eup %4503  ;;  %v6395_v13 = vld [vmem:[#allocation5_spill] sm:$0xff]  ;;  %v6446_v39 = vld [vmem:[#allocation56_spill] sm:$0xff] }
 0x373   : > { %v5976_v7 = vadd.f32 %v2274_v55, %v2273_v20  ;;  %v6447_v55 = vld [vmem:[#allocation57_spill] sm:$0xff]  ;;  %v2344_v20 = vld [vmem:[%s6121_s5] sm:$0xf] }
 0x375   : > { %4505 = vtanh.f32 %v5976_v7 }
 0x37f   : > { %v4506_v54 = vpop.eup %4505 }
 0x380   : > { %v2277_v16 = vmul.f32 %v4506_v54, %v4504_v11  ;;  %v6449_v11 = vld [vmem:[#allocation2_spill] sm:$0xff] }
 0x381   : > { %v2349_v54 = vrot.slane %v2344_v20, %v6449_v11 }
 0x382   : > { %v2278_v57 = vpack.c.bf16 %v2277_v16, %v2277_v16  ;;  %v6450_v16 = vld [vmem:[#allocation3_spill] sm:$0xff] }
 0x384   : > { %2719 = vmatmul.mubr.bf16.vlgmr.msra.gmra.mrb[20].mxu0 %v2278_v57  ;;  %2760 = vmatmul.mubr.bf16.vlgmr.msra.gmra.mrb[20].mxu1 %v2278_v57 }
 0x385   : > { %2992 = vmatpush1.bf16.msra.mxu0 %v5388_v17  ;;  %3033 = vmatpush1.bf16.msra.mxu1 %v5393_v19  ;;  %v6396_v17 = vld [vmem:[#allocation6_spill] sm:$0xff]  ;;  %v6397_v19 = vld [vmem:[#allocation7_spill] sm:$0xff] }
 0x386   : > { %2993 = vmatprep.subr.bf16.mxu0 %v5400_v63  ;;  %3034 = vmatprep.subr.bf16.mxu1 %v5405_v21  ;;  %v6398_v63 = vld [vmem:[#allocation8_spill] sm:$0xff]  ;;  %v6399_v21 = vld [vmem:[#allocation9_spill] sm:$0xff] }
 0x387   : > { %3023 = vmatprep.mubr.bf16.mxu0 %v6286_v2  ;;  %3064 = vmatprep.mubr.bf16.mxu1 %v6286_v2  ;;  %v6394_v2 = vld [vmem:[#allocation4_spill] sm:$0xff] }
 0x389   : > { %2994 = vmatpush1.bf16.msra.mxu0 %v5414_v22  ;;  %3035 = vmatpush1.bf16.msra.mxu1 %v5419_v23  ;;  %v6400_v22 = vld [vmem:[#allocation10_spill] sm:$0xff]  ;;  %v6401_v23 = vld [vmem:[#allocation11_spill] sm:$0xff] }
 0x38a   : > { %2995 = vmatprep.subr.bf16.mxu0 %v5426_v24  ;;  %3036 = vmatprep.subr.bf16.mxu1 %v5431_v25  ;;  %v6402_v24 = vld [vmem:[#allocation12_spill] sm:$0xff]  ;;  %v6403_v25 = vld [vmem:[#allocation13_spill] sm:$0xff] }
 0x38d   : > { %2996 = vmatpush1.bf16.msra.mxu0 %v5440_v26  ;;  %3037 = vmatpush1.bf16.msra.mxu1 %v5445_v27  ;;  %v6404_v26 = vld [vmem:[#allocation14_spill] sm:$0xff]  ;;  %v6405_v27 = vld [vmem:[#allocation15_spill] sm:$0xff] }
 0x38e   : > { %2997 = vmatprep.subr.bf16.mxu0 %v5452_v28  ;;  %3038 = vmatprep.subr.bf16.mxu1 %v5457_v29  ;;  %v6406_v28 = vld [vmem:[#allocation16_spill] sm:$0xff]  ;;  %v6407_v29 = vld [vmem:[#allocation17_spill] sm:$0xff] }
 0x391   : > { %2998 = vmatpush1.bf16.msra.mxu0 %v5464_v30  ;;  %3039 = vmatpush1.bf16.msra.mxu1 %v5469_v31  ;;  %v6408_v30 = vld [vmem:[#allocation18_spill] sm:$0xff]  ;;  %v6409_v31 = vld [vmem:[#allocation19_spill] sm:$0xff] }
 0x392   : > { %2999 = vmatprep.subr.bf16.mxu0 %v5476_v32  ;;  %3040 = vmatprep.subr.bf16.mxu1 %v5481_v33  ;;  %v6410_v32 = vld [vmem:[#allocation20_spill] sm:$0xff]  ;;  %v6411_v33 = vld [vmem:[#allocation21_spill] sm:$0xff] }
 0x395   : > { %3000 = vmatpush1.bf16.msra.mxu0 %v5488_v35  ;;  %3041 = vmatpush1.bf16.msra.mxu1 %v5493_v36  ;;  %v6412_v35 = vld [vmem:[#allocation22_spill] sm:$0xff]  ;;  %v6413_v36 = vld [vmem:[#allocation23_spill] sm:$0xff] }
 0x396   : > { %3001 = vmatprep.subr.bf16.mxu0 %v5500_v37  ;;  %3042 = vmatprep.subr.bf16.mxu1 %v5505_v40  ;;  %v6414_v37 = vld [vmem:[#allocation24_spill] sm:$0xff]  ;;  %v6415_v40 = vld [vmem:[#allocation25_spill] sm:$0xff] }
 0x399   : > { %3002 = vmatpush1.bf16.msra.mxu0 %v5512_v41  ;;  %3043 = vmatpush1.bf16.msra.mxu1 %v5517_v42  ;;  %v6416_v41 = vld [vmem:[#allocation26_spill] sm:$0xff]  ;;  %v6417_v42 = vld [vmem:[#allocation27_spill] sm:$0xff] }
 0x39a   : > { %3003 = vmatprep.subr.bf16.mxu0 %v5524_v43  ;;  %3044 = vmatprep.subr.bf16.mxu1 %v5529_v44  ;;  %v6418_v43 = vld [vmem:[#allocation28_spill] sm:$0xff]  ;;  %v6419_v44 = vld [vmem:[#allocation29_spill] sm:$0xff] }
 0x39d   : > { %3004 = vmatpush1.bf16.msra.mxu0 %v5536_v45  ;;  %3045 = vmatpush1.bf16.msra.mxu1 %v5541_v46  ;;  %v6420_v45 = vld [vmem:[#allocation30_spill] sm:$0xff]  ;;  %v6421_v46 = vld [vmem:[#allocation31_spill] sm:$0xff] }
 0x39e   : > { %3005 = vmatprep.subr.bf16.mxu0 %v5548_v47  ;;  %3046 = vmatprep.subr.bf16.mxu1 %v5553_v48  ;;  %v6422_v47 = vld [vmem:[#allocation32_spill] sm:$0xff]  ;;  %v6423_v48 = vld [vmem:[#allocation33_spill] sm:$0xff] }
 0x3a1   : > { %3006 = vmatpush1.bf16.msra.mxu0 %v5560_v49  ;;  %3047 = vmatpush1.bf16.msra.mxu1 %v5565_v50  ;;  %v6424_v49 = vld [vmem:[#allocation34_spill] sm:$0xff]  ;;  %v6425_v50 = vld [vmem:[#allocation35_spill] sm:$0xff] }
 0x3a2   : > { %3509 = vmatprep.subr.bf16.mxu0 %v5576_v52  ;;  %3550 = vmatprep.subr.bf16.mxu1 %v5581_v53  ;;  %v6426_v52 = vld [vmem:[#allocation36_spill] sm:$0xff]  ;;  %v6427_v53 = vld [vmem:[#allocation37_spill] sm:$0xff] }
 0x3a4   : > { %3024 = vmatmul.mubr.bf16.vlgmr.msra.gmra.mrb[24].mxu0 %v2278_v57  ;;  %3065 = vmatmul.mubr.bf16.vlgmr.msra.gmra.mrb[24].mxu1 %v2278_v57  ;;  %v2353_v57 = vrot.slane %v2344_v20, %v6450_v16 }
 0x3a5   : > { %3510 = vmatpush1.bf16.msra.mxu0 %v5586_v34  ;;  %3551 = vmatpush1.bf16.msra.mxu1 %v5591_v4  ;;  %v6428_v34 = vld [vmem:[#allocation38_spill] sm:$0xff]  ;;  %v6429_v4 = vld [vmem:[#allocation39_spill] sm:$0xff] }
 0x3a6   : > { %3511 = vmatprep.subr.bf16.mxu0 %v5600_v10  ;;  %3552 = vmatprep.subr.bf16.mxu1 %v5605_v3  ;;  %v6430_v10 = vld [vmem:[#allocation41_spill] sm:$0xff]  ;;  %v6431_v3 = vld [vmem:[#allocation43_spill] sm:$0xff] }
 0x3a9   : > { %3512 = vmatpush1.bf16.msra.mxu0 %v5610_v38  ;;  %3553 = vmatpush1.bf16.msra.mxu1 %v5615_v60  ;;  %v6432_v38 = vld [vmem:[#allocation40_spill] sm:$0xff]  ;;  %v6433_v60 = vld [vmem:[#allocation42_spill] sm:$0xff] }
 0x3aa   : > { %3513 = vmatprep.subr.bf16.mxu0 %v5624_v58  ;;  %3554 = vmatprep.subr.bf16.mxu1 %v6394_v2  ;;  %v6434_v58 = vld [vmem:[#allocation44_spill] sm:$0xff] }
 0x3ad   : > { %3514 = vmatpush1.bf16.msra.mxu0 %v6395_v13  ;;  %3555 = vmatpush1.bf16.msra.mxu1 %v6396_v17 }
 0x3ae   : > { %3515 = vmatprep.subr.bf16.mxu0 %v6397_v19  ;;  %3556 = vmatprep.subr.bf16.mxu1 %v6398_v63 }
 0x3b1   : > { %3516 = vmatpush1.bf16.msra.mxu0 %v6399_v21  ;;  %3557 = vmatpush1.bf16.msra.mxu1 %v6400_v22 }
 0x3b2   : > { %3517 = vmatprep.subr.bf16.mxu0 %v6401_v23  ;;  %3558 = vmatprep.subr.bf16.mxu1 %v6402_v24 }
 0x3b5   : > { %3518 = vmatpush1.bf16.msra.mxu0 %v6403_v25  ;;  %3559 = vmatpush1.bf16.msra.mxu1 %v6404_v26 }
 0x3b6   : > { %3519 = vmatprep.subr.bf16.mxu0 %v6405_v27  ;;  %3560 = vmatprep.subr.bf16.mxu1 %v6406_v28  ;;  %v2361_v28 = vrot.slane %v2344_v20, %v5364_v1 }
 0x3b9   : > { %3520 = vmatpush1.bf16.msra.mxu0 %v6407_v29  ;;  %3561 = vmatpush1.bf16.msra.mxu1 %v6408_v30  ;;  %v2357_v30 = vrot.slane %v2344_v20, %v5367_v18 }
 0x3ba   : > { %3521 = vmatprep.subr.bf16.mxu0 %v6409_v31  ;;  %3562 = vmatprep.subr.bf16.mxu1 %v6410_v32 }
 0x3bd   : > { %3522 = vmatpush1.bf16.msra.mxu0 %v6411_v33  ;;  %3563 = vmatpush1.bf16.msra.mxu1 %v6412_v35 }
 0x3be   : > { %3523 = vmatprep.subr.bf16.mxu0 %v6413_v36  ;;  %3564 = vmatprep.subr.bf16.mxu1 %v6414_v37 }
 0x3c1   : > { %3524 = vmatpush1.bf16.msra.mxu0 %v6415_v40  ;;  %3565 = vmatpush1.bf16.msra.mxu1 %v6416_v41 }
 0x3c2   : > { %3525 = vmatprep.subr.bf16.mxu0 %v6417_v42  ;;  %3566 = vmatprep.subr.bf16.mxu1 %v6418_v43 }
 0x3c5   : > { %3526 = vmatpush1.bf16.msra.mxu0 %v6419_v44  ;;  %3567 = vmatpush1.bf16.msra.mxu1 %v6420_v45 }
 0x3c6   : > { %3527 = vmatprep.subr.bf16.mxu0 %v6421_v46  ;;  %3568 = vmatprep.subr.bf16.mxu1 %v6422_v47  ;;  %v4018_v47 = vld [vmem:[%s4620_s12 + $0x60] sm:$0xff] }
 0x3c9   : > { %3528 = vmatpush1.bf16.msra.mxu0 %v6423_v48  ;;  %3569 = vmatpush1.bf16.msra.mxu1 %v6424_v49  ;;  %v4019_v48 = vld [vmem:[%s4620_s12 + $0x68] sm:$0xff] }
 0x3ca   : > { %3529 = vmatprep.subr.bf16.mxu0 %v6425_v50  ;;  %3570 = vmatprep.subr.bf16.mxu1 %v6426_v52 }
 0x3cd   : > { %3530 = vmatpush1.bf16.msra.mxu0 %v6427_v53  ;;  %3571 = vmatpush1.bf16.msra.mxu1 %v6428_v34 }
 0x3ce   : > { %3531 = vmatprep.subr.bf16.mxu0 %v6429_v4  ;;  %3572 = vmatprep.subr.bf16.mxu1 %v6430_v10 }
 0x3d1   : > { %3532 = vmatpush1.bf16.msra.mxu0 %v6431_v3  ;;  %3573 = vmatpush1.bf16.msra.mxu1 %v6432_v38 }
 0x3d2   : > { %3533 = vmatprep.subr.bf16.mxu0 %v6433_v60  ;;  %3574 = vmatprep.subr.bf16.mxu1 %v6434_v58 }
 0x3d5   : > { %3534 = vmatpush1.bf16.msra.mxu0 %v6435_v5  ;;  %3575 = vmatpush1.bf16.msra.mxu1 %v6436_v56  ;;  %v4021_v56 = vld [vmem:[%s4620_s12 + $0x78] sm:$0xff] }
 0x3d6   : > { %3535 = vmatprep.subr.bf16.mxu0 %v6437_v15  ;;  %3576 = vmatprep.subr.bf16.mxu1 %v6438_v62  ;;  %v4020_v62 = vld [vmem:[%s4620_s12 + $0x70] sm:$0xff] }
 0x3d9   : > { %3536 = vmatpush1.bf16.msra.mxu0 %v6439_v59  ;;  %3577 = vmatpush1.bf16.msra.mxu1 %v6440_v8 }
 0x3da   : > { %3537 = vmatprep.subr.bf16.mxu0 %v6441_v12  ;;  %3578 = vmatprep.subr.bf16.mxu1 %v6442_v0 }
 0x3dd   : > { %3538 = vmatpush1.bf16.msra.mxu0 %v6443_v61  ;;  %3579 = vmatpush1.bf16.msra.mxu1 %v6444_v6 }
 0x3de   : > { %3539 = vmatprep.subr.bf16.mxu0 %v6445_v9  ;;  %3580 = vmatprep.subr.bf16.mxu1 %v6446_v39 }
 0x3e1   : > { %3540 = vmatpush1.bf16.msra.mxu0 %v6447_v55  ;;  %3581 = vmatpush1.bf16.msra.mxu1 %v6448_v51 }
 0x457   : > { %v2720_v2 = vpop.f32.mrb[20].mxu0  ;;  %v2761_v13 = vpop.f32.mrb[20].mxu1 }
 0x458   : > { %v2721_v17 = vadd.f32 %v2720_v2, %v2349_v54  ;;  %v2722_v19 = vpop.f32.mrb[21].mxu0  ;;  %v2763_v63 = vpop.f32.mrb[21].mxu1  ;;  %v2762_v32 = vadd.f32 %v2761_v13, %v2357_v30 }
 0x459   : > { %v2723_v21 = vadd.f32 %v2722_v19, %v2353_v57  ;;  %v2724_v22 = vpop.f32.mrb[22].mxu0  ;;  %v2765_v23 = vpop.f32.mrb[22].mxu1  ;;  %v2764_v29 = vadd.f32 %v2763_v63, %v2361_v28 }
 0x45a   : > { %v4014_v24 = vmul.f32 -1.442695, %v2721_v17  ;;  %v2725_v25 = vpop.f32.mrb[23].mxu0  ;;  %v2766_v26 = vpop.f32.mrb[23].mxu1 }
 0x45b   : > { %v4015_v27 = vmul.f32 -1.442695, %v2723_v21  ;;  %v4016_v31 = vmul.f32 -1.442695, %v2764_v29 }
 0x45c   : > { %4507 = vpow2.f32 %v4014_v24 }
 0x45d   : > { %4509 = vpow2.f32 %v4015_v27 }
 0x45e   : > { %4511 = vpow2.f32 %v4016_v31 }
 0x45f   : > { %4513 = vtanh.f32 %v2762_v32 }
 0x466   : > { %v4508_v33 = vpop.eup %4507 }
 0x467   : > { %v4510_v35 = vpop.eup %4509  ;;  %v2771_v36 = vadd.f32 1.0, %v4508_v33 }
 0x468   : > { %v2777_v37 = vadd.f32 1.0, %v4510_v35  ;;  %v4512_v40 = vpop.eup %4511 }
 0x469   : > { %4515 = vrcp.f32 %v2771_v36  ;;  %v4514_v41 = vpop.eup %4513  ;;  %v2784_v45 = vadd.f32 1.0, %v4512_v40 }
 0x46a   : > { %4517 = vrcp.f32 %v2777_v37 }
 0x46b   : > { %4519 = vrcp.f32 %v2784_v45 }
 0x473   : > { %v4516_v42 = vpop.eup %4515 }
 0x474   : > { %v4518_v43 = vpop.eup %4517  ;;  %v2788_v44 = vmul.f32 %v4516_v42, %v4514_v41 }
 0x475   : > { %v2787_v46 = vmul.f32 %v4518_v43, %v5969_v14  ;;  %v4520_v59 = vpop.eup %4519 }
 0x477   : > { %v6085_v49 = vadd.f32 %v2788_v44, %v2787_v46  ;;  %v3025_v50 = vpop.f32.mrb[24].mxu0  ;;  %v3066_v52 = vpop.f32.mrb[24].mxu1 }
 0x478   : > { %v3073_v53 = vadd.f32 %v4018_v47, %v3025_v50  ;;  %v3027_v34 = vpop.f32.mrb[25].mxu0  ;;  %v3068_v4 = vpop.f32.mrb[25].mxu1  ;;  %v3075_v0 = vadd.f32 %v4020_v62, %v3066_v52 }
 0x479   : > { %v3074_v10 = vadd.f32 %v4019_v48, %v3027_v34  ;;  %v3029_v3 = vpop.f32.mrb[26].mxu0  ;;  %v3070_v38 = vpop.f32.mrb[26].mxu1  ;;  %4521 = vtanh.f32 %v6085_v49  ;;  %v3076_v15 = vadd.f32 %v4021_v56, %v3068_v4 }
 0x47a   : > { %v4054_v60 = vmul.f32 -1.442695, %v3073_v53  ;;  %v3030_v14 = vpop.f32.mrb[27].mxu0  ;;  %v3071_v58 = vpop.f32.mrb[27].mxu1 }
 0x47b   : > { %v4055_v5 = vmul.f32 -1.442695, %v3074_v10  ;;  %v4056_v12 = vmul.f32 -1.442695, %v3076_v15 }
 0x47c   : > { %4523 = vpow2.f32 %v4054_v60 }
 0x47d   : > { %4525 = vpow2.f32 %v4055_v5 }
 0x47e   : > { %4527 = vpow2.f32 %v4056_v12 }
 0x47f   : > { %4529 = vtanh.f32 %v3075_v0 }
 0x483   : > { %v4522_v8 = vpop.eup %4521 }
 0x484   : > { %v2791_v61 = vmul.f32 %v4522_v8, %v4520_v59 }
 0x486   : > { %v4524_v6 = vpop.eup %4523  ;;  %4017 = vst [vmem:[%s4625_s15 + $0x10] sm:$0xff] %v2791_v61  ;;  %v3102_v9 = vpack.c.bf16 %v2791_v61, %v2791_v61 }
 0x487   : > { %v4526_v39 = vpop.eup %4525  ;;  %v3080_v55 = vadd.f32 1.0, %v4524_v6 }
 0x488   : > { %v3086_v51 = vadd.f32 1.0, %v4526_v39  ;;  %3541 = vmatprep.mubr.bf16.mxu0 %v3102_v9  ;;  %3582 = vmatprep.mubr.bf16.mxu1 %v3102_v9  ;;  %v4528_v20 = vpop.eup %4527 }
 0x489   : > { %4531 = vrcp.f32 %v3080_v55  ;;  %v4530_v54 = vpop.eup %4529  ;;  %v3093_v17 = vadd.f32 1.0, %v4528_v20 }
 0x48a   : > { %4533 = vrcp.f32 %v3086_v51 }
 0x48b   : > { %4535 = vrcp.f32 %v3093_v17 }
 0x493   : > { %v4532_v57 = vpop.eup %4531 }
 0x494   : > { %v4534_v2 = vpop.eup %4533  ;;  %v3097_v13 = vmul.f32 %v4532_v57, %v4530_v54 }
 0x495   : > { %v3096_v19 = vmul.f32 %v4534_v2, %v5976_v7  ;;  %v4536_v21 = vpop.eup %4535  ;;  %v3167_v7 = vld [vmem:[%s6121_s5] sm:$0xf] }
 0x496   : > { %v3172_v25 = vrot.slane %v3167_v7, %v6449_v11  ;;  %v3176_v26 = vrot.slane %v3167_v7, %v6450_v16  ;;  %v3184_v42 = vrot.slane %v3167_v7, %v5364_v1  ;;  %v3180_v11 = vrot.slane %v3167_v7, %v5367_v18 }
 0x497   : > { %v3098_v63 = vadd.f32 %v3097_v13, %v3096_v19 }
 0x499   : > { %4537 = vtanh.f32 %v3098_v63  ;;  %3618 = vst [vmem:[%s6124_s8] sm:$0xff] %v3098_v63 }
 0x4a3   : > { %v4538_v22 = vpop.eup %4537 }
 0x4a4   : > { %v3100_v23 = vmul.f32 %v4538_v22, %v4536_v21 }
 0x4a6   : > { %v3101_v24 = vpack.c.bf16 %v3100_v23, %v3100_v23  ;;  %3617 = vst [vmem:[%s6123_s7] sm:$0xff] %v3100_v23 }
 0x4a8   : > { %3542 = vmatmul.mubr.bf16.vlgmr.msra.gmra.mrb[28].mxu0 %v3101_v24  ;;  %3583 = vmatmul.mubr.bf16.vlgmr.msra.gmra.mrb[28].mxu1 %v3101_v24 }
 0x57b   : > { %v3543_v27 = vpop.f32.mrb[28].mxu0  ;;  %v3584_v28 = vpop.f32.mrb[28].mxu1 }
 0x57c   : > { %v3544_v29 = vadd.f32 %v3543_v27, %v3172_v25  ;;  %v3545_v30 = vpop.f32.mrb[29].mxu0  ;;  %v3586_v31 = vpop.f32.mrb[29].mxu1  ;;  %v3585_v44 = vadd.f32 %v3584_v28, %v3180_v11 }
 0x57d   : > { %v3546_v32 = vadd.f32 %v3545_v30, %v3176_v26  ;;  %v3547_v33 = vpop.f32.mrb[30].mxu0  ;;  %v3588_v35 = vpop.f32.mrb[30].mxu1  ;;  %v3587_v43 = vadd.f32 %v3586_v31, %v3184_v42 }
 0x57e   : > { %v4121_v36 = vmul.f32 -1.442695, %v3544_v29  ;;  %v3548_v37 = vpop.f32.mrb[31].mxu0  ;;  %v3589_v40 = vpop.f32.mrb[31].mxu1 }
 0x57f   : > { %v4122_v41 = vmul.f32 -1.442695, %v3546_v32  ;;  %v4123_v16 = vmul.f32 -1.442695, %v3587_v43 }
 0x580   : > { %4539 = vpow2.f32 %v4121_v36 }
 0x581   : > { %4541 = vpow2.f32 %v4122_v41 }
 0x582   : > { %4543 = vpow2.f32 %v4123_v16 }
 0x583   : > { %4545 = vtanh.f32 %v3585_v44 }
 0x58a   : > { %v4540_v45 = vpop.eup %4539 }
 0x58b   : > { %v4542_v46 = vpop.eup %4541  ;;  %v3594_v47 = vadd.f32 1.0, %v4540_v45 }
 0x58c   : > { %v3600_v48 = vadd.f32 1.0, %v4542_v46  ;;  %v4544_v50 = vpop.eup %4543 }
 0x58d   : > { %4547 = vrcp.f32 %v3594_v47  ;;  %v4546_v52 = vpop.eup %4545  ;;  %v3607_v4 = vadd.f32 1.0, %v4544_v50 }
 0x58e   : > { %4549 = vrcp.f32 %v3600_v48 }
 0x58f   : > { %4551 = vrcp.f32 %v3607_v4 }
 0x597   : > { %v4548_v53 = vpop.eup %4547 }
 0x598   : > { %v4550_v1 = vpop.eup %4549  ;;  %v3611_v34 = vmul.f32 %v4548_v53, %v4546_v52 }
 0x599   : > { %v3610_v10 = vmul.f32 %v4550_v1, %v6085_v49  ;;  %v4552_v3 = vpop.eup %4551 }
 0x59b   : > { %v3612_v18 = vadd.f32 %v3611_v34, %v3610_v10 }
 0x59d   : > { %4553 = vtanh.f32 %v3612_v18  ;;  %4126 = vst [vmem:[%s6124_s8 + $0x8] sm:$0xff] %v3612_v18 }
 0x5a7   : > { %v4554_v38 = vpop.eup %4553 }
 0x5a8   : > { %v3614_v60 = vmul.f32 %v4554_v38, %v4552_v3 }
 0x5aa   : > { %4124 = vst [vmem:[%s4625_s15 + $0x18] sm:$0xff] %v3614_v60  ;;  %4125 = vst [vmem:[%s6123_s7 + $0x8] sm:$0xff] %v3614_v60 }
 0x5ab PF: > { %s19_s27 = sadd.s32 1, %s4561_s27  }
 0x5ac   : > { %p16_p5 = scmp.ge.s32.totalorder %s19_s27, 4  }
 0x5ae   :  { %18 = sbr.rel (!%p16_p5) target bundleno = 1 (0x1), region = 102 }

</bundles_post_ra>
